<compile_context>
chip_gen: v7x
topology: tpu7x:2x2x1
jax: 0.10.0
libtpu: 0.0.40
codegen_flags: <defaults>
</compile_context>

<pallas_src>
import functools

import jax
import jax.numpy as jnp
from jax.experimental import pallas as pl
from jax.experimental.pallas import tpu as pltpu

LEAKY_SLOPE = 0.01  # F.leaky_relu default


def _decoder_kernel(T, Bp, H1, H2, H3,
                    # ---- inputs ----
                    x_ref,                      # (T*Bp, D)  bf16
                    w1i, w1h, b1,               # (D,4H1) bf16, (H1,4H1) bf16, (1,4H1) f32
                    w2i, w2h, b2,
                    w3i, w3h, b3,
                    fcw, fcb,                   # (H3,1) f32, (1,1) f32
                    h01, c01, h02, c02, h03, c03,   # (Bp,Hi) f32
                    # ---- outputs ----
                    out_ref,                    # (T*Bp, 1) f32
                    h1o, c1o, h2o, c2o, h3o, c3o,
                    # ---- scratch ----
                    x1pre,                      # (T*Bp, 4H1) f32
                    y3buf):                     # (T*Bp, H3)  f32
    f32 = jnp.float32
    bf16 = jnp.bfloat16

    # (1) Hoisted layer-1 input projection: one big MXU matmul for all T steps.
    x1pre[...] = (jnp.dot(x_ref[...], w1i[...], preferred_element_type=f32)
                  + b1[...])

    # (2) Static lane masks (hoisted out of the loop; JAX does not CSE broadcasts).
    def gate_mask(H):
        lane = jax.lax.broadcasted_iota(jnp.int32, (Bp, 4 * H), 1)
        return (lane >= 2 * H) & (lane < 3 * H)      # True on the "g" (cell-input) block

    gm1, gm2, gm3 = gate_mask(H1), gate_mask(H2), gate_mask(H3)

    def cell_update(gates, c_prev, gmask, H):
        # Full-width EUP work, then blend with the static lane mask; slice only for the
        # cheap elementwise cell update.  Gate order is [i, f, g, o].
        act = jnp.where(gmask, jnp.tanh(gates), jax.nn.sigmoid(gates))
        i_g = act[:, 0:H]
        f_g = act[:, H:2 * H]
        g_g = act[:, 2 * H:3 * H]
        o_g = act[:, 3 * H:4 * H]
        c_new = f_g * c_prev + i_g * g_g
        h_new = o_g * jnp.tanh(c_new)
        return h_new, c_new

    # (3) The serial recurrence, fully unrolled inside the kernel.
    def step(t, carry):
        h1, c1, h2, c2, h3, c3 = carry
        row = t * Bp

        g1 = (x1pre[pl.ds(row, Bp), :]
              + jnp.dot(h1.astype(bf16), w1h[...], preferred_element_type=f32))
        h1, c1 = cell_update(g1, c1, gm1, H1)

        g2 = (jnp.dot(h1.astype(bf16), w2i[...], preferred_element_type=f32)
              + jnp.dot(h2.astype(bf16), w2h[...], preferred_element_type=f32)
              + b2[...])
        h2, c2 = cell_update(g2, c2, gm2, H2)

        g3 = (jnp.dot(h2.astype(bf16), w3i[...], preferred_element_type=f32)
              + jnp.dot(h3.astype(bf16), w3h[...], preferred_element_type=f32)
              + b3[...])
        h3, c3 = cell_update(g3, c3, gm3, H3)

        y3buf[pl.ds(row, Bp), :] = h3
        return (h1, c1, h2, c2, h3, c3)

    init = (h01[...], c01[...], h02[...], c02[...], h03[...], c03[...])
    h1, c1, h2, c2, h3, c3 = jax.lax.fori_loop(0, T, step, init, unroll=True)

    # (4) Final states written once.
    h1o[...] = h1
    c1o[...] = c1
    h2o[...] = h2
    c2o[...] = c2
    h3o[...] = h3
    c3o[...] = c3

    # (5) Deferred fc + leaky_relu: one matmul over all steps, one store.
    out = jnp.dot(y3buf[...], fcw[...], preferred_element_type=f32) + fcb[...]
    out_ref[...] = jnp.where(out > 0, out, LEAKY_SLOPE * out)


def decoder_lstm_forward(x, params, states):
    """x: (T, B, D) f32.  params: dict of f32 weights.  states: list of 3 (h, c), each (B, H_i)."""
    T, B, D = x.shape
    H1 = params["w1_hh"].shape[0]
    H2 = params["w2_hh"].shape[0]
    H3 = params["w3_hh"].shape[0]

    # Pad the batch to a full sublane multiple (8) and flatten time into the sublane axis.
    Bp = max(8, ((B + 7) // 8) * 8)
    pad = Bp - B
    xp = jnp.pad(x, ((0, 0), (0, pad), (0, 0))) if pad else x
    x2d = xp.reshape(T * Bp, D).astype(jnp.bfloat16)

    def pad_state(s):
        return jnp.pad(s, ((0, pad), (0, 0))) if pad else s

    bf = lambda w: w.astype(jnp.bfloat16)

    flat_inputs = [
        x2d,
        bf(params["w1_ih"]), bf(params["w1_hh"]), params["b1"],
        bf(params["w2_ih"]), bf(params["w2_hh"]), params["b2"],
        bf(params["w3_ih"]), bf(params["w3_hh"]), params["b3"],
        params["fc_w"], params["fc_b"],
        pad_state(states[0][0]), pad_state(states[0][1]),
        pad_state(states[1][0]), pad_state(states[1][1]),
        pad_state(states[2][0]), pad_state(states[2][1]),
    ]

    vmem = pltpu.MemorySpace.VMEM
    in_specs = [pl.BlockSpec(memory_space=vmem) for _ in flat_inputs]

    out_shape = (
        jax.ShapeDtypeStruct((T * Bp, 1), jnp.float32),  # output sequence (flattened, padded)
        jax.ShapeDtypeStruct((Bp, H1), jnp.float32),     # h1_T
        jax.ShapeDtypeStruct((Bp, H1), jnp.float32),     # c1_T
        jax.ShapeDtypeStruct((Bp, H2), jnp.float32),     # h2_T
        jax.ShapeDtypeStruct((Bp, H2), jnp.float32),     # c2_T
        jax.ShapeDtypeStruct((Bp, H3), jnp.float32),     # h3_T
        jax.ShapeDtypeStruct((Bp, H3), jnp.float32),     # c3_T
    )
    out_specs = tuple(pl.BlockSpec(memory_space=vmem) for _ in range(len(out_shape)))

    kernel = functools.partial(_decoder_kernel, T, Bp, H1, H2, H3)

    outs = pl.pallas_call(
        kernel,
        out_shape=out_shape,
        in_specs=in_specs,
        out_specs=out_specs,
        scratch_shapes=[
            pltpu.VMEM((T * Bp, 4 * H1), jnp.float32),   # hoisted layer-1 input projection
            pltpu.VMEM((T * Bp, H3), jnp.float32),       # y3 sequence for the deferred fc
        ],
    )(*flat_inputs)

    output = outs[0].reshape(T, Bp, 1)[:, :B, :]
    hn = [(outs[1][:B], outs[2][:B]),
          (outs[3][:B], outs[4][:B]),
          (outs[5][:B], outs[6][:B])]
    return output, hn


# ---------------- pure-JAX reference (for sanity check) ----------------
def _reference(x, params, states, mxu_dtype):
    """Same math as the module; `mxu_dtype=bf16` mirrors the kernel's MXU operand casting."""
    def mm(a, b):
        return jnp.dot(a.astype(mxu_dtype), b.astype(mxu_dtype),
                       preferred_element_type=jnp.float32)

    def lstm_layer(xs, h0, c0, wi, wh, b):
        H = h0.shape[-1]

        def step(carry, x_t):
            h, c = carry
            gates = mm(x_t, wi) + mm(h, wh) + b
            i_g = jax.nn.sigmoid(gates[:, :H])
            f_g = jax.nn.sigmoid(gates[:, H:2 * H])
            g_g = jnp.tanh(gates[:, 2 * H:3 * H])
            o_g = jax.nn.sigmoid(gates[:, 3 * H:])
            c = f_g * c + i_g * g_g
            h = o_g * jnp.tanh(c)
            return (h, c), h

        (hT, cT), ys = jax.lax.scan(step, (h0, c0), xs)
        return ys, hT, cT

    y1, h1, c1 = lstm_layer(x, states[0][0], states[0][1],
                            params["w1_ih"], params["w1_hh"], params["b1"])
    y2, h2, c2 = lstm_layer(y1, states[1][0], states[1][1],
                            params["w2_ih"], params["w2_hh"], params["b2"])
    y3, h3, c3 = lstm_layer(y2, states[2][0], states[2][1],
                            params["w3_ih"], params["w3_hh"], params["b3"])
    out = jnp.dot(y3, params["fc_w"], preferred_element_type=jnp.float32) + params["fc_b"]
    out = jnp.where(out > 0, out, LEAKY_SLOPE * out)
    return out, [(h1, c1), (h2, c2), (h3, c3)]


# ---------------- deterministic parameter initialization ----------------
def init_params(key, input_dim, hidden_dim):
    H1, H2, H3 = hidden_dim[1], hidden_dim[2], hidden_dim[3]
    keys = jax.random.split(key, 16)

    def u(k, shape, H):
        bound = 1.0 / jnp.sqrt(H)
        return jax.random.uniform(k, shape, jnp.float32, -bound, bound)

    params = {
        # layer1: LSTM(input_dim -> H1); weights stored transposed, bias = b_ih + b_hh
        "w1_ih": u(keys[0], (input_dim, 4 * H1), H1),
        "w1_hh": u(keys[1], (H1, 4 * H1), H1),
        "b1":    u(keys[2], (1, 4 * H1), H1) + u(keys[3], (1, 4 * H1), H1),
        # layer2: LSTM(H1 -> H2)
        "w2_ih": u(keys[4], (H1, 4 * H2), H2),
        "w2_hh": u(keys[5], (H2, 4 * H2), H2),
        "b2":    u(keys[6], (1, 4 * H2), H2) + u(keys[7], (1, 4 * H2), H2),
        # layer3: LSTM(H2 -> H3)
        "w3_ih": u(keys[8], (H2, 4 * H3), H3),
        "w3_hh": u(keys[9], (H3, 4 * H3), H3),
        "b3":    u(keys[10], (1, 4 * H3), H3) + u(keys[11], (1, 4 * H3), H3),
        # fc: Linear(H3 -> 1)
        "fc_w":  u(keys[12], (H3, 1), H3),
        "fc_b":  u(keys[13], (1, 1), H3),
    }
    return params


if __name__ == "__main__":
    # Small shapes consistent with the module's forward.
    T, B = 8, 2
    input_dim = 16
    hidden_dim = [4, 32, 32, 32]   # __init__ overwrites hidden_dim[0] = 1 (unused here)
    hidden_dim[0] = 1

    key = jax.random.PRNGKey(0)
    k_p, k_x, k_h = jax.random.split(key, 3)
    params = init_params(k_p, input_dim, hidden_dim)

    x = jax.random.normal(k_x, (T, B, input_dim), jnp.float32)

    hkeys = jax.random.split(k_h, 6)
    states = [
        (jax.random.normal(hkeys[0], (B, hidden_dim[1]), jnp.float32),
         jax.random.normal(hkeys[1], (B, hidden_dim[1]), jnp.float32)),
        (jax.random.normal(hkeys[2], (B, hidden_dim[2]), jnp.float32),
         jax.random.normal(hkeys[3], (B, hidden_dim[2]), jnp.float32)),
        (jax.random.normal(hkeys[4], (B, hidden_dim[3]), jnp.float32),
         jax.random.normal(hkeys[5], (B, hidden_dim[3]), jnp.float32)),
    ]

    output, hn = decoder_lstm_forward(x, params, states)
    jax.block_until_ready(output)
    jax.block_until_ready(hn)

    # (a) Tight check against a reference that mirrors the kernel's bf16 MXU operands.
    ref_out, ref_hn = _reference(x, params, states, jnp.bfloat16)
    assert jnp.allclose(output, ref_out, atol=5e-3, rtol=5e-3)
    for (h_k, c_k), (h_r, c_r) in zip(hn, ref_hn):
        assert jnp.allclose(h_k, h_r, atol=5e-3, rtol=5e-3)
        assert jnp.allclose(c_k, c_r, atol=5e-3, rtol=5e-3)

    # (b) Loose check against the exact-f32 module semantics (bf16 operands introduce only a
    #     small, bounded quantization error with f32 accumulation and f32 cell state).
    f32_out, _ = _reference(x, params, states, jnp.float32)
    assert jnp.allclose(output, f32_out, atol=1e-1, rtol=1e-1)

    print("KERNEL_OK")
</pallas_src>

<mosaic_0001>
module attributes {stable_mosaic.version = 11 : i64} {
  func.func @_decoder_kernel(%arg0: memref<64x16xbf16, #tpu.memory_space<vmem>>, %arg1: memref<16x128xbf16, #tpu.memory_space<vmem>>, %arg2: memref<32x128xbf16, #tpu.memory_space<vmem>>, %arg3: memref<1x128xf32, #tpu.memory_space<vmem>>, %arg4: memref<32x128xbf16, #tpu.memory_space<vmem>>, %arg5: memref<32x128xbf16, #tpu.memory_space<vmem>>, %arg6: memref<1x128xf32, #tpu.memory_space<vmem>>, %arg7: memref<32x128xbf16, #tpu.memory_space<vmem>>, %arg8: memref<32x128xbf16, #tpu.memory_space<vmem>>, %arg9: memref<1x128xf32, #tpu.memory_space<vmem>>, %arg10: memref<32x1xf32, #tpu.memory_space<vmem>>, %arg11: memref<1x1xf32, #tpu.memory_space<vmem>>, %arg12: memref<8x32xf32, #tpu.memory_space<vmem>>, %arg13: memref<8x32xf32, #tpu.memory_space<vmem>>, %arg14: memref<8x32xf32, #tpu.memory_space<vmem>>, %arg15: memref<8x32xf32, #tpu.memory_space<vmem>>, %arg16: memref<8x32xf32, #tpu.memory_space<vmem>>, %arg17: memref<8x32xf32, #tpu.memory_space<vmem>>, %arg18: memref<64x1xf32, #tpu.memory_space<vmem>>, %arg19: memref<8x32xf32, #tpu.memory_space<vmem>>, %arg20: memref<8x32xf32, #tpu.memory_space<vmem>>, %arg21: memref<8x32xf32, #tpu.memory_space<vmem>>, %arg22: memref<8x32xf32, #tpu.memory_space<vmem>>, %arg23: memref<8x32xf32, #tpu.memory_space<vmem>>, %arg24: memref<8x32xf32, #tpu.memory_space<vmem>>, %arg25: memref<64x128xf32, #tpu.memory_space<vmem>>, %arg26: memref<64x32xf32, #tpu.memory_space<vmem>>) attributes {dimension_semantics = [], scalar_prefetch = 0 : i64, scratch_operands = 2 : i64, tpu.core_type = #tpu.core_type<tc>} {
    %c0 = arith.constant 0 : index
    %c0_0 = arith.constant 0 : index
    %0 = vector.load %arg0[%c0, %c0_0] : memref<64x16xbf16, #tpu.memory_space<vmem>>, vector<64x16xbf16>
    %c0_1 = arith.constant 0 : index
    %c0_2 = arith.constant 0 : index
    %1 = vector.load %arg1[%c0_1, %c0_2] : memref<16x128xbf16, #tpu.memory_space<vmem>>, vector<16x128xbf16>
    %cst = arith.constant dense<0.000000e+00> : vector<64x128xf32>
    %2 = tpu.matmul %0, %1, %cst {dimension_numbers = #tpu.dot_dimension_numbers<[1], [0], [0], [1], [0, 0, 1, 1], [], []>} : vector<64x16xbf16>, vector<16x128xbf16>, vector<64x128xf32> -> vector<64x128xf32>
    %c0_3 = arith.constant 0 : index
    %c0_4 = arith.constant 0 : index
    %3 = vector.load %arg3[%c0_3, %c0_4] : memref<1x128xf32, #tpu.memory_space<vmem>>, vector<1x128xf32>
    %4 = vector.broadcast %3 : vector<1x128xf32> to vector<64x128xf32>
    %5 = arith.addf %2, %4 : vector<64x128xf32>
    %c0_5 = arith.constant 0 : index
    %c0_6 = arith.constant 0 : index
    %6 = vector.load %arg25[%c0_5, %c0_6] : memref<64x128xf32, #tpu.memory_space<vmem>>, vector<64x128xf32>
    tpu.vector_store %arg25[%c0_5, %c0_6], %5 {strides = array<i32>} : memref<64x128xf32, #tpu.memory_space<vmem>>, vector<64x128xf32>,
    %7 = tpu.iota {dimensions = array<i32: 1>} : vector<8x128xi32>
    %c64_i32 = arith.constant 64 : i32
    %8 = vector.broadcast %c64_i32 : i32 to vector<8x128xi32>
    %9 = arith.cmpi sge, %7, %8 : vector<8x128xi32>
    %c96_i32 = arith.constant 96 : i32
    %10 = vector.broadcast %c96_i32 : i32 to vector<8x128xi32>
    %11 = arith.cmpi slt, %7, %10 : vector<8x128xi32>
    %12 = arith.andi %9, %11 : vector<8x128xi1>
    %13 = tpu.iota {dimensions = array<i32: 1>} : vector<8x128xi32>
    %c64_i32_7 = arith.constant 64 : i32
    %14 = vector.broadcast %c64_i32_7 : i32 to vector<8x128xi32>
    %15 = arith.cmpi sge, %13, %14 : vector<8x128xi32>
    %c96_i32_8 = arith.constant 96 : i32
    %16 = vector.broadcast %c96_i32_8 : i32 to vector<8x128xi32>
    %17 = arith.cmpi slt, %13, %16 : vector<8x128xi32>
    %18 = arith.andi %15, %17 : vector<8x128xi1>
    %19 = tpu.iota {dimensions = array<i32: 1>} : vector<8x128xi32>
    %c64_i32_9 = arith.constant 64 : i32
    %20 = vector.broadcast %c64_i32_9 : i32 to vector<8x128xi32>
    %21 = arith.cmpi sge, %19, %20 : vector<8x128xi32>
    %c96_i32_10 = arith.constant 96 : i32
    %22 = vector.broadcast %c96_i32_10 : i32 to vector<8x128xi32>
    %23 = arith.cmpi slt, %19, %22 : vector<8x128xi32>
    %24 = arith.andi %21, %23 : vector<8x128xi1>
    %c0_11 = arith.constant 0 : index
    %c0_12 = arith.constant 0 : index
    %25 = vector.load %arg12[%c0_11, %c0_12] : memref<8x32xf32, #tpu.memory_space<vmem>>, vector<8x32xf32>
    %c0_13 = arith.constant 0 : index
    %c0_14 = arith.constant 0 : index
    %26 = vector.load %arg13[%c0_13, %c0_14] : memref<8x32xf32, #tpu.memory_space<vmem>>, vector<8x32xf32>
    %c0_15 = arith.constant 0 : index
    %c0_16 = arith.constant 0 : index
    %27 = vector.load %arg14[%c0_15, %c0_16] : memref<8x32xf32, #tpu.memory_space<vmem>>, vector<8x32xf32>
    %c0_17 = arith.constant 0 : index
    %c0_18 = arith.constant 0 : index
    %28 = vector.load %arg15[%c0_17, %c0_18] : memref<8x32xf32, #tpu.memory_space<vmem>>, vector<8x32xf32>
    %c0_19 = arith.constant 0 : index
    %c0_20 = arith.constant 0 : index
    %29 = vector.load %arg16[%c0_19, %c0_20] : memref<8x32xf32, #tpu.memory_space<vmem>>, vector<8x32xf32>
    %c0_21 = arith.constant 0 : index
    %c0_22 = arith.constant 0 : index
    %30 = vector.load %arg17[%c0_21, %c0_22] : memref<8x32xf32, #tpu.memory_space<vmem>>, vector<8x32xf32>
    %c0_i32 = arith.constant 0 : i32
    %c8_i32 = arith.constant 8 : i32
    %31 = arith.muli %c0_i32, %c8_i32 : i32
    %32 = arith.index_cast %31 : i32 to index
    %c0_23 = arith.constant 0 : index
    %33 = vector.load %arg25[%32, %c0_23] : memref<64x128xf32, #tpu.memory_space<vmem>>, vector<8x128xf32>
    %34 = arith.truncf %25 : vector<8x32xf32> to vector<8x32xbf16>
    %c0_24 = arith.constant 0 : index
    %c0_25 = arith.constant 0 : index
    %35 = vector.load %arg2[%c0_24, %c0_25] : memref<32x128xbf16, #tpu.memory_space<vmem>>, vector<32x128xbf16>
    %cst_26 = arith.constant dense<0.000000e+00> : vector<8x128xf32>
    %36 = tpu.matmul %34, %35, %cst_26 {dimension_numbers = #tpu.dot_dimension_numbers<[1], [0], [0], [1], [0, 0, 1, 1], [], []>} : vector<8x32xbf16>, vector<32x128xbf16>, vector<8x128xf32> -> vector<8x128xf32>
    %37 = arith.addf %33, %36 : vector<8x128xf32>
    %38 = math.tanh %37 : vector<8x128xf32>
    %39 = arith.negf %37 : vector<8x128xf32>
    %40 = math.exp %39 : vector<8x128xf32>
    %cst_27 = arith.constant 1.000000e+00 : f32
    %41 = vector.broadcast %cst_27 : f32 to vector<8x128xf32>
    %42 = arith.addf %41, %40 : vector<8x128xf32>
    %43 = arith.divf %41, %42 : vector<8x128xf32>
    %44 = arith.select %12, %38, %43 : vector<8x128xi1>, vector<8x128xf32>
    %45 = vector.extract_strided_slice %44 {offsets = [0, 0], sizes = [8, 32], strides = [1, 1]} : vector<8x128xf32> to vector<8x32xf32>
    %46 = vector.extract_strided_slice %44 {offsets = [0, 32], sizes = [8, 32], strides = [1, 1]} : vector<8x128xf32> to vector<8x32xf32>
    %47 = vector.extract_strided_slice %44 {offsets = [0, 64], sizes = [8, 32], strides = [1, 1]} : vector<8x128xf32> to vector<8x32xf32>
    %48 = vector.extract_strided_slice %44 {offsets = [0, 96], sizes = [8, 32], strides = [1, 1]} : vector<8x128xf32> to vector<8x32xf32>
    %49 = arith.mulf %46, %26 : vector<8x32xf32>
    %50 = arith.mulf %45, %47 : vector<8x32xf32>
    %51 = arith.addf %49, %50 : vector<8x32xf32>
    %52 = math.tanh %51 : vector<8x32xf32>
    %53 = arith.mulf %48, %52 : vector<8x32xf32>
    %54 = arith.truncf %53 : vector<8x32xf32> to vector<8x32xbf16>
    %c0_28 = arith.constant 0 : index
    %c0_29 = arith.constant 0 : index
    %55 = vector.load %arg4[%c0_28, %c0_29] : memref<32x128xbf16, #tpu.memory_space<vmem>>, vector<32x128xbf16>
    %cst_30 = arith.constant dense<0.000000e+00> : vector<8x128xf32>
    %56 = tpu.matmul %54, %55, %cst_30 {dimension_numbers = #tpu.dot_dimension_numbers<[1], [0], [0], [1], [0, 0, 1, 1], [], []>} : vector<8x32xbf16>, vector<32x128xbf16>, vector<8x128xf32> -> vector<8x128xf32>
    %57 = arith.truncf %27 : vector<8x32xf32> to vector<8x32xbf16>
    %c0_31 = arith.constant 0 : index
    %c0_32 = arith.constant 0 : index
    %58 = vector.load %arg5[%c0_31, %c0_32] : memref<32x128xbf16, #tpu.memory_space<vmem>>, vector<32x128xbf16>
    %cst_33 = arith.constant dense<0.000000e+00> : vector<8x128xf32>
    %59 = tpu.matmul %57, %58, %cst_33 {dimension_numbers = #tpu.dot_dimension_numbers<[1], [0], [0], [1], [0, 0, 1, 1], [], []>} : vector<8x32xbf16>, vector<32x128xbf16>, vector<8x128xf32> -> vector<8x128xf32>
    %60 = arith.addf %56, %59 : vector<8x128xf32>
    %c0_34 = arith.constant 0 : index
    %c0_35 = arith.constant 0 : index
    %61 = vector.load %arg6[%c0_34, %c0_35] : memref<1x128xf32, #tpu.memory_space<vmem>>, vector<1x128xf32>
    %62 = vector.broadcast %61 : vector<1x128xf32> to vector<8x128xf32>
    %63 = arith.addf %60, %62 : vector<8x128xf32>
    %64 = math.tanh %63 : vector<8x128xf32>
    %65 = arith.negf %63 : vector<8x128xf32>
    %66 = math.exp %65 : vector<8x128xf32>
    %cst_36 = arith.constant 1.000000e+00 : f32
    %67 = vector.broadcast %cst_36 : f32 to vector<8x128xf32>
    %68 = arith.addf %67, %66 : vector<8x128xf32>
    %69 = arith.divf %67, %68 : vector<8x128xf32>
    %70 = arith.select %18, %64, %69 : vector<8x128xi1>, vector<8x128xf32>
    %71 = vector.extract_strided_slice %70 {offsets = [0, 0], sizes = [8, 32], strides = [1, 1]} : vector<8x128xf32> to vector<8x32xf32>
    %72 = vector.extract_strided_slice %70 {offsets = [0, 32], sizes = [8, 32], strides = [1, 1]} : vector<8x128xf32> to vector<8x32xf32>
    %73 = vector.extract_strided_slice %70 {offsets = [0, 64], sizes = [8, 32], strides = [1, 1]} : vector<8x128xf32> to vector<8x32xf32>
    %74 = vector.extract_strided_slice %70 {offsets = [0, 96], sizes = [8, 32], strides = [1, 1]} : vector<8x128xf32> to vector<8x32xf32>
    %75 = arith.mulf %72, %28 : vector<8x32xf32>
    %76 = arith.mulf %71, %73 : vector<8x32xf32>
    %77 = arith.addf %75, %76 : vector<8x32xf32>
    %78 = math.tanh %77 : vector<8x32xf32>
    %79 = arith.mulf %74, %78 : vector<8x32xf32>
    %80 = arith.truncf %79 : vector<8x32xf32> to vector<8x32xbf16>
    %c0_37 = arith.constant 0 : index
    %c0_38 = arith.constant 0 : index
    %81 = vector.load %arg7[%c0_37, %c0_38] : memref<32x128xbf16, #tpu.memory_space<vmem>>, vector<32x128xbf16>
    %cst_39 = arith.constant dense<0.000000e+00> : vector<8x128xf32>
    %82 = tpu.matmul %80, %81, %cst_39 {dimension_numbers = #tpu.dot_dimension_numbers<[1], [0], [0], [1], [0, 0, 1, 1], [], []>} : vector<8x32xbf16>, vector<32x128xbf16>, vector<8x128xf32> -> vector<8x128xf32>
    %83 = arith.truncf %29 : vector<8x32xf32> to vector<8x32xbf16>
    %c0_40 = arith.constant 0 : index
    %c0_41 = arith.constant 0 : index
    %84 = vector.load %arg8[%c0_40, %c0_41] : memref<32x128xbf16, #tpu.memory_space<vmem>>, vector<32x128xbf16>
    %cst_42 = arith.constant dense<0.000000e+00> : vector<8x128xf32>
    %85 = tpu.matmul %83, %84, %cst_42 {dimension_numbers = #tpu.dot_dimension_numbers<[1], [0], [0], [1], [0, 0, 1, 1], [], []>} : vector<8x32xbf16>, vector<32x128xbf16>, vector<8x128xf32> -> vector<8x128xf32>
    %86 = arith.addf %82, %85 : vector<8x128xf32>
    %c0_43 = arith.constant 0 : index
    %c0_44 = arith.constant 0 : index
    %87 = vector.load %arg9[%c0_43, %c0_44] : memref<1x128xf32, #tpu.memory_space<vmem>>, vector<1x128xf32>
    %88 = vector.broadcast %87 : vector<1x128xf32> to vector<8x128xf32>
    %89 = arith.addf %86, %88 : vector<8x128xf32>
    %90 = math.tanh %89 : vector<8x128xf32>
    %91 = arith.negf %89 : vector<8x128xf32>
    %92 = math.exp %91 : vector<8x128xf32>
    %cst_45 = arith.constant 1.000000e+00 : f32
    %93 = vector.broadcast %cst_45 : f32 to vector<8x128xf32>
    %94 = arith.addf %93, %92 : vector<8x128xf32>
    %95 = arith.divf %93, %94 : vector<8x128xf32>
    %96 = arith.select %24, %90, %95 : vector<8x128xi1>, vector<8x128xf32>
    %97 = vector.extract_strided_slice %96 {offsets = [0, 0], sizes = [8, 32], strides = [1, 1]} : vector<8x128xf32> to vector<8x32xf32>
    %98 = vector.extract_strided_slice %96 {offsets = [0, 32], sizes = [8, 32], strides = [1, 1]} : vector<8x128xf32> to vector<8x32xf32>
    %99 = vector.extract_strided_slice %96 {offsets = [0, 64], sizes = [8, 32], strides = [1, 1]} : vector<8x128xf32> to vector<8x32xf32>
    %100 = vector.extract_strided_slice %96 {offsets = [0, 96], sizes = [8, 32], strides = [1, 1]} : vector<8x128xf32> to vector<8x32xf32>
    %101 = arith.mulf %98, %30 : vector<8x32xf32>
    %102 = arith.mulf %97, %99 : vector<8x32xf32>
    %103 = arith.addf %101, %102 : vector<8x32xf32>
    %104 = math.tanh %103 : vector<8x32xf32>
    %105 = arith.mulf %100, %104 : vector<8x32xf32>
    %106 = arith.index_cast %31 : i32 to index
    %c0_46 = arith.constant 0 : index
    %107 = vector.load %arg26[%106, %c0_46] : memref<64x32xf32, #tpu.memory_space<vmem>>, vector<8x32xf32>
    tpu.vector_store %arg26[%106, %c0_46], %105 {strides = array<i32>} : memref<64x32xf32, #tpu.memory_space<vmem>>, vector<8x32xf32>,
    %c1_i32 = arith.constant 1 : i32
    %c8_i32_47 = arith.constant 8 : i32
    %108 = arith.muli %c1_i32, %c8_i32_47 : i32
    %109 = arith.index_cast %108 : i32 to index
    %c0_48 = arith.constant 0 : index
    %110 = vector.load %arg25[%109, %c0_48] : memref<64x128xf32, #tpu.memory_space<vmem>>, vector<8x128xf32>
    %111 = arith.truncf %53 : vector<8x32xf32> to vector<8x32xbf16>
    %c0_49 = arith.constant 0 : index
    %c0_50 = arith.constant 0 : index
    %112 = vector.load %arg2[%c0_49, %c0_50] : memref<32x128xbf16, #tpu.memory_space<vmem>>, vector<32x128xbf16>
    %cst_51 = arith.constant dense<0.000000e+00> : vector<8x128xf32>
    %113 = tpu.matmul %111, %112, %cst_51 {dimension_numbers = #tpu.dot_dimension_numbers<[1], [0], [0], [1], [0, 0, 1, 1], [], []>} : vector<8x32xbf16>, vector<32x128xbf16>, vector<8x128xf32> -> vector<8x128xf32>
    %114 = arith.addf %110, %113 : vector<8x128xf32>
    %115 = math.tanh %114 : vector<8x128xf32>
    %116 = arith.negf %114 : vector<8x128xf32>
    %117 = math.exp %116 : vector<8x128xf32>
    %cst_52 = arith.constant 1.000000e+00 : f32
    %118 = vector.broadcast %cst_52 : f32 to vector<8x128xf32>
    %119 = arith.addf %118, %117 : vector<8x128xf32>
    %120 = arith.divf %118, %119 : vector<8x128xf32>
    %121 = arith.select %12, %115, %120 : vector<8x128xi1>, vector<8x128xf32>
    %122 = vector.extract_strided_slice %121 {offsets = [0, 0], sizes = [8, 32], strides = [1, 1]} : vector<8x128xf32> to vector<8x32xf32>
    %123 = vector.extract_strided_slice %121 {offsets = [0, 32], sizes = [8, 32], strides = [1, 1]} : vector<8x128xf32> to vector<8x32xf32>
    %124 = vector.extract_strided_slice %121 {offsets = [0, 64], sizes = [8, 32], strides = [1, 1]} : vector<8x128xf32> to vector<8x32xf32>
    %125 = vector.extract_strided_slice %121 {offsets = [0, 96], sizes = [8, 32], strides = [1, 1]} : vector<8x128xf32> to vector<8x32xf32>
    %126 = arith.mulf %123, %51 : vector<8x32xf32>
    %127 = arith.mulf %122, %124 : vector<8x32xf32>
    %128 = arith.addf %126, %127 : vector<8x32xf32>
    %129 = math.tanh %128 : vector<8x32xf32>
    %130 = arith.mulf %125, %129 : vector<8x32xf32>
    %131 = arith.truncf %130 : vector<8x32xf32> to vector<8x32xbf16>
    %c0_53 = arith.constant 0 : index
    %c0_54 = arith.constant 0 : index
    %132 = vector.load %arg4[%c0_53, %c0_54] : memref<32x128xbf16, #tpu.memory_space<vmem>>, vector<32x128xbf16>
    %cst_55 = arith.constant dense<0.000000e+00> : vector<8x128xf32>
    %133 = tpu.matmul %131, %132, %cst_55 {dimension_numbers = #tpu.dot_dimension_numbers<[1], [0], [0], [1], [0, 0, 1, 1], [], []>} : vector<8x32xbf16>, vector<32x128xbf16>, vector<8x128xf32> -> vector<8x128xf32>
    %134 = arith.truncf %79 : vector<8x32xf32> to vector<8x32xbf16>
    %c0_56 = arith.constant 0 : index
    %c0_57 = arith.constant 0 : index
    %135 = vector.load %arg5[%c0_56, %c0_57] : memref<32x128xbf16, #tpu.memory_space<vmem>>, vector<32x128xbf16>
    %cst_58 = arith.constant dense<0.000000e+00> : vector<8x128xf32>
    %136 = tpu.matmul %134, %135, %cst_58 {dimension_numbers = #tpu.dot_dimension_numbers<[1], [0], [0], [1], [0, 0, 1, 1], [], []>} : vector<8x32xbf16>, vector<32x128xbf16>, vector<8x128xf32> -> vector<8x128xf32>
    %137 = arith.addf %133, %136 : vector<8x128xf32>
    %c0_59 = arith.constant 0 : index
    %c0_60 = arith.constant 0 : index
    %138 = vector.load %arg6[%c0_59, %c0_60] : memref<1x128xf32, #tpu.memory_space<vmem>>, vector<1x128xf32>
    %139 = vector.broadcast %138 : vector<1x128xf32> to vector<8x128xf32>
    %140 = arith.addf %137, %139 : vector<8x128xf32>
    %141 = math.tanh %140 : vector<8x128xf32>
    %142 = arith.negf %140 : vector<8x128xf32>
    %143 = math.exp %142 : vector<8x128xf32>
    %cst_61 = arith.constant 1.000000e+00 : f32
    %144 = vector.broadcast %cst_61 : f32 to vector<8x128xf32>
    %145 = arith.addf %144, %143 : vector<8x128xf32>
    %146 = arith.divf %144, %145 : vector<8x128xf32>
    %147 = arith.select %18, %141, %146 : vector<8x128xi1>, vector<8x128xf32>
    %148 = vector.extract_strided_slice %147 {offsets = [0, 0], sizes = [8, 32], strides = [1, 1]} : vector<8x128xf32> to vector<8x32xf32>
    %149 = vector.extract_strided_slice %147 {offsets = [0, 32], sizes = [8, 32], strides = [1, 1]} : vector<8x128xf32> to vector<8x32xf32>
    %150 = vector.extract_strided_slice %147 {offsets = [0, 64], sizes = [8, 32], strides = [1, 1]} : vector<8x128xf32> to vector<8x32xf32>
    %151 = vector.extract_strided_slice %147 {offsets = [0, 96], sizes = [8, 32], strides = [1, 1]} : vector<8x128xf32> to vector<8x32xf32>
    %152 = arith.mulf %149, %77 : vector<8x32xf32>
    %153 = arith.mulf %148, %150 : vector<8x32xf32>
    %154 = arith.addf %152, %153 : vector<8x32xf32>
    %155 = math.tanh %154 : vector<8x32xf32>
    %156 = arith.mulf %151, %155 : vector<8x32xf32>
    %157 = arith.truncf %156 : vector<8x32xf32> to vector<8x32xbf16>
    %c0_62 = arith.constant 0 : index
    %c0_63 = arith.constant 0 : index
    %158 = vector.load %arg7[%c0_62, %c0_63] : memref<32x128xbf16, #tpu.memory_space<vmem>>, vector<32x128xbf16>
    %cst_64 = arith.constant dense<0.000000e+00> : vector<8x128xf32>
    %159 = tpu.matmul %157, %158, %cst_64 {dimension_numbers = #tpu.dot_dimension_numbers<[1], [0], [0], [1], [0, 0, 1, 1], [], []>} : vector<8x32xbf16>, vector<32x128xbf16>, vector<8x128xf32> -> vector<8x128xf32>
    %160 = arith.truncf %105 : vector<8x32xf32> to vector<8x32xbf16>
    %c0_65 = arith.constant 0 : index
    %c0_66 = arith.constant 0 : index
    %161 = vector.load %arg8[%c0_65, %c0_66] : memref<32x128xbf16, #tpu.memory_space<vmem>>, vector<32x128xbf16>
    %cst_67 = arith.constant dense<0.000000e+00> : vector<8x128xf32>
    %162 = tpu.matmul %160, %161, %cst_67 {dimension_numbers = #tpu.dot_dimension_numbers<[1], [0], [0], [1], [0, 0, 1, 1], [], []>} : vector<8x32xbf16>, vector<32x128xbf16>, vector<8x128xf32> -> vector<8x128xf32>
    %163 = arith.addf %159, %162 : vector<8x128xf32>
    %c0_68 = arith.constant 0 : index
    %c0_69 = arith.constant 0 : index
    %164 = vector.load %arg9[%c0_68, %c0_69] : memref<1x128xf32, #tpu.memory_space<vmem>>, vector<1x128xf32>
    %165 = vector.broadcast %164 : vector<1x128xf32> to vector<8x128xf32>
    %166 = arith.addf %163, %165 : vector<8x128xf32>
    %167 = math.tanh %166 : vector<8x128xf32>
    %168 = arith.negf %166 : vector<8x128xf32>
    %169 = math.exp %168 : vector<8x128xf32>
    %cst_70 = arith.constant 1.000000e+00 : f32
    %170 = vector.broadcast %cst_70 : f32 to vector<8x128xf32>
    %171 = arith.addf %170, %169 : vector<8x128xf32>
    %172 = arith.divf %170, %171 : vector<8x128xf32>
    %173 = arith.select %24, %167, %172 : vector<8x128xi1>, vector<8x128xf32>
    %174 = vector.extract_strided_slice %173 {offsets = [0, 0], sizes = [8, 32], strides = [1, 1]} : vector<8x128xf32> to vector<8x32xf32>
    %175 = vector.extract_strided_slice %173 {offsets = [0, 32], sizes = [8, 32], strides = [1, 1]} : vector<8x128xf32> to vector<8x32xf32>
    %176 = vector.extract_strided_slice %173 {offsets = [0, 64], sizes = [8, 32], strides = [1, 1]} : vector<8x128xf32> to vector<8x32xf32>
    %177 = vector.extract_strided_slice %173 {offsets = [0, 96], sizes = [8, 32], strides = [1, 1]} : vector<8x128xf32> to vector<8x32xf32>
    %178 = arith.mulf %175, %103 : vector<8x32xf32>
    %179 = arith.mulf %174, %176 : vector<8x32xf32>
    %180 = arith.addf %178, %179 : vector<8x32xf32>
    %181 = math.tanh %180 : vector<8x32xf32>
    %182 = arith.mulf %177, %181 : vector<8x32xf32>
    %183 = arith.index_cast %108 : i32 to index
    %c0_71 = arith.constant 0 : index
    %184 = vector.load %arg26[%183, %c0_71] : memref<64x32xf32, #tpu.memory_space<vmem>>, vector<8x32xf32>
    tpu.vector_store %arg26[%183, %c0_71], %182 {strides = array<i32>} : memref<64x32xf32, #tpu.memory_space<vmem>>, vector<8x32xf32>,
    %c2_i32 = arith.constant 2 : i32
    %c8_i32_72 = arith.constant 8 : i32
    %185 = arith.muli %c2_i32, %c8_i32_72 : i32
    %186 = arith.index_cast %185 : i32 to index
    %c0_73 = arith.constant 0 : index
    %187 = vector.load %arg25[%186, %c0_73] : memref<64x128xf32, #tpu.memory_space<vmem>>, vector<8x128xf32>
    %188 = arith.truncf %130 : vector<8x32xf32> to vector<8x32xbf16>
    %c0_74 = arith.constant 0 : index
    %c0_75 = arith.constant 0 : index
    %189 = vector.load %arg2[%c0_74, %c0_75] : memref<32x128xbf16, #tpu.memory_space<vmem>>, vector<32x128xbf16>
    %cst_76 = arith.constant dense<0.000000e+00> : vector<8x128xf32>
    %190 = tpu.matmul %188, %189, %cst_76 {dimension_numbers = #tpu.dot_dimension_numbers<[1], [0], [0], [1], [0, 0, 1, 1], [], []>} : vector<8x32xbf16>, vector<32x128xbf16>, vector<8x128xf32> -> vector<8x128xf32>
    %191 = arith.addf %187, %190 : vector<8x128xf32>
    %192 = math.tanh %191 : vector<8x128xf32>
    %193 = arith.negf %191 : vector<8x128xf32>
    %194 = math.exp %193 : vector<8x128xf32>
    %cst_77 = arith.constant 1.000000e+00 : f32
    %195 = vector.broadcast %cst_77 : f32 to vector<8x128xf32>
    %196 = arith.addf %195, %194 : vector<8x128xf32>
    %197 = arith.divf %195, %196 : vector<8x128xf32>
    %198 = arith.select %12, %192, %197 : vector<8x128xi1>, vector<8x128xf32>
    %199 = vector.extract_strided_slice %198 {offsets = [0, 0], sizes = [8, 32], strides = [1, 1]} : vector<8x128xf32> to vector<8x32xf32>
    %200 = vector.extract_strided_slice %198 {offsets = [0, 32], sizes = [8, 32], strides = [1, 1]} : vector<8x128xf32> to vector<8x32xf32>
    %201 = vector.extract_strided_slice %198 {offsets = [0, 64], sizes = [8, 32], strides = [1, 1]} : vector<8x128xf32> to vector<8x32xf32>
    %202 = vector.extract_strided_slice %198 {offsets = [0, 96], sizes = [8, 32], strides = [1, 1]} : vector<8x128xf32> to vector<8x32xf32>
    %203 = arith.mulf %200, %128 : vector<8x32xf32>
    %204 = arith.mulf %199, %201 : vector<8x32xf32>
    %205 = arith.addf %203, %204 : vector<8x32xf32>
    %206 = math.tanh %205 : vector<8x32xf32>
    %207 = arith.mulf %202, %206 : vector<8x32xf32>
    %208 = arith.truncf %207 : vector<8x32xf32> to vector<8x32xbf16>
    %c0_78 = arith.constant 0 : index
    %c0_79 = arith.constant 0 : index
    %209 = vector.load %arg4[%c0_78, %c0_79] : memref<32x128xbf16, #tpu.memory_space<vmem>>, vector<32x128xbf16>
    %cst_80 = arith.constant dense<0.000000e+00> : vector<8x128xf32>
    %210 = tpu.matmul %208, %209, %cst_80 {dimension_numbers = #tpu.dot_dimension_numbers<[1], [0], [0], [1], [0, 0, 1, 1], [], []>} : vector<8x32xbf16>, vector<32x128xbf16>, vector<8x128xf32> -> vector<8x128xf32>
    %211 = arith.truncf %156 : vector<8x32xf32> to vector<8x32xbf16>
    %c0_81 = arith.constant 0 : index
    %c0_82 = arith.constant 0 : index
    %212 = vector.load %arg5[%c0_81, %c0_82] : memref<32x128xbf16, #tpu.memory_space<vmem>>, vector<32x128xbf16>
    %cst_83 = arith.constant dense<0.000000e+00> : vector<8x128xf32>
    %213 = tpu.matmul %211, %212, %cst_83 {dimension_numbers = #tpu.dot_dimension_numbers<[1], [0], [0], [1], [0, 0, 1, 1], [], []>} : vector<8x32xbf16>, vector<32x128xbf16>, vector<8x128xf32> -> vector<8x128xf32>
    %214 = arith.addf %210, %213 : vector<8x128xf32>
    %c0_84 = arith.constant 0 : index
    %c0_85 = arith.constant 0 : index
    %215 = vector.load %arg6[%c0_84, %c0_85] : memref<1x128xf32, #tpu.memory_space<vmem>>, vector<1x128xf32>
    %216 = vector.broadcast %215 : vector<1x128xf32> to vector<8x128xf32>
    %217 = arith.addf %214, %216 : vector<8x128xf32>
    %218 = math.tanh %217 : vector<8x128xf32>
    %219 = arith.negf %217 : vector<8x128xf32>
    %220 = math.exp %219 : vector<8x128xf32>
    %cst_86 = arith.constant 1.000000e+00 : f32
    %221 = vector.broadcast %cst_86 : f32 to vector<8x128xf32>
    %222 = arith.addf %221, %220 : vector<8x128xf32>
    %223 = arith.divf %221, %222 : vector<8x128xf32>
    %224 = arith.select %18, %218, %223 : vector<8x128xi1>, vector<8x128xf32>
    %225 = vector.extract_strided_slice %224 {offsets = [0, 0], sizes = [8, 32], strides = [1, 1]} : vector<8x128xf32> to vector<8x32xf32>
    %226 = vector.extract_strided_slice %224 {offsets = [0, 32], sizes = [8, 32], strides = [1, 1]} : vector<8x128xf32> to vector<8x32xf32>
    %227 = vector.extract_strided_slice %224 {offsets = [0, 64], sizes = [8, 32], strides = [1, 1]} : vector<8x128xf32> to vector<8x32xf32>
    %228 = vector.extract_strided_slice %224 {offsets = [0, 96], sizes = [8, 32], strides = [1, 1]} : vector<8x128xf32> to vector<8x32xf32>
    %229 = arith.mulf %226, %154 : vector<8x32xf32>
    %230 = arith.mulf %225, %227 : vector<8x32xf32>
    %231 = arith.addf %229, %230 : vector<8x32xf32>
    %232 = math.tanh %231 : vector<8x32xf32>
    %233 = arith.mulf %228, %232 : vector<8x32xf32>
    %234 = arith.truncf %233 : vector<8x32xf32> to vector<8x32xbf16>
    %c0_87 = arith.constant 0 : index
    %c0_88 = arith.constant 0 : index
    %235 = vector.load %arg7[%c0_87, %c0_88] : memref<32x128xbf16, #tpu.memory_space<vmem>>, vector<32x128xbf16>
    %cst_89 = arith.constant dense<0.000000e+00> : vector<8x128xf32>
    %236 = tpu.matmul %234, %235, %cst_89 {dimension_numbers = #tpu.dot_dimension_numbers<[1], [0], [0], [1], [0, 0, 1, 1], [], []>} : vector<8x32xbf16>, vector<32x128xbf16>, vector<8x128xf32> -> vector<8x128xf32>
    %237 = arith.truncf %182 : vector<8x32xf32> to vector<8x32xbf16>
    %c0_90 = arith.constant 0 : index
    %c0_91 = arith.constant 0 : index
    %238 = vector.load %arg8[%c0_90, %c0_91] : memref<32x128xbf16, #tpu.memory_space<vmem>>, vector<32x128xbf16>
    %cst_92 = arith.constant dense<0.000000e+00> : vector<8x128xf32>
    %239 = tpu.matmul %237, %238, %cst_92 {dimension_numbers = #tpu.dot_dimension_numbers<[1], [0], [0], [1], [0, 0, 1, 1], [], []>} : vector<8x32xbf16>, vector<32x128xbf16>, vector<8x128xf32> -> vector<8x128xf32>
    %240 = arith.addf %236, %239 : vector<8x128xf32>
    %c0_93 = arith.constant 0 : index
    %c0_94 = arith.constant 0 : index
    %241 = vector.load %arg9[%c0_93, %c0_94] : memref<1x128xf32, #tpu.memory_space<vmem>>, vector<1x128xf32>
    %242 = vector.broadcast %241 : vector<1x128xf32> to vector<8x128xf32>
    %243 = arith.addf %240, %242 : vector<8x128xf32>
    %244 = math.tanh %243 : vector<8x128xf32>
    %245 = arith.negf %243 : vector<8x128xf32>
    %246 = math.exp %245 : vector<8x128xf32>
    %cst_95 = arith.constant 1.000000e+00 : f32
    %247 = vector.broadcast %cst_95 : f32 to vector<8x128xf32>
    %248 = arith.addf %247, %246 : vector<8x128xf32>
    %249 = arith.divf %247, %248 : vector<8x128xf32>
    %250 = arith.select %24, %244, %249 : vector<8x128xi1>, vector<8x128xf32>
    %251 = vector.extract_strided_slice %250 {offsets = [0, 0], sizes = [8, 32], strides = [1, 1]} : vector<8x128xf32> to vector<8x32xf32>
    %252 = vector.extract_strided_slice %250 {offsets = [0, 32], sizes = [8, 32], strides = [1, 1]} : vector<8x128xf32> to vector<8x32xf32>
    %253 = vector.extract_strided_slice %250 {offsets = [0, 64], sizes = [8, 32], strides = [1, 1]} : vector<8x128xf32> to vector<8x32xf32>
    %254 = vector.extract_strided_slice %250 {offsets = [0, 96], sizes = [8, 32], strides = [1, 1]} : vector<8x128xf32> to vector<8x32xf32>
    %255 = arith.mulf %252, %180 : vector<8x32xf32>
    %256 = arith.mulf %251, %253 : vector<8x32xf32>
    %257 = arith.addf %255, %256 : vector<8x32xf32>
    %258 = math.tanh %257 : vector<8x32xf32>
    %259 = arith.mulf %254, %258 : vector<8x32xf32>
    %260 = arith.index_cast %185 : i32 to index
    %c0_96 = arith.constant 0 : index
    %261 = vector.load %arg26[%260, %c0_96] : memref<64x32xf32, #tpu.memory_space<vmem>>, vector<8x32xf32>
    tpu.vector_store %arg26[%260, %c0_96], %259 {strides = array<i32>} : memref<64x32xf32, #tpu.memory_space<vmem>>, vector<8x32xf32>,
    %c3_i32 = arith.constant 3 : i32
    %c8_i32_97 = arith.constant 8 : i32
    %262 = arith.muli %c3_i32, %c8_i32_97 : i32
    %263 = arith.index_cast %262 : i32 to index
    %c0_98 = arith.constant 0 : index
    %264 = vector.load %arg25[%263, %c0_98] : memref<64x128xf32, #tpu.memory_space<vmem>>, vector<8x128xf32>
    %265 = arith.truncf %207 : vector<8x32xf32> to vector<8x32xbf16>
    %c0_99 = arith.constant 0 : index
    %c0_100 = arith.constant 0 : index
    %266 = vector.load %arg2[%c0_99, %c0_100] : memref<32x128xbf16, #tpu.memory_space<vmem>>, vector<32x128xbf16>
    %cst_101 = arith.constant dense<0.000000e+00> : vector<8x128xf32>
    %267 = tpu.matmul %265, %266, %cst_101 {dimension_numbers = #tpu.dot_dimension_numbers<[1], [0], [0], [1], [0, 0, 1, 1], [], []>} : vector<8x32xbf16>, vector<32x128xbf16>, vector<8x128xf32> -> vector<8x128xf32>
    %268 = arith.addf %264, %267 : vector<8x128xf32>
    %269 = math.tanh %268 : vector<8x128xf32>
    %270 = arith.negf %268 : vector<8x128xf32>
    %271 = math.exp %270 : vector<8x128xf32>
    %cst_102 = arith.constant 1.000000e+00 : f32
    %272 = vector.broadcast %cst_102 : f32 to vector<8x128xf32>
    %273 = arith.addf %272, %271 : vector<8x128xf32>
    %274 = arith.divf %272, %273 : vector<8x128xf32>
    %275 = arith.select %12, %269, %274 : vector<8x128xi1>, vector<8x128xf32>
    %276 = vector.extract_strided_slice %275 {offsets = [0, 0], sizes = [8, 32], strides = [1, 1]} : vector<8x128xf32> to vector<8x32xf32>
    %277 = vector.extract_strided_slice %275 {offsets = [0, 32], sizes = [8, 32], strides = [1, 1]} : vector<8x128xf32> to vector<8x32xf32>
    %278 = vector.extract_strided_slice %275 {offsets = [0, 64], sizes = [8, 32], strides = [1, 1]} : vector<8x128xf32> to vector<8x32xf32>
    %279 = vector.extract_strided_slice %275 {offsets = [0, 96], sizes = [8, 32], strides = [1, 1]} : vector<8x128xf32> to vector<8x32xf32>
    %280 = arith.mulf %277, %205 : vector<8x32xf32>
    %281 = arith.mulf %276, %278 : vector<8x32xf32>
    %282 = arith.addf %280, %281 : vector<8x32xf32>
    %283 = math.tanh %282 : vector<8x32xf32>
    %284 = arith.mulf %279, %283 : vector<8x32xf32>
    %285 = arith.truncf %284 : vector<8x32xf32> to vector<8x32xbf16>
    %c0_103 = arith.constant 0 : index
    %c0_104 = arith.constant 0 : index
    %286 = vector.load %arg4[%c0_103, %c0_104] : memref<32x128xbf16, #tpu.memory_space<vmem>>, vector<32x128xbf16>
    %cst_105 = arith.constant dense<0.000000e+00> : vector<8x128xf32>
    %287 = tpu.matmul %285, %286, %cst_105 {dimension_numbers = #tpu.dot_dimension_numbers<[1], [0], [0], [1], [0, 0, 1, 1], [], []>} : vector<8x32xbf16>, vector<32x128xbf16>, vector<8x128xf32> -> vector<8x128xf32>
    %288 = arith.truncf %233 : vector<8x32xf32> to vector<8x32xbf16>
    %c0_106 = arith.constant 0 : index
    %c0_107 = arith.constant 0 : index
    %289 = vector.load %arg5[%c0_106, %c0_107] : memref<32x128xbf16, #tpu.memory_space<vmem>>, vector<32x128xbf16>
    %cst_108 = arith.constant dense<0.000000e+00> : vector<8x128xf32>
    %290 = tpu.matmul %288, %289, %cst_108 {dimension_numbers = #tpu.dot_dimension_numbers<[1], [0], [0], [1], [0, 0, 1, 1], [], []>} : vector<8x32xbf16>, vector<32x128xbf16>, vector<8x128xf32> -> vector<8x128xf32>
    %291 = arith.addf %287, %290 : vector<8x128xf32>
    %c0_109 = arith.constant 0 : index
    %c0_110 = arith.constant 0 : index
    %292 = vector.load %arg6[%c0_109, %c0_110] : memref<1x128xf32, #tpu.memory_space<vmem>>, vector<1x128xf32>
    %293 = vector.broadcast %292 : vector<1x128xf32> to vector<8x128xf32>
    %294 = arith.addf %291, %293 : vector<8x128xf32>
    %295 = math.tanh %294 : vector<8x128xf32>
    %296 = arith.negf %294 : vector<8x128xf32>
    %297 = math.exp %296 : vector<8x128xf32>
    %cst_111 = arith.constant 1.000000e+00 : f32
    %298 = vector.broadcast %cst_111 : f32 to vector<8x128xf32>
    %299 = arith.addf %298, %297 : vector<8x128xf32>
    %300 = arith.divf %298, %299 : vector<8x128xf32>
    %301 = arith.select %18, %295, %300 : vector<8x128xi1>, vector<8x128xf32>
    %302 = vector.extract_strided_slice %301 {offsets = [0, 0], sizes = [8, 32], strides = [1, 1]} : vector<8x128xf32> to vector<8x32xf32>
    %303 = vector.extract_strided_slice %301 {offsets = [0, 32], sizes = [8, 32], strides = [1, 1]} : vector<8x128xf32> to vector<8x32xf32>
    %304 = vector.extract_strided_slice %301 {offsets = [0, 64], sizes = [8, 32], strides = [1, 1]} : vector<8x128xf32> to vector<8x32xf32>
    %305 = vector.extract_strided_slice %301 {offsets = [0, 96], sizes = [8, 32], strides = [1, 1]} : vector<8x128xf32> to vector<8x32xf32>
    %306 = arith.mulf %303, %231 : vector<8x32xf32>
    %307 = arith.mulf %302, %304 : vector<8x32xf32>
    %308 = arith.addf %306, %307 : vector<8x32xf32>
    %309 = math.tanh %308 : vector<8x32xf32>
    %310 = arith.mulf %305, %309 : vector<8x32xf32>
    %311 = arith.truncf %310 : vector<8x32xf32> to vector<8x32xbf16>
    %c0_112 = arith.constant 0 : index
    %c0_113 = arith.constant 0 : index
    %312 = vector.load %arg7[%c0_112, %c0_113] : memref<32x128xbf16, #tpu.memory_space<vmem>>, vector<32x128xbf16>
    %cst_114 = arith.constant dense<0.000000e+00> : vector<8x128xf32>
    %313 = tpu.matmul %311, %312, %cst_114 {dimension_numbers = #tpu.dot_dimension_numbers<[1], [0], [0], [1], [0, 0, 1, 1], [], []>} : vector<8x32xbf16>, vector<32x128xbf16>, vector<8x128xf32> -> vector<8x128xf32>
    %314 = arith.truncf %259 : vector<8x32xf32> to vector<8x32xbf16>
    %c0_115 = arith.constant 0 : index
    %c0_116 = arith.constant 0 : index
    %315 = vector.load %arg8[%c0_115, %c0_116] : memref<32x128xbf16, #tpu.memory_space<vmem>>, vector<32x128xbf16>
    %cst_117 = arith.constant dense<0.000000e+00> : vector<8x128xf32>
    %316 = tpu.matmul %314, %315, %cst_117 {dimension_numbers = #tpu.dot_dimension_numbers<[1], [0], [0], [1], [0, 0, 1, 1], [], []>} : vector<8x32xbf16>, vector<32x128xbf16>, vector<8x128xf32> -> vector<8x128xf32>
    %317 = arith.addf %313, %316 : vector<8x128xf32>
    %c0_118 = arith.constant 0 : index
    %c0_119 = arith.constant 0 : index
    %318 = vector.load %arg9[%c0_118, %c0_119] : memref<1x128xf32, #tpu.memory_space<vmem>>, vector<1x128xf32>
    %319 = vector.broadcast %318 : vector<1x128xf32> to vector<8x128xf32>
    %320 = arith.addf %317, %319 : vector<8x128xf32>
    %321 = math.tanh %320 : vector<8x128xf32>
    %322 = arith.negf %320 : vector<8x128xf32>
    %323 = math.exp %322 : vector<8x128xf32>
    %cst_120 = arith.constant 1.000000e+00 : f32
    %324 = vector.broadcast %cst_120 : f32 to vector<8x128xf32>
    %325 = arith.addf %324, %323 : vector<8x128xf32>
    %326 = arith.divf %324, %325 : vector<8x128xf32>
    %327 = arith.select %24, %321, %326 : vector<8x128xi1>, vector<8x128xf32>
    %328 = vector.extract_strided_slice %327 {offsets = [0, 0], sizes = [8, 32], strides = [1, 1]} : vector<8x128xf32> to vector<8x32xf32>
    %329 = vector.extract_strided_slice %327 {offsets = [0, 32], sizes = [8, 32], strides = [1, 1]} : vector<8x128xf32> to vector<8x32xf32>
    %330 = vector.extract_strided_slice %327 {offsets = [0, 64], sizes = [8, 32], strides = [1, 1]} : vector<8x128xf32> to vector<8x32xf32>
    %331 = vector.extract_strided_slice %327 {offsets = [0, 96], sizes = [8, 32], strides = [1, 1]} : vector<8x128xf32> to vector<8x32xf32>
    %332 = arith.mulf %329, %257 : vector<8x32xf32>
    %333 = arith.mulf %328, %330 : vector<8x32xf32>
    %334 = arith.addf %332, %333 : vector<8x32xf32>
    %335 = math.tanh %334 : vector<8x32xf32>
    %336 = arith.mulf %331, %335 : vector<8x32xf32>
    %337 = arith.index_cast %262 : i32 to index
    %c0_121 = arith.constant 0 : index
    %338 = vector.load %arg26[%337, %c0_121] : memref<64x32xf32, #tpu.memory_space<vmem>>, vector<8x32xf32>
    tpu.vector_store %arg26[%337, %c0_121], %336 {strides = array<i32>} : memref<64x32xf32, #tpu.memory_space<vmem>>, vector<8x32xf32>,
    %c4_i32 = arith.constant 4 : i32
    %c8_i32_122 = arith.constant 8 : i32
    %339 = arith.muli %c4_i32, %c8_i32_122 : i32
    %340 = arith.index_cast %339 : i32 to index
    %c0_123 = arith.constant 0 : index
    %341 = vector.load %arg25[%340, %c0_123] : memref<64x128xf32, #tpu.memory_space<vmem>>, vector<8x128xf32>
    %342 = arith.truncf %284 : vector<8x32xf32> to vector<8x32xbf16>
    %c0_124 = arith.constant 0 : index
    %c0_125 = arith.constant 0 : index
    %343 = vector.load %arg2[%c0_124, %c0_125] : memref<32x128xbf16, #tpu.memory_space<vmem>>, vector<32x128xbf16>
    %cst_126 = arith.constant dense<0.000000e+00> : vector<8x128xf32>
    %344 = tpu.matmul %342, %343, %cst_126 {dimension_numbers = #tpu.dot_dimension_numbers<[1], [0], [0], [1], [0, 0, 1, 1], [], []>} : vector<8x32xbf16>, vector<32x128xbf16>, vector<8x128xf32> -> vector<8x128xf32>
    %345 = arith.addf %341, %344 : vector<8x128xf32>
    %346 = math.tanh %345 : vector<8x128xf32>
    %347 = arith.negf %345 : vector<8x128xf32>
    %348 = math.exp %347 : vector<8x128xf32>
    %cst_127 = arith.constant 1.000000e+00 : f32
    %349 = vector.broadcast %cst_127 : f32 to vector<8x128xf32>
    %350 = arith.addf %349, %348 : vector<8x128xf32>
    %351 = arith.divf %349, %350 : vector<8x128xf32>
    %352 = arith.select %12, %346, %351 : vector<8x128xi1>, vector<8x128xf32>
    %353 = vector.extract_strided_slice %352 {offsets = [0, 0], sizes = [8, 32], strides = [1, 1]} : vector<8x128xf32> to vector<8x32xf32>
    %354 = vector.extract_strided_slice %352 {offsets = [0, 32], sizes = [8, 32], strides = [1, 1]} : vector<8x128xf32> to vector<8x32xf32>
    %355 = vector.extract_strided_slice %352 {offsets = [0, 64], sizes = [8, 32], strides = [1, 1]} : vector<8x128xf32> to vector<8x32xf32>
    %356 = vector.extract_strided_slice %352 {offsets = [0, 96], sizes = [8, 32], strides = [1, 1]} : vector<8x128xf32> to vector<8x32xf32>
    %357 = arith.mulf %354, %282 : vector<8x32xf32>
    %358 = arith.mulf %353, %355 : vector<8x32xf32>
    %359 = arith.addf %357, %358 : vector<8x32xf32>
    %360 = math.tanh %359 : vector<8x32xf32>
    %361 = arith.mulf %356, %360 : vector<8x32xf32>
    %362 = arith.truncf %361 : vector<8x32xf32> to vector<8x32xbf16>
    %c0_128 = arith.constant 0 : index
    %c0_129 = arith.constant 0 : index
    %363 = vector.load %arg4[%c0_128, %c0_129] : memref<32x128xbf16, #tpu.memory_space<vmem>>, vector<32x128xbf16>
    %cst_130 = arith.constant dense<0.000000e+00> : vector<8x128xf32>
    %364 = tpu.matmul %362, %363, %cst_130 {dimension_numbers = #tpu.dot_dimension_numbers<[1], [0], [0], [1], [0, 0, 1, 1], [], []>} : vector<8x32xbf16>, vector<32x128xbf16>, vector<8x128xf32> -> vector<8x128xf32>
    %365 = arith.truncf %310 : vector<8x32xf32> to vector<8x32xbf16>
    %c0_131 = arith.constant 0 : index
    %c0_132 = arith.constant 0 : index
    %366 = vector.load %arg5[%c0_131, %c0_132] : memref<32x128xbf16, #tpu.memory_space<vmem>>, vector<32x128xbf16>
    %cst_133 = arith.constant dense<0.000000e+00> : vector<8x128xf32>
    %367 = tpu.matmul %365, %366, %cst_133 {dimension_numbers = #tpu.dot_dimension_numbers<[1], [0], [0], [1], [0, 0, 1, 1], [], []>} : vector<8x32xbf16>, vector<32x128xbf16>, vector<8x128xf32> -> vector<8x128xf32>
    %368 = arith.addf %364, %367 : vector<8x128xf32>
    %c0_134 = arith.constant 0 : index
    %c0_135 = arith.constant 0 : index
    %369 = vector.load %arg6[%c0_134, %c0_135] : memref<1x128xf32, #tpu.memory_space<vmem>>, vector<1x128xf32>
    %370 = vector.broadcast %369 : vector<1x128xf32> to vector<8x128xf32>
    %371 = arith.addf %368, %370 : vector<8x128xf32>
    %372 = math.tanh %371 : vector<8x128xf32>
    %373 = arith.negf %371 : vector<8x128xf32>
    %374 = math.exp %373 : vector<8x128xf32>
    %cst_136 = arith.constant 1.000000e+00 : f32
    %375 = vector.broadcast %cst_136 : f32 to vector<8x128xf32>
    %376 = arith.addf %375, %374 : vector<8x128xf32>
    %377 = arith.divf %375, %376 : vector<8x128xf32>
    %378 = arith.select %18, %372, %377 : vector<8x128xi1>, vector<8x128xf32>
    %379 = vector.extract_strided_slice %378 {offsets = [0, 0], sizes = [8, 32], strides = [1, 1]} : vector<8x128xf32> to vector<8x32xf32>
    %380 = vector.extract_strided_slice %378 {offsets = [0, 32], sizes = [8, 32], strides = [1, 1]} : vector<8x128xf32> to vector<8x32xf32>
    %381 = vector.extract_strided_slice %378 {offsets = [0, 64], sizes = [8, 32], strides = [1, 1]} : vector<8x128xf32> to vector<8x32xf32>
    %382 = vector.extract_strided_slice %378 {offsets = [0, 96], sizes = [8, 32], strides = [1, 1]} : vector<8x128xf32> to vector<8x32xf32>
    %383 = arith.mulf %380, %308 : vector<8x32xf32>
    %384 = arith.mulf %379, %381 : vector<8x32xf32>
    %385 = arith.addf %383, %384 : vector<8x32xf32>
    %386 = math.tanh %385 : vector<8x32xf32>
    %387 = arith.mulf %382, %386 : vector<8x32xf32>
    %388 = arith.truncf %387 : vector<8x32xf32> to vector<8x32xbf16>
    %c0_137 = arith.constant 0 : index
    %c0_138 = arith.constant 0 : index
    %389 = vector.load %arg7[%c0_137, %c0_138] : memref<32x128xbf16, #tpu.memory_space<vmem>>, vector<32x128xbf16>
    %cst_139 = arith.constant dense<0.000000e+00> : vector<8x128xf32>
    %390 = tpu.matmul %388, %389, %cst_139 {dimension_numbers = #tpu.dot_dimension_numbers<[1], [0], [0], [1], [0, 0, 1, 1], [], []>} : vector<8x32xbf16>, vector<32x128xbf16>, vector<8x128xf32> -> vector<8x128xf32>
    %391 = arith.truncf %336 : vector<8x32xf32> to vector<8x32xbf16>
    %c0_140 = arith.constant 0 : index
    %c0_141 = arith.constant 0 : index
    %392 = vector.load %arg8[%c0_140, %c0_141] : memref<32x128xbf16, #tpu.memory_space<vmem>>, vector<32x128xbf16>
    %cst_142 = arith.constant dense<0.000000e+00> : vector<8x128xf32>
    %393 = tpu.matmul %391, %392, %cst_142 {dimension_numbers = #tpu.dot_dimension_numbers<[1], [0], [0], [1], [0, 0, 1, 1], [], []>} : vector<8x32xbf16>, vector<32x128xbf16>, vector<8x128xf32> -> vector<8x128xf32>
    %394 = arith.addf %390, %393 : vector<8x128xf32>
    %c0_143 = arith.constant 0 : index
    %c0_144 = arith.constant 0 : index
    %395 = vector.load %arg9[%c0_143, %c0_144] : memref<1x128xf32, #tpu.memory_space<vmem>>, vector<1x128xf32>
    %396 = vector.broadcast %395 : vector<1x128xf32> to vector<8x128xf32>
    %397 = arith.addf %394, %396 : vector<8x128xf32>
    %398 = math.tanh %397 : vector<8x128xf32>
    %399 = arith.negf %397 : vector<8x128xf32>
    %400 = math.exp %399 : vector<8x128xf32>
    %cst_145 = arith.constant 1.000000e+00 : f32
    %401 = vector.broadcast %cst_145 : f32 to vector<8x128xf32>
    %402 = arith.addf %401, %400 : vector<8x128xf32>
    %403 = arith.divf %401, %402 : vector<8x128xf32>
    %404 = arith.select %24, %398, %403 : vector<8x128xi1>, vector<8x128xf32>
    %405 = vector.extract_strided_slice %404 {offsets = [0, 0], sizes = [8, 32], strides = [1, 1]} : vector<8x128xf32> to vector<8x32xf32>
    %406 = vector.extract_strided_slice %404 {offsets = [0, 32], sizes = [8, 32], strides = [1, 1]} : vector<8x128xf32> to vector<8x32xf32>
    %407 = vector.extract_strided_slice %404 {offsets = [0, 64], sizes = [8, 32], strides = [1, 1]} : vector<8x128xf32> to vector<8x32xf32>
    %408 = vector.extract_strided_slice %404 {offsets = [0, 96], sizes = [8, 32], strides = [1, 1]} : vector<8x128xf32> to vector<8x32xf32>
    %409 = arith.mulf %406, %334 : vector<8x32xf32>
    %410 = arith.mulf %405, %407 : vector<8x32xf32>
    %411 = arith.addf %409, %410 : vector<8x32xf32>
    %412 = math.tanh %411 : vector<8x32xf32>
    %413 = arith.mulf %408, %412 : vector<8x32xf32>
    %414 = arith.index_cast %339 : i32 to index
    %c0_146 = arith.constant 0 : index
    %415 = vector.load %arg26[%414, %c0_146] : memref<64x32xf32, #tpu.memory_space<vmem>>, vector<8x32xf32>
    tpu.vector_store %arg26[%414, %c0_146], %413 {strides = array<i32>} : memref<64x32xf32, #tpu.memory_space<vmem>>, vector<8x32xf32>,
    %c5_i32 = arith.constant 5 : i32
    %c8_i32_147 = arith.constant 8 : i32
    %416 = arith.muli %c5_i32, %c8_i32_147 : i32
    %417 = arith.index_cast %416 : i32 to index
    %c0_148 = arith.constant 0 : index
    %418 = vector.load %arg25[%417, %c0_148] : memref<64x128xf32, #tpu.memory_space<vmem>>, vector<8x128xf32>
    %419 = arith.truncf %361 : vector<8x32xf32> to vector<8x32xbf16>
    %c0_149 = arith.constant 0 : index
    %c0_150 = arith.constant 0 : index
    %420 = vector.load %arg2[%c0_149, %c0_150] : memref<32x128xbf16, #tpu.memory_space<vmem>>, vector<32x128xbf16>
    %cst_151 = arith.constant dense<0.000000e+00> : vector<8x128xf32>
    %421 = tpu.matmul %419, %420, %cst_151 {dimension_numbers = #tpu.dot_dimension_numbers<[1], [0], [0], [1], [0, 0, 1, 1], [], []>} : vector<8x32xbf16>, vector<32x128xbf16>, vector<8x128xf32> -> vector<8x128xf32>
    %422 = arith.addf %418, %421 : vector<8x128xf32>
    %423 = math.tanh %422 : vector<8x128xf32>
    %424 = arith.negf %422 : vector<8x128xf32>
    %425 = math.exp %424 : vector<8x128xf32>
    %cst_152 = arith.constant 1.000000e+00 : f32
    %426 = vector.broadcast %cst_152 : f32 to vector<8x128xf32>
    %427 = arith.addf %426, %425 : vector<8x128xf32>
    %428 = arith.divf %426, %427 : vector<8x128xf32>
    %429 = arith.select %12, %423, %428 : vector<8x128xi1>, vector<8x128xf32>
    %430 = vector.extract_strided_slice %429 {offsets = [0, 0], sizes = [8, 32], strides = [1, 1]} : vector<8x128xf32> to vector<8x32xf32>
    %431 = vector.extract_strided_slice %429 {offsets = [0, 32], sizes = [8, 32], strides = [1, 1]} : vector<8x128xf32> to vector<8x32xf32>
    %432 = vector.extract_strided_slice %429 {offsets = [0, 64], sizes = [8, 32], strides = [1, 1]} : vector<8x128xf32> to vector<8x32xf32>
    %433 = vector.extract_strided_slice %429 {offsets = [0, 96], sizes = [8, 32], strides = [1, 1]} : vector<8x128xf32> to vector<8x32xf32>
    %434 = arith.mulf %431, %359 : vector<8x32xf32>
    %435 = arith.mulf %430, %432 : vector<8x32xf32>
    %436 = arith.addf %434, %435 : vector<8x32xf32>
    %437 = math.tanh %436 : vector<8x32xf32>
    %438 = arith.mulf %433, %437 : vector<8x32xf32>
    %439 = arith.truncf %438 : vector<8x32xf32> to vector<8x32xbf16>
    %c0_153 = arith.constant 0 : index
    %c0_154 = arith.constant 0 : index
    %440 = vector.load %arg4[%c0_153, %c0_154] : memref<32x128xbf16, #tpu.memory_space<vmem>>, vector<32x128xbf16>
    %cst_155 = arith.constant dense<0.000000e+00> : vector<8x128xf32>
    %441 = tpu.matmul %439, %440, %cst_155 {dimension_numbers = #tpu.dot_dimension_numbers<[1], [0], [0], [1], [0, 0, 1, 1], [], []>} : vector<8x32xbf16>, vector<32x128xbf16>, vector<8x128xf32> -> vector<8x128xf32>
    %442 = arith.truncf %387 : vector<8x32xf32> to vector<8x32xbf16>
    %c0_156 = arith.constant 0 : index
    %c0_157 = arith.constant 0 : index
    %443 = vector.load %arg5[%c0_156, %c0_157] : memref<32x128xbf16, #tpu.memory_space<vmem>>, vector<32x128xbf16>
    %cst_158 = arith.constant dense<0.000000e+00> : vector<8x128xf32>
    %444 = tpu.matmul %442, %443, %cst_158 {dimension_numbers = #tpu.dot_dimension_numbers<[1], [0], [0], [1], [0, 0, 1, 1], [], []>} : vector<8x32xbf16>, vector<32x128xbf16>, vector<8x128xf32> -> vector<8x128xf32>
    %445 = arith.addf %441, %444 : vector<8x128xf32>
    %c0_159 = arith.constant 0 : index
    %c0_160 = arith.constant 0 : index
    %446 = vector.load %arg6[%c0_159, %c0_160] : memref<1x128xf32, #tpu.memory_space<vmem>>, vector<1x128xf32>
    %447 = vector.broadcast %446 : vector<1x128xf32> to vector<8x128xf32>
    %448 = arith.addf %445, %447 : vector<8x128xf32>
    %449 = math.tanh %448 : vector<8x128xf32>
    %450 = arith.negf %448 : vector<8x128xf32>
    %451 = math.exp %450 : vector<8x128xf32>
    %cst_161 = arith.constant 1.000000e+00 : f32
    %452 = vector.broadcast %cst_161 : f32 to vector<8x128xf32>
    %453 = arith.addf %452, %451 : vector<8x128xf32>
    %454 = arith.divf %452, %453 : vector<8x128xf32>
    %455 = arith.select %18, %449, %454 : vector<8x128xi1>, vector<8x128xf32>
    %456 = vector.extract_strided_slice %455 {offsets = [0, 0], sizes = [8, 32], strides = [1, 1]} : vector<8x128xf32> to vector<8x32xf32>
    %457 = vector.extract_strided_slice %455 {offsets = [0, 32], sizes = [8, 32], strides = [1, 1]} : vector<8x128xf32> to vector<8x32xf32>
    %458 = vector.extract_strided_slice %455 {offsets = [0, 64], sizes = [8, 32], strides = [1, 1]} : vector<8x128xf32> to vector<8x32xf32>
    %459 = vector.extract_strided_slice %455 {offsets = [0, 96], sizes = [8, 32], strides = [1, 1]} : vector<8x128xf32> to vector<8x32xf32>
    %460 = arith.mulf %457, %385 : vector<8x32xf32>
    %461 = arith.mulf %456, %458 : vector<8x32xf32>
    %462 = arith.addf %460, %461 : vector<8x32xf32>
    %463 = math.tanh %462 : vector<8x32xf32>
    %464 = arith.mulf %459, %463 : vector<8x32xf32>
    %465 = arith.truncf %464 : vector<8x32xf32> to vector<8x32xbf16>
    %c0_162 = arith.constant 0 : index
    %c0_163 = arith.constant 0 : index
    %466 = vector.load %arg7[%c0_162, %c0_163] : memref<32x128xbf16, #tpu.memory_space<vmem>>, vector<32x128xbf16>
    %cst_164 = arith.constant dense<0.000000e+00> : vector<8x128xf32>
    %467 = tpu.matmul %465, %466, %cst_164 {dimension_numbers = #tpu.dot_dimension_numbers<[1], [0], [0], [1], [0, 0, 1, 1], [], []>} : vector<8x32xbf16>, vector<32x128xbf16>, vector<8x128xf32> -> vector<8x128xf32>
    %468 = arith.truncf %413 : vector<8x32xf32> to vector<8x32xbf16>
    %c0_165 = arith.constant 0 : index
    %c0_166 = arith.constant 0 : index
    %469 = vector.load %arg8[%c0_165, %c0_166] : memref<32x128xbf16, #tpu.memory_space<vmem>>, vector<32x128xbf16>
    %cst_167 = arith.constant dense<0.000000e+00> : vector<8x128xf32>
    %470 = tpu.matmul %468, %469, %cst_167 {dimension_numbers = #tpu.dot_dimension_numbers<[1], [0], [0], [1], [0, 0, 1, 1], [], []>} : vector<8x32xbf16>, vector<32x128xbf16>, vector<8x128xf32> -> vector<8x128xf32>
    %471 = arith.addf %467, %470 : vector<8x128xf32>
    %c0_168 = arith.constant 0 : index
    %c0_169 = arith.constant 0 : index
    %472 = vector.load %arg9[%c0_168, %c0_169] : memref<1x128xf32, #tpu.memory_space<vmem>>, vector<1x128xf32>
    %473 = vector.broadcast %472 : vector<1x128xf32> to vector<8x128xf32>
    %474 = arith.addf %471, %473 : vector<8x128xf32>
    %475 = math.tanh %474 : vector<8x128xf32>
    %476 = arith.negf %474 : vector<8x128xf32>
    %477 = math.exp %476 : vector<8x128xf32>
    %cst_170 = arith.constant 1.000000e+00 : f32
    %478 = vector.broadcast %cst_170 : f32 to vector<8x128xf32>
    %479 = arith.addf %478, %477 : vector<8x128xf32>
    %480 = arith.divf %478, %479 : vector<8x128xf32>
    %481 = arith.select %24, %475, %480 : vector<8x128xi1>, vector<8x128xf32>
    %482 = vector.extract_strided_slice %481 {offsets = [0, 0], sizes = [8, 32], strides = [1, 1]} : vector<8x128xf32> to vector<8x32xf32>
    %483 = vector.extract_strided_slice %481 {offsets = [0, 32], sizes = [8, 32], strides = [1, 1]} : vector<8x128xf32> to vector<8x32xf32>
    %484 = vector.extract_strided_slice %481 {offsets = [0, 64], sizes = [8, 32], strides = [1, 1]} : vector<8x128xf32> to vector<8x32xf32>
    %485 = vector.extract_strided_slice %481 {offsets = [0, 96], sizes = [8, 32], strides = [1, 1]} : vector<8x128xf32> to vector<8x32xf32>
    %486 = arith.mulf %483, %411 : vector<8x32xf32>
    %487 = arith.mulf %482, %484 : vector<8x32xf32>
    %488 = arith.addf %486, %487 : vector<8x32xf32>
    %489 = math.tanh %488 : vector<8x32xf32>
    %490 = arith.mulf %485, %489 : vector<8x32xf32>
    %491 = arith.index_cast %416 : i32 to index
    %c0_171 = arith.constant 0 : index
    %492 = vector.load %arg26[%491, %c0_171] : memref<64x32xf32, #tpu.memory_space<vmem>>, vector<8x32xf32>
    tpu.vector_store %arg26[%491, %c0_171], %490 {strides = array<i32>} : memref<64x32xf32, #tpu.memory_space<vmem>>, vector<8x32xf32>,
    %c6_i32 = arith.constant 6 : i32
    %c8_i32_172 = arith.constant 8 : i32
    %493 = arith.muli %c6_i32, %c8_i32_172 : i32
    %494 = arith.index_cast %493 : i32 to index
    %c0_173 = arith.constant 0 : index
    %495 = vector.load %arg25[%494, %c0_173] : memref<64x128xf32, #tpu.memory_space<vmem>>, vector<8x128xf32>
    %496 = arith.truncf %438 : vector<8x32xf32> to vector<8x32xbf16>
    %c0_174 = arith.constant 0 : index
    %c0_175 = arith.constant 0 : index
    %497 = vector.load %arg2[%c0_174, %c0_175] : memref<32x128xbf16, #tpu.memory_space<vmem>>, vector<32x128xbf16>
    %cst_176 = arith.constant dense<0.000000e+00> : vector<8x128xf32>
    %498 = tpu.matmul %496, %497, %cst_176 {dimension_numbers = #tpu.dot_dimension_numbers<[1], [0], [0], [1], [0, 0, 1, 1], [], []>} : vector<8x32xbf16>, vector<32x128xbf16>, vector<8x128xf32> -> vector<8x128xf32>
    %499 = arith.addf %495, %498 : vector<8x128xf32>
    %500 = math.tanh %499 : vector<8x128xf32>
    %501 = arith.negf %499 : vector<8x128xf32>
    %502 = math.exp %501 : vector<8x128xf32>
    %cst_177 = arith.constant 1.000000e+00 : f32
    %503 = vector.broadcast %cst_177 : f32 to vector<8x128xf32>
    %504 = arith.addf %503, %502 : vector<8x128xf32>
    %505 = arith.divf %503, %504 : vector<8x128xf32>
    %506 = arith.select %12, %500, %505 : vector<8x128xi1>, vector<8x128xf32>
    %507 = vector.extract_strided_slice %506 {offsets = [0, 0], sizes = [8, 32], strides = [1, 1]} : vector<8x128xf32> to vector<8x32xf32>
    %508 = vector.extract_strided_slice %506 {offsets = [0, 32], sizes = [8, 32], strides = [1, 1]} : vector<8x128xf32> to vector<8x32xf32>
    %509 = vector.extract_strided_slice %506 {offsets = [0, 64], sizes = [8, 32], strides = [1, 1]} : vector<8x128xf32> to vector<8x32xf32>
    %510 = vector.extract_strided_slice %506 {offsets = [0, 96], sizes = [8, 32], strides = [1, 1]} : vector<8x128xf32> to vector<8x32xf32>
    %511 = arith.mulf %508, %436 : vector<8x32xf32>
    %512 = arith.mulf %507, %509 : vector<8x32xf32>
    %513 = arith.addf %511, %512 : vector<8x32xf32>
    %514 = math.tanh %513 : vector<8x32xf32>
    %515 = arith.mulf %510, %514 : vector<8x32xf32>
    %516 = arith.truncf %515 : vector<8x32xf32> to vector<8x32xbf16>
    %c0_178 = arith.constant 0 : index
    %c0_179 = arith.constant 0 : index
    %517 = vector.load %arg4[%c0_178, %c0_179] : memref<32x128xbf16, #tpu.memory_space<vmem>>, vector<32x128xbf16>
    %cst_180 = arith.constant dense<0.000000e+00> : vector<8x128xf32>
    %518 = tpu.matmul %516, %517, %cst_180 {dimension_numbers = #tpu.dot_dimension_numbers<[1], [0], [0], [1], [0, 0, 1, 1], [], []>} : vector<8x32xbf16>, vector<32x128xbf16>, vector<8x128xf32> -> vector<8x128xf32>
    %519 = arith.truncf %464 : vector<8x32xf32> to vector<8x32xbf16>
    %c0_181 = arith.constant 0 : index
    %c0_182 = arith.constant 0 : index
    %520 = vector.load %arg5[%c0_181, %c0_182] : memref<32x128xbf16, #tpu.memory_space<vmem>>, vector<32x128xbf16>
    %cst_183 = arith.constant dense<0.000000e+00> : vector<8x128xf32>
    %521 = tpu.matmul %519, %520, %cst_183 {dimension_numbers = #tpu.dot_dimension_numbers<[1], [0], [0], [1], [0, 0, 1, 1], [], []>} : vector<8x32xbf16>, vector<32x128xbf16>, vector<8x128xf32> -> vector<8x128xf32>
    %522 = arith.addf %518, %521 : vector<8x128xf32>
    %c0_184 = arith.constant 0 : index
    %c0_185 = arith.constant 0 : index
    %523 = vector.load %arg6[%c0_184, %c0_185] : memref<1x128xf32, #tpu.memory_space<vmem>>, vector<1x128xf32>
    %524 = vector.broadcast %523 : vector<1x128xf32> to vector<8x128xf32>
    %525 = arith.addf %522, %524 : vector<8x128xf32>
    %526 = math.tanh %525 : vector<8x128xf32>
    %527 = arith.negf %525 : vector<8x128xf32>
    %528 = math.exp %527 : vector<8x128xf32>
    %cst_186 = arith.constant 1.000000e+00 : f32
    %529 = vector.broadcast %cst_186 : f32 to vector<8x128xf32>
    %530 = arith.addf %529, %528 : vector<8x128xf32>
    %531 = arith.divf %529, %530 : vector<8x128xf32>
    %532 = arith.select %18, %526, %531 : vector<8x128xi1>, vector<8x128xf32>
    %533 = vector.extract_strided_slice %532 {offsets = [0, 0], sizes = [8, 32], strides = [1, 1]} : vector<8x128xf32> to vector<8x32xf32>
    %534 = vector.extract_strided_slice %532 {offsets = [0, 32], sizes = [8, 32], strides = [1, 1]} : vector<8x128xf32> to vector<8x32xf32>
    %535 = vector.extract_strided_slice %532 {offsets = [0, 64], sizes = [8, 32], strides = [1, 1]} : vector<8x128xf32> to vector<8x32xf32>
    %536 = vector.extract_strided_slice %532 {offsets = [0, 96], sizes = [8, 32], strides = [1, 1]} : vector<8x128xf32> to vector<8x32xf32>
    %537 = arith.mulf %534, %462 : vector<8x32xf32>
    %538 = arith.mulf %533, %535 : vector<8x32xf32>
    %539 = arith.addf %537, %538 : vector<8x32xf32>
    %540 = math.tanh %539 : vector<8x32xf32>
    %541 = arith.mulf %536, %540 : vector<8x32xf32>
    %542 = arith.truncf %541 : vector<8x32xf32> to vector<8x32xbf16>
    %c0_187 = arith.constant 0 : index
    %c0_188 = arith.constant 0 : index
    %543 = vector.load %arg7[%c0_187, %c0_188] : memref<32x128xbf16, #tpu.memory_space<vmem>>, vector<32x128xbf16>
    %cst_189 = arith.constant dense<0.000000e+00> : vector<8x128xf32>
    %544 = tpu.matmul %542, %543, %cst_189 {dimension_numbers = #tpu.dot_dimension_numbers<[1], [0], [0], [1], [0, 0, 1, 1], [], []>} : vector<8x32xbf16>, vector<32x128xbf16>, vector<8x128xf32> -> vector<8x128xf32>
    %545 = arith.truncf %490 : vector<8x32xf32> to vector<8x32xbf16>
    %c0_190 = arith.constant 0 : index
    %c0_191 = arith.constant 0 : index
    %546 = vector.load %arg8[%c0_190, %c0_191] : memref<32x128xbf16, #tpu.memory_space<vmem>>, vector<32x128xbf16>
    %cst_192 = arith.constant dense<0.000000e+00> : vector<8x128xf32>
    %547 = tpu.matmul %545, %546, %cst_192 {dimension_numbers = #tpu.dot_dimension_numbers<[1], [0], [0], [1], [0, 0, 1, 1], [], []>} : vector<8x32xbf16>, vector<32x128xbf16>, vector<8x128xf32> -> vector<8x128xf32>
    %548 = arith.addf %544, %547 : vector<8x128xf32>
    %c0_193 = arith.constant 0 : index
    %c0_194 = arith.constant 0 : index
    %549 = vector.load %arg9[%c0_193, %c0_194] : memref<1x128xf32, #tpu.memory_space<vmem>>, vector<1x128xf32>
    %550 = vector.broadcast %549 : vector<1x128xf32> to vector<8x128xf32>
    %551 = arith.addf %548, %550 : vector<8x128xf32>
    %552 = math.tanh %551 : vector<8x128xf32>
    %553 = arith.negf %551 : vector<8x128xf32>
    %554 = math.exp %553 : vector<8x128xf32>
    %cst_195 = arith.constant 1.000000e+00 : f32
    %555 = vector.broadcast %cst_195 : f32 to vector<8x128xf32>
    %556 = arith.addf %555, %554 : vector<8x128xf32>
    %557 = arith.divf %555, %556 : vector<8x128xf32>
    %558 = arith.select %24, %552, %557 : vector<8x128xi1>, vector<8x128xf32>
    %559 = vector.extract_strided_slice %558 {offsets = [0, 0], sizes = [8, 32], strides = [1, 1]} : vector<8x128xf32> to vector<8x32xf32>
    %560 = vector.extract_strided_slice %558 {offsets = [0, 32], sizes = [8, 32], strides = [1, 1]} : vector<8x128xf32> to vector<8x32xf32>
    %561 = vector.extract_strided_slice %558 {offsets = [0, 64], sizes = [8, 32], strides = [1, 1]} : vector<8x128xf32> to vector<8x32xf32>
    %562 = vector.extract_strided_slice %558 {offsets = [0, 96], sizes = [8, 32], strides = [1, 1]} : vector<8x128xf32> to vector<8x32xf32>
    %563 = arith.mulf %560, %488 : vector<8x32xf32>
    %564 = arith.mulf %559, %561 : vector<8x32xf32>
    %565 = arith.addf %563, %564 : vector<8x32xf32>
    %566 = math.tanh %565 : vector<8x32xf32>
    %567 = arith.mulf %562, %566 : vector<8x32xf32>
    %568 = arith.index_cast %493 : i32 to index
    %c0_196 = arith.constant 0 : index
    %569 = vector.load %arg26[%568, %c0_196] : memref<64x32xf32, #tpu.memory_space<vmem>>, vector<8x32xf32>
    tpu.vector_store %arg26[%568, %c0_196], %567 {strides = array<i32>} : memref<64x32xf32, #tpu.memory_space<vmem>>, vector<8x32xf32>,
    %c7_i32 = arith.constant 7 : i32
    %c8_i32_197 = arith.constant 8 : i32
    %570 = arith.muli %c7_i32, %c8_i32_197 : i32
    %571 = arith.index_cast %570 : i32 to index
    %c0_198 = arith.constant 0 : index
    %572 = vector.load %arg25[%571, %c0_198] : memref<64x128xf32, #tpu.memory_space<vmem>>, vector<8x128xf32>
    %573 = arith.truncf %515 : vector<8x32xf32> to vector<8x32xbf16>
    %c0_199 = arith.constant 0 : index
    %c0_200 = arith.constant 0 : index
    %574 = vector.load %arg2[%c0_199, %c0_200] : memref<32x128xbf16, #tpu.memory_space<vmem>>, vector<32x128xbf16>
    %cst_201 = arith.constant dense<0.000000e+00> : vector<8x128xf32>
    %575 = tpu.matmul %573, %574, %cst_201 {dimension_numbers = #tpu.dot_dimension_numbers<[1], [0], [0], [1], [0, 0, 1, 1], [], []>} : vector<8x32xbf16>, vector<32x128xbf16>, vector<8x128xf32> -> vector<8x128xf32>
    %576 = arith.addf %572, %575 : vector<8x128xf32>
    %577 = math.tanh %576 : vector<8x128xf32>
    %578 = arith.negf %576 : vector<8x128xf32>
    %579 = math.exp %578 : vector<8x128xf32>
    %cst_202 = arith.constant 1.000000e+00 : f32
    %580 = vector.broadcast %cst_202 : f32 to vector<8x128xf32>
    %581 = arith.addf %580, %579 : vector<8x128xf32>
    %582 = arith.divf %580, %581 : vector<8x128xf32>
    %583 = arith.select %12, %577, %582 : vector<8x128xi1>, vector<8x128xf32>
    %584 = vector.extract_strided_slice %583 {offsets = [0, 0], sizes = [8, 32], strides = [1, 1]} : vector<8x128xf32> to vector<8x32xf32>
    %585 = vector.extract_strided_slice %583 {offsets = [0, 32], sizes = [8, 32], strides = [1, 1]} : vector<8x128xf32> to vector<8x32xf32>
    %586 = vector.extract_strided_slice %583 {offsets = [0, 64], sizes = [8, 32], strides = [1, 1]} : vector<8x128xf32> to vector<8x32xf32>
    %587 = vector.extract_strided_slice %583 {offsets = [0, 96], sizes = [8, 32], strides = [1, 1]} : vector<8x128xf32> to vector<8x32xf32>
    %588 = arith.mulf %585, %513 : vector<8x32xf32>
    %589 = arith.mulf %584, %586 : vector<8x32xf32>
    %590 = arith.addf %588, %589 : vector<8x32xf32>
    %591 = math.tanh %590 : vector<8x32xf32>
    %592 = arith.mulf %587, %591 : vector<8x32xf32>
    %593 = arith.truncf %592 : vector<8x32xf32> to vector<8x32xbf16>
    %c0_203 = arith.constant 0 : index
    %c0_204 = arith.constant 0 : index
    %594 = vector.load %arg4[%c0_203, %c0_204] : memref<32x128xbf16, #tpu.memory_space<vmem>>, vector<32x128xbf16>
    %cst_205 = arith.constant dense<0.000000e+00> : vector<8x128xf32>
    %595 = tpu.matmul %593, %594, %cst_205 {dimension_numbers = #tpu.dot_dimension_numbers<[1], [0], [0], [1], [0, 0, 1, 1], [], []>} : vector<8x32xbf16>, vector<32x128xbf16>, vector<8x128xf32> -> vector<8x128xf32>
    %596 = arith.truncf %541 : vector<8x32xf32> to vector<8x32xbf16>
    %c0_206 = arith.constant 0 : index
    %c0_207 = arith.constant 0 : index
    %597 = vector.load %arg5[%c0_206, %c0_207] : memref<32x128xbf16, #tpu.memory_space<vmem>>, vector<32x128xbf16>
    %cst_208 = arith.constant dense<0.000000e+00> : vector<8x128xf32>
    %598 = tpu.matmul %596, %597, %cst_208 {dimension_numbers = #tpu.dot_dimension_numbers<[1], [0], [0], [1], [0, 0, 1, 1], [], []>} : vector<8x32xbf16>, vector<32x128xbf16>, vector<8x128xf32> -> vector<8x128xf32>
    %599 = arith.addf %595, %598 : vector<8x128xf32>
    %c0_209 = arith.constant 0 : index
    %c0_210 = arith.constant 0 : index
    %600 = vector.load %arg6[%c0_209, %c0_210] : memref<1x128xf32, #tpu.memory_space<vmem>>, vector<1x128xf32>
    %601 = vector.broadcast %600 : vector<1x128xf32> to vector<8x128xf32>
    %602 = arith.addf %599, %601 : vector<8x128xf32>
    %603 = math.tanh %602 : vector<8x128xf32>
    %604 = arith.negf %602 : vector<8x128xf32>
    %605 = math.exp %604 : vector<8x128xf32>
    %cst_211 = arith.constant 1.000000e+00 : f32
    %606 = vector.broadcast %cst_211 : f32 to vector<8x128xf32>
    %607 = arith.addf %606, %605 : vector<8x128xf32>
    %608 = arith.divf %606, %607 : vector<8x128xf32>
    %609 = arith.select %18, %603, %608 : vector<8x128xi1>, vector<8x128xf32>
    %610 = vector.extract_strided_slice %609 {offsets = [0, 0], sizes = [8, 32], strides = [1, 1]} : vector<8x128xf32> to vector<8x32xf32>
    %611 = vector.extract_strided_slice %609 {offsets = [0, 32], sizes = [8, 32], strides = [1, 1]} : vector<8x128xf32> to vector<8x32xf32>
    %612 = vector.extract_strided_slice %609 {offsets = [0, 64], sizes = [8, 32], strides = [1, 1]} : vector<8x128xf32> to vector<8x32xf32>
    %613 = vector.extract_strided_slice %609 {offsets = [0, 96], sizes = [8, 32], strides = [1, 1]} : vector<8x128xf32> to vector<8x32xf32>
    %614 = arith.mulf %611, %539 : vector<8x32xf32>
    %615 = arith.mulf %610, %612 : vector<8x32xf32>
    %616 = arith.addf %614, %615 : vector<8x32xf32>
    %617 = math.tanh %616 : vector<8x32xf32>
    %618 = arith.mulf %613, %617 : vector<8x32xf32>
    %619 = arith.truncf %618 : vector<8x32xf32> to vector<8x32xbf16>
    %c0_212 = arith.constant 0 : index
    %c0_213 = arith.constant 0 : index
    %620 = vector.load %arg7[%c0_212, %c0_213] : memref<32x128xbf16, #tpu.memory_space<vmem>>, vector<32x128xbf16>
    %cst_214 = arith.constant dense<0.000000e+00> : vector<8x128xf32>
    %621 = tpu.matmul %619, %620, %cst_214 {dimension_numbers = #tpu.dot_dimension_numbers<[1], [0], [0], [1], [0, 0, 1, 1], [], []>} : vector<8x32xbf16>, vector<32x128xbf16>, vector<8x128xf32> -> vector<8x128xf32>
    %622 = arith.truncf %567 : vector<8x32xf32> to vector<8x32xbf16>
    %c0_215 = arith.constant 0 : index
    %c0_216 = arith.constant 0 : index
    %623 = vector.load %arg8[%c0_215, %c0_216] : memref<32x128xbf16, #tpu.memory_space<vmem>>, vector<32x128xbf16>
    %cst_217 = arith.constant dense<0.000000e+00> : vector<8x128xf32>
    %624 = tpu.matmul %622, %623, %cst_217 {dimension_numbers = #tpu.dot_dimension_numbers<[1], [0], [0], [1], [0, 0, 1, 1], [], []>} : vector<8x32xbf16>, vector<32x128xbf16>, vector<8x128xf32> -> vector<8x128xf32>
    %625 = arith.addf %621, %624 : vector<8x128xf32>
    %c0_218 = arith.constant 0 : index
    %c0_219 = arith.constant 0 : index
    %626 = vector.load %arg9[%c0_218, %c0_219] : memref<1x128xf32, #tpu.memory_space<vmem>>, vector<1x128xf32>
    %627 = vector.broadcast %626 : vector<1x128xf32> to vector<8x128xf32>
    %628 = arith.addf %625, %627 : vector<8x128xf32>
    %629 = math.tanh %628 : vector<8x128xf32>
    %630 = arith.negf %628 : vector<8x128xf32>
    %631 = math.exp %630 : vector<8x128xf32>
    %cst_220 = arith.constant 1.000000e+00 : f32
    %632 = vector.broadcast %cst_220 : f32 to vector<8x128xf32>
    %633 = arith.addf %632, %631 : vector<8x128xf32>
    %634 = arith.divf %632, %633 : vector<8x128xf32>
    %635 = arith.select %24, %629, %634 : vector<8x128xi1>, vector<8x128xf32>
    %636 = vector.extract_strided_slice %635 {offsets = [0, 0], sizes = [8, 32], strides = [1, 1]} : vector<8x128xf32> to vector<8x32xf32>
    %637 = vector.extract_strided_slice %635 {offsets = [0, 32], sizes = [8, 32], strides = [1, 1]} : vector<8x128xf32> to vector<8x32xf32>
    %638 = vector.extract_strided_slice %635 {offsets = [0, 64], sizes = [8, 32], strides = [1, 1]} : vector<8x128xf32> to vector<8x32xf32>
    %639 = vector.extract_strided_slice %635 {offsets = [0, 96], sizes = [8, 32], strides = [1, 1]} : vector<8x128xf32> to vector<8x32xf32>
    %640 = arith.mulf %637, %565 : vector<8x32xf32>
    %641 = arith.mulf %636, %638 : vector<8x32xf32>
    %642 = arith.addf %640, %641 : vector<8x32xf32>
    %643 = math.tanh %642 : vector<8x32xf32>
    %644 = arith.mulf %639, %643 : vector<8x32xf32>
    %645 = arith.index_cast %570 : i32 to index
    %c0_221 = arith.constant 0 : index
    %646 = vector.load %arg26[%645, %c0_221] : memref<64x32xf32, #tpu.memory_space<vmem>>, vector<8x32xf32>
    tpu.vector_store %arg26[%645, %c0_221], %644 {strides = array<i32>} : memref<64x32xf32, #tpu.memory_space<vmem>>, vector<8x32xf32>,
    %c8_i32_222 = arith.constant 8 : i32
    %c0_223 = arith.constant 0 : index
    %c0_224 = arith.constant 0 : index
    %647 = vector.load %arg19[%c0_223, %c0_224] : memref<8x32xf32, #tpu.memory_space<vmem>>, vector<8x32xf32>
    tpu.vector_store %arg19[%c0_223, %c0_224], %592 {strides = array<i32>} : memref<8x32xf32, #tpu.memory_space<vmem>>, vector<8x32xf32>,
    %c0_225 = arith.constant 0 : index
    %c0_226 = arith.constant 0 : index
    %648 = vector.load %arg20[%c0_225, %c0_226] : memref<8x32xf32, #tpu.memory_space<vmem>>, vector<8x32xf32>
    tpu.vector_store %arg20[%c0_225, %c0_226], %590 {strides = array<i32>} : memref<8x32xf32, #tpu.memory_space<vmem>>, vector<8x32xf32>,
    %c0_227 = arith.constant 0 : index
    %c0_228 = arith.constant 0 : index
    %649 = vector.load %arg21[%c0_227, %c0_228] : memref<8x32xf32, #tpu.memory_space<vmem>>, vector<8x32xf32>
    tpu.vector_store %arg21[%c0_227, %c0_228], %618 {strides = array<i32>} : memref<8x32xf32, #tpu.memory_space<vmem>>, vector<8x32xf32>,
    %c0_229 = arith.constant 0 : index
    %c0_230 = arith.constant 0 : index
    %650 = vector.load %arg22[%c0_229, %c0_230] : memref<8x32xf32, #tpu.memory_space<vmem>>, vector<8x32xf32>
    tpu.vector_store %arg22[%c0_229, %c0_230], %616 {strides = array<i32>} : memref<8x32xf32, #tpu.memory_space<vmem>>, vector<8x32xf32>,
    %c0_231 = arith.constant 0 : index
    %c0_232 = arith.constant 0 : index
    %651 = vector.load %arg23[%c0_231, %c0_232] : memref<8x32xf32, #tpu.memory_space<vmem>>, vector<8x32xf32>
    tpu.vector_store %arg23[%c0_231, %c0_232], %644 {strides = array<i32>} : memref<8x32xf32, #tpu.memory_space<vmem>>, vector<8x32xf32>,
    %c0_233 = arith.constant 0 : index
    %c0_234 = arith.constant 0 : index
    %652 = vector.load %arg24[%c0_233, %c0_234] : memref<8x32xf32, #tpu.memory_space<vmem>>, vector<8x32xf32>
    tpu.vector_store %arg24[%c0_233, %c0_234], %642 {strides = array<i32>} : memref<8x32xf32, #tpu.memory_space<vmem>>, vector<8x32xf32>,
    %c0_235 = arith.constant 0 : index
    %c0_236 = arith.constant 0 : index
    %653 = vector.load %arg26[%c0_235, %c0_236] : memref<64x32xf32, #tpu.memory_space<vmem>>, vector<64x32xf32>
    %c0_237 = arith.constant 0 : index
    %c0_238 = arith.constant 0 : index
    %654 = vector.load %arg10[%c0_237, %c0_238] : memref<32x1xf32, #tpu.memory_space<vmem>>, vector<32x1xf32>
    %cst_239 = arith.constant dense<0.000000e+00> : vector<64x1xf32>
    %655 = tpu.matmul %653, %654, %cst_239 {dimension_numbers = #tpu.dot_dimension_numbers<[1], [0], [0], [1], [0, 0, 1, 1], [], []>} : vector<64x32xf32>, vector<32x1xf32>, vector<64x1xf32> -> vector<64x1xf32>
    %c0_240 = arith.constant 0 : index
    %c0_241 = arith.constant 0 : index
    %656 = vector.load %arg11[%c0_240, %c0_241] : memref<1x1xf32, #tpu.memory_space<vmem>>, vector<1x1xf32>
    %657 = vector.broadcast %656 : vector<1x1xf32> to vector<64x1xf32>
    %658 = arith.addf %655, %657 : vector<64x1xf32>
    %cst_242 = arith.constant 0.000000e+00 : f32
    %659 = vector.broadcast %cst_242 : f32 to vector<64x1xf32>
    %660 = arith.cmpf ogt, %658, %659 : vector<64x1xf32>
    %cst_243 = arith.constant 0.00999999977 : f32
    %661 = vector.broadcast %cst_243 : f32 to vector<64x1xf32>
    %662 = arith.mulf %661, %658 : vector<64x1xf32>
    %663 = arith.select %660, %658, %662 : vector<64x1xi1>, vector<64x1xf32>
    %c0_244 = arith.constant 0 : index
    %c0_245 = arith.constant 0 : index
    %664 = vector.load %arg18[%c0_244, %c0_245] : memref<64x1xf32, #tpu.memory_space<vmem>>, vector<64x1xf32>
    tpu.vector_store %arg18[%c0_244, %c0_245], %663 {strides = array<i32>} : memref<64x1xf32, #tpu.memory_space<vmem>>, vector<64x1xf32>,
    return
  }
}

</mosaic_0001>

<bundles_post_ra>
// kernel: tpu_custom_call.1
= control target key start
LH: loop header
LB: loop body
LE: loop exit
PB: predicated region body
PF: predicated region fallthrough
CT: control target
= control target key end

     0   :  { %s6125_s0 = inlined_call_operand.vmem [shape: bf16[64,16], index: 0, kind: input, shape index: {}]   ;;  %s6126_s1 = inlined_call_operand.hbm [shape: bf16[16,128], index: 1, kind: input, shape index: {}]   ;;  %s6127_s2 = inlined_call_operand.vmem [shape: bf16[32,128], index: 2, kind: input, shape index: {}]   ;;  %s6128_s3 = inlined_call_operand.hbm [shape: f32[1,128], index: 3, kind: input, shape index: {}]   ;;  %s6129_s4 = inlined_call_operand.vmem [shape: bf16[32,128], index: 4, kind: input, shape index: {}]   ;;  %s6130_s5 = inlined_call_operand.vmem [shape: bf16[32,128], index: 5, kind: input, shape index: {}]   ;;  %s6131_s6 = inlined_call_operand.vmem [shape: f32[1,128], index: 6, kind: input, shape index: {}]   ;;  %s6132_s7 = inlined_call_operand.vmem [shape: bf16[32,128], index: 7, kind: input, shape index: {}]   ;;  %s6133_s8 = inlined_call_operand.vmem [shape: bf16[32,128], index: 8, kind: input, shape index: {}]   ;;  %s6134_s9 = inlined_call_operand.hbm [shape: f32[1,128], index: 9, kind: input, shape index: {}]   ;;  %s6135_s10 = inlined_call_operand.vmem [shape: f32[32,1], index: 10, kind: input, shape index: {}]   ;;  %s6136_s11 = inlined_call_operand.<no memory space> [shape: f32[1,1], index: 11, kind: input, shape index: {}]   ;;  %s6137_s12 = inlined_call_operand.vmem [shape: f32[8,32], index: 12, kind: input, shape index: {}]   ;;  %s6138_s13 = inlined_call_operand.vmem [shape: f32[8,32], index: 13, kind: input, shape index: {}]   ;;  %s6139_s14 = inlined_call_operand.vmem [shape: f32[8,32], index: 14, kind: input, shape index: {}]   ;;  %s6140_s15 = inlined_call_operand.vmem [shape: f32[8,32], index: 15, kind: input, shape index: {}]   ;;  %s6141_s16 = inlined_call_operand.vmem [shape: f32[8,32], index: 16, kind: input, shape index: {}]   ;;  %s6142_s17 = inlined_call_operand.vmem [shape: f32[8,32], index: 17, kind: input, shape index: {}]   ;;  %s6143_s18 = inlined_call_operand.vmem [shape: f32[64,1], index: 18, kind: output, shape index: {0}]   ;;  %s6144_s19 = inlined_call_operand.hbm [shape: f32[8,32], index: 19, kind: output, shape index: {1}]   ;;  %s6145_s20 = inlined_call_operand.hbm [shape: f32[8,32], index: 20, kind: output, shape index: {2}]   ;;  %s6146_s21 = inlined_call_operand.hbm [shape: f32[8,32], index: 21, kind: output, shape index: {3}]   ;;  %s6147_s22 = inlined_call_operand.hbm [shape: f32[8,32], index: 22, kind: output, shape index: {4}]   ;;  %s6148_s23 = inlined_call_operand.hbm [shape: f32[8,32], index: 23, kind: output, shape index: {5}]   ;;  %s6149_s24 = inlined_call_operand.hbm [shape: f32[8,32], index: 24, kind: output, shape index: {6}]  }
   0x1   :  { %6159 = sst [smem:[#allocation26_spill]] %s6125_s0  ;;  %v30_v0 = vstv %s6136_s11 }
   0x2   :  { %6160 = sst [smem:[#allocation27_spill]] %s6126_s1  ;;  %31 = vst [vmem:[#allocation4] sm:$0x1] %v30_v0 }
   0x3   :  { %6161 = sst [smem:[#allocation28_spill]] %s6127_s2 }
   0x4   :  { %6162 = sst [smem:[#allocation29_spill]] %s6128_s3 }
   0x5   :  { %6163 = sst [smem:[#allocation30_spill]] %s6129_s4 }
   0x6   :  { %6164 = sst [smem:[#allocation31_spill]] %s6130_s5 }
   0x7   :  { %6165 = sst [smem:[#allocation32_spill]] %s6131_s6 }
   0x8   :  { %6166 = sst [smem:[#allocation33_spill]] %s6132_s7 }
   0x9   :  { %6167 = sst [smem:[#allocation34_spill]] %s6133_s8 }
   0xa   :  { %32 = vsyncpa [#allocation6], 0 }
   0xb   :  { %33 = vsyncpa [#allocation9], 0 }
   0xc   :  { %34 = vsyncpa [#allocation7], 0 }
   0xd   :  { %35 = vsyncpa [#allocation13], 0 }
   0xe   :  { %36 = vsyncpa [#allocation16], 0 }
   0xf   :  { %37 = vsyncpa [#allocation19], 0  ;;  %s4933_s27 = smov [#allocation8]   ;;  %s4934_s6 = smov [#allocation5]  }
  0x10   :  { %s60_s28 = sshll.u32 %s4933_s27, 4  ;;  %s45_s2 = sshll.u32 %s4934_s6, 4  ;;  %s61_s28 = int_to_ptr.vmem [resolvable:$true] %s60_s28  ;;  %s5076_s2 = int_to_ptr.vmem [resolvable:$true] %s45_s2 }
  0x11   :  { %s6168_s7 = sld [smem:[#allocation29_spill]] }
  0x17   :  { %s4723_s30 = scalar_lea.hbm %s6168_s7, 16 }
  0x18   :  { %p4724_p0 = scmp.ne.s32.totalorder %s6168_s7, %s4723_s30  ;;  %p4727_p1 = scmp.lt.u32.totalorder %s4723_s30, %s6168_s7 }
  0x1a   :  { %p4729_p2 = pnand %p4727_p1, %p4724_p0 }
  0x1c   :  { %4732 = shalt.err (!%p4729_p2)
}
  0x1d   :  { %s4733_s4 = scalar_lea.vmem %s61_s28, 16  ;;  %s4737_s1 = scalar_lea.vmem %s61_s28, 32 }
  0x1e   :  { %p4734_p3 = scmp.ne.s32.totalorder %s61_s28, %s4733_s4  ;;  %p4738_p4 = scmp.lt.s32.totalorder %s61_s28, %s61_s28 }
  0x1f   :  { %p4739_p5 = scmp.lt.s32.totalorder %s4737_s1, %s4733_s4 }
  0x21   :  { %p4740_p6 = por %p4739_p5, %p4738_p4 }
  0x23   :  { %p4741_p7 = pnand %p4740_p6, %p4734_p3 }
  0x25   :  { %4744 = shalt.err (!%p4741_p7)
}
  0x26   :  { %63 = dma.hbm_to_vmem [thread:$0]  %s6168_s7, 16, %s61_s28, [#allocation9]  }
  0x27   :  { %s6169_s29 = sld [smem:[#allocation27_spill]] }
  0x2d   :  { %s4745_s0 = scalar_lea.hbm %s6169_s29, 128 }
  0x2e   :  { %p4746_p8 = scmp.ne.s32.totalorder %s6169_s29, %s4745_s0  ;;  %p4749_p9 = scmp.lt.u32.totalorder %s4745_s0, %s6169_s29 }
  0x30   :  { %p4751_p10 = pnand %p4749_p9, %p4746_p8 }
  0x32   :  { %4754 = shalt.err (!%p4751_p10)
}
  0x33   :  { %s4755_s8 = scalar_lea.vmem %s5076_s2, 128  ;;  %p4760_p12 = scmp.lt.s32.totalorder %s5076_s2, %s5076_s2 }
  0x34   :  { %p4756_p11 = scmp.ne.s32.totalorder %s5076_s2, %s4755_s8  ;;  %p4761_p13 = scmp.lt.s32.totalorder %s4755_s8, %s4755_s8 }
  0x36   :  { %p4762_p0 = por %p4761_p13, %p4760_p12 }
  0x38   :  { %p4763_p1 = pnand %p4762_p0, %p4756_p11 }
  0x3a   :  { %4766 = shalt.err (!%p4763_p1)
}
  0x3b   :  { %s4935_s28 = smov 64   ;;  %s4936_s7 = smov 4  }
  0x3c   :  { %51 = dma.hbm_to_vmem [thread:$0]  %s6169_s29, 128, %s5076_s2, [#allocation6], %s4935_s28, %s4935_s28, %s4936_s7  }
  0x3d   :  { %s4937_s5 = smov [#allocation10]   ;;  %s4767_s0 = scalar_lea.hbm %s6134_s9, 16 }
  0x3e   :  { %s80_s26 = sshll.u32 %s4937_s5, 4  ;;  %p4768_p2 = scmp.ne.s32.totalorder %s6134_s9, %s4767_s0  ;;  %s81_s26 = int_to_ptr.vmem [resolvable:$true] %s80_s26 }
  0x3f   :  { %p4771_p3 = scmp.lt.u32.totalorder %s4767_s0, %s6134_s9 }
  0x41   :  { %p4773_p4 = pnand %p4771_p3, %p4768_p2 }
  0x43   :  { %4776 = shalt.err (!%p4773_p4)
}
  0x44   :  { %s4777_s8 = scalar_lea.vmem %s81_s26, 16  ;;  %s4781_s2 = scalar_lea.vmem %s81_s26, 32 }
  0x45   :  { %p4778_p5 = scmp.ne.s32.totalorder %s81_s26, %s4777_s8  ;;  %p4782_p6 = scmp.lt.s32.totalorder %s81_s26, %s81_s26 }
  0x46   :  { %p4783_p7 = scmp.lt.s32.totalorder %s4781_s2, %s4777_s8 }
  0x48   :  { %p4784_p8 = por %p4783_p7, %p4782_p6 }
  0x4a   :  { %p4785_p9 = pnand %p4784_p8, %p4778_p5 }
  0x4c   :  { %4788 = shalt.err (!%p4785_p9)
}
  0x4d   :  { %83 = dma.hbm_to_vmem [thread:$0]  %s6134_s9, 16, %s81_s26, [#allocation9]  }
  0x4e   :  { %4921 = dma.done.wait [#allocation6], 128  }
  0x4f   :  { %4922 = vsyncadd [#allocation6], 4294967168 }
  0x50   :  { %4923 = dma.done.wait [#allocation9], 32  }
  0x51   :  { %4924 = vsyncadd [#allocation9], 4294967264  ;;  %v4446_v1 = vld [vmem:[#allocation5] sm:$0xff]   ;;  %vm153_vm0 = vcmask 130048   ;;  %s6170_s5 = sld [smem:[#allocation26_spill]]  ;;  %s6171_s0 = sld [smem:[#allocation28_spill]]  ;;  %v239_v35 = vlaneseq }
  0x52   :  { %4429 = vmatprep.subr.bf16.mxu1 %v4446_v1  ;;  %4071 = vmatprep.subr.bf16.mxu0 %v4446_v1  ;;  %v4938_v5 = vmov 0.0   ;;  %v244_v9 = vld [vmem:[%s6137_s12] sm:$0xff]  ;;  %vm268_vm1 = vcmask 261120   ;;  %vm4939_vm2 = vmmov 0   ;;  %v3755_v11 = vld [vmem:[#allocation8] ss:$0 sm:$0xff] }
  0x53   :  { %4430 = vmatpush3.bf16.msra.mxu1 %v4446_v1  ;;  %4072 = vmatpush3.bf16.msra.mxu0 %v4446_v1  ;;  %v251_v10 = vpack.c.bf16 %v244_v9, %v244_v9  ;;  %v240_v37 = vand.u32 127, %v239_v35  ;;  %v245_v42 = vld [vmem:[%s6138_s13] sm:$0xff]  ;;  %s4940_s1 = smov 32   ;;  %s6174_s6 = sld [smem:[#allocation31_spill]] }
  0x54   :  { %4081 = vmatprep.subr.bf16.mxu1 %v4938_v5  ;;  %4097 = vmatprep.subr.bf16.mxu0 %v4938_v5  ;;  %v246_v51 = vld [vmem:[%s6139_s14] sm:$0xff]  ;;  %s6175_s25 = sld [smem:[#allocation30_spill]]  ;;  %s6176_s12 = sld [smem:[#allocation34_spill]] }
  0x55   :  { %vm241_vm3 = vcmp.ge.s32.totalorder %v240_v37, 64  ;;  %vm242_vm4 = vcmp.lt.s32.totalorder %v240_v37, 96  ;;  %v347_v54 = vpack.c.bf16 %v246_v51, %v246_v51  ;;  %v248_v58 = vld [vmem:[%s6141_s16] sm:$0xff]  ;;  %s6177_s11 = sld [smem:[#allocation32_spill]]  ;;  %s6178_s4 = sld [smem:[#allocation33_spill]] }
  0x56   :  { %vm5171_vm5 = vmand %vm241_vm3, %vm242_vm4  ;;  %v507_v59 = vpack.c.bf16 %v248_v58, %v248_v58 }
  0x57   :  { %v4447_v2 = vld [vmem:[%s6170_s5 + $0x10] sm:$0xff]   ;;  %v4448_v3 = vld [vmem:[%s6170_s5 + $0x18] sm:$0xff]   ;;  %v4449_v4 = vld [vmem:[%s6171_s0] sm:$0xff]  }
  0x58   :  { %4077 = vmatprep.mubr.msk.bf16.mxu1 %vm153_vm0, %v4447_v2  ;;  %v4450_v6 = vld [vmem:[%s6170_s5] sm:$0xff]   ;;  %v4451_v7 = vld [vmem:[%s6170_s5 + $0x8] sm:$0xff]  }
  0x59   :  { %4078 = vmatmul.mubr.msk.bf16.vlgmr.msra.gmra.mrb[0].mxu1 %vm153_vm0, %v4448_v3  ;;  %4073 = vmatprep.mubr.msk.bf16.mxu0 %vm153_vm0, %v4450_v6  ;;  %v4452_v8 = vld [vmem:[%s6171_s0 + $0x8] sm:$0xff]   ;;  %v4453_v49 = vld [vmem:[%s6174_s6] sm:$0xff]  }
  0x5a   :  { %4082 = vmatpush3.bf16.msra.mxu1 %v4449_v4  ;;  %4074 = vmatmul.mubr.msk.bf16.vlgmr.msra.gmra.mrb[0].mxu0 %vm153_vm0, %v4451_v7  ;;  %v4454_v50 = vld [vmem:[%s6174_s6 + $0x8] sm:$0xff]   ;;  %v4457_v52 = vld [vmem:[%s6175_s25] sm:$0xff]  }
  0x5b   :  { %4083 = vmatprep.subr.bf16.mxu1 %v4938_v5  ;;  %4085 = vmatprep.mubr.msk.bf16.mxu1 %vm4939_vm2, %v4938_v5  ;;  %v4459_v53 = vld [vmem:[%s6175_s25 + $0x8] sm:$0xff]   ;;  %v4455_v55 = vld [vmem:[%s6176_s12] sm:$0xff]  }
  0x5c   :  { %4101 = vmatprep.mubr.msk.bf16.mxu0 %vm4939_vm2, %v4938_v5  ;;  %4098 = vmatpush3.bf16.msra.mxu0 %v4457_v52  ;;  %v4456_v57 = vld [vmem:[%s6176_s12 + $0x8] sm:$0xff]   ;;  %v4458_v60 = vld [vmem:[%s6171_s0] sm:$0xff]  }
  0x5d   :  { %4099 = vmatprep.subr.bf16.mxu0 %v4938_v5  ;;  %v4460_v61 = vld [vmem:[%s6171_s0 + $0x8] sm:$0xff]  }
  0x5e   :  { %4084 = vmatpush3.bf16.msra.mxu1 %v4452_v8 }
  0x5f   :  { %4089 = vmatprep.subr.bf16.mxu1 %v4938_v5 }
  0x60   :  { %4100 = vmatpush3.bf16.msra.mxu0 %v4459_v53 }
  0x61   :  { %4086 = vmatmul.mubr.msk.bf16.vlgmr.msra.gmra.mrb[4].mxu1 %vm268_vm1, %v251_v10  ;;  %4113 = vmatprep.subr.bf16.mxu0 %v4938_v5 }
  0x62   :  { %4093 = vmatprep.mubr.msk.bf16.mxu1 %vm4939_vm2, %v4938_v5  ;;  %4090 = vmatpush3.bf16.msra.mxu1 %v4453_v49 }
  0x63   :  { %4091 = vmatprep.subr.bf16.mxu1 %v4938_v5 }
  0x66   :  { %4092 = vmatpush3.bf16.msra.mxu1 %v4454_v50 }
  0x67   :  { %4105 = vmatprep.subr.bf16.mxu1 %v4938_v5 }
  0x69   :  { %4094 = vmatmul.mubr.msk.bf16.vlgmr.msra.gmra.mrb[8].mxu1 %vm268_vm1, %v347_v54 }
  0x6a   :  { %4106 = vmatpush3.bf16.msra.mxu1 %v4455_v55  ;;  %4109 = vmatprep.mubr.msk.bf16.mxu1 %vm4939_vm2, %v4938_v5  ;;  %v4461_v55 = vld [vmem:[%s6175_s25] sm:$0xff]  }
  0x6b   :  { %4107 = vmatprep.subr.bf16.mxu1 %v4938_v5 }
  0x6e   :  { %4108 = vmatpush3.bf16.msra.mxu1 %v4456_v57  ;;  %v4464_v57 = vld [vmem:[%s6178_s4 + $0x8] sm:$0xff]  }
  0x6f   :  { %4121 = vmatprep.subr.bf16.mxu1 %v4938_v5 }
  0x71   :  { %4110 = vmatmul.mubr.msk.bf16.vlgmr.msra.gmra.mrb[12].mxu1 %vm268_vm1, %v507_v59 }
  0x72   :  { %4122 = vmatpush3.bf16.msra.mxu1 %v4458_v60  ;;  %4125 = vmatprep.mubr.msk.bf16.mxu1 %vm4939_vm2, %v4938_v5 }
  0x73   :  { %4123 = vmatprep.subr.bf16.mxu1 %v4938_v5 }
  0x76   :  { %4124 = vmatpush3.bf16.msra.mxu1 %v4460_v61 }
  0x77   :  { %4137 = vmatprep.subr.bf16.mxu1 %v4938_v5 }
 0x12c   :  { %v4079_v12 = vpop.f32.mrb[0].mxu1 }
 0x12d   :  { %v5157_v13 = vadd.f32 %v4079_v12, %v3755_v11  ;;  %v216_v14 = vpop.f32.mrb[1].mxu1  ;;  %v4075_v15 = vpop.f32.mrb[0].mxu0  ;;  %v5243_v12 = vld [vmem:[%s6177_s11] ss:$0 sm:$0xff] }
 0x12e   :  { %v5159_v16 = vadd.f32 %v3755_v11, %v216_v14  ;;  %v4080_v17 = vpop.f32.mrb[2].mxu1  ;;  %v5161_v18 = vadd.f32 %v4075_v15, %v3755_v11  ;;  %v200_v19 = vpop.f32.mrb[1].mxu0 }
 0x12f   :  { %v5163_v20 = vadd.f32 %v4080_v17, %v3755_v11  ;;  %v219_v21 = vpop.f32.mrb[3].mxu1  ;;  %v4076_v22 = vpop.f32.mrb[2].mxu0  ;;  %v201_v26 = vadd.f32 %v3755_v11, %v200_v19 }
 0x130   :  { %v5165_v23 = vadd.f32 %v3755_v11, %v219_v21  ;;  %v5167_v24 = vadd.f32 %v4076_v22, %v3755_v11  ;;  %v203_v25 = vpop.f32.mrb[3].mxu0 }
 0x131   :  { %v5169_v27 = vadd.f32 %v3755_v11, %v203_v25 }
 0x134   :  { %v306_v28 = vpop.f32.mrb[4].mxu1 }
 0x135   :  { %v312_v29 = vadd.f32 %v306_v28, %v201_v26  ;;  %v4087_v30 = vpop.f32.mrb[5].mxu1 }
 0x136   :  { %v309_v31 = vpop.f32.mrb[6].mxu1 }
 0x137   :  { %v3768_v32 = vmul.f32 -1.442695, %v312_v29  ;;  %v4088_v33 = vpop.f32.mrb[7].mxu1 }
 0x139   :  { %4531 = vpow2.f32 %v3768_v32 }
 0x13a   :  { %4533 = vtanh.f32 %v312_v29 }
 0x13c   :  { %v401_v1 = vpop.f32.mrb[8].mxu1 }
 0x13d   :  { %v4095_v2 = vpop.f32.mrb[9].mxu1 }
 0x13e   :  { %v404_v3 = vpop.f32.mrb[10].mxu1  ;;  %v4465_v2 = vld [vmem:[%s6174_s6] sm:$0xff]  }
 0x13f   :  { %v4096_v4 = vpop.f32.mrb[11].mxu1 }
 0x143   :  { %v4532_v34 = vpop.eup %4531 }
 0x144   :  { %v317_v36 = vadd.f32 1.0, %v4532_v34  ;;  %v4534_v39 = vpop.eup %4533  ;;  %v5232_v6 = vpop.f32.mrb[12].mxu1 }
 0x145   :  { %v4111_v7 = vpop.f32.mrb[13].mxu1 }
 0x146   :  { %4535 = vrcp.f32 %v317_v36  ;;  %v564_v8 = vpop.f32.mrb[14].mxu1  ;;  %v4466_v7 = vld [vmem:[%s6174_s6 + $0x8] sm:$0xff]  }
 0x147   :  { %v4112_v9 = vpop.f32.mrb[15].mxu1 }
 0x150   :  { %v4536_v40 = vpop.eup %4535 }
 0x151   :  { %v320_v41 = vsel %vm5171_vm5, %v4534_v39, %v4536_v40 }
 0x152   :  { %327 = vrot.lane.b32.xlu0 %v320_v41, %s4935_s28 }
 0x156   :  { %322 = vrot.lane.b32.xlu0 %v245_v42, %s4940_s1  ;;  %v247_v42 = vld [vmem:[%s6140_s15] sm:$0xff] }
 0x1c4   :  { %v328_v43 = vpop.permute.xlu0 %327 }
 0x1c5   :  { %v330_v44 = vmul.f32 %v328_v43, %v320_v41 }
 0x1c7   :  { %332 = vrot.lane.b32.xlu1 %v330_v44, %s4940_s1 }
 0x1c8   :  { %v323_v45 = vpop.permute.xlu0 %322 }
 0x1c9   :  { %v325_v46 = vmul.f32 %v323_v45, %v320_v41 }
 0x239   :  { %v333_v47 = vpop.permute.xlu1 %332 }
 0x23a   :  { %v5183_v48 = vadd.f32 %v333_v47, %v325_v46 }
 0x23c   :  { %4537 = vtanh.f32 %v5183_v48 }
 0x246   :  { %v4538_v56 = vpop.eup %4537 }
 0x247   :  { %338 = vrot.lane.b32.xlu1 %v4538_v56, %s4935_s28  ;;  %v4462_v56 = vld [vmem:[%s6178_s4] sm:$0xff]  }
 0x2b9   :  { %v339_v62 = vpop.permute.xlu1 %338 }
 0x2ba   :  { %v341_v63 = vmul.f32 %v339_v62, %v320_v41 }
 0x2bc   :  { %v342_v0 = vpack.c.bf16 %v341_v63, %v341_v63 }
 0x2be   :  { %408 = vrot.lane.b32.xlu0 %v342_v0, %s4940_s1 }
 0x330   :  { %v409_v10 = vpop.permute.xlu0 %408 }
 0x331   :  { %4102 = vmatmul.mubr.msk.bf16.vlgmr.msra.gmra.mrb[4].mxu0 %vm268_vm1, %v409_v10  ;;  %4126 = vmatmul.mubr.msk.bf16.vlgmr.msra.gmra.mrb[16].mxu1 %vm268_vm1, %v409_v10 }
 0x332   :  { %4141 = vmatprep.mubr.msk.bf16.mxu1 %vm4939_vm2, %v4938_v5  ;;  %4117 = vmatprep.mubr.msk.bf16.mxu0 %vm4939_vm2, %v4938_v5 }
 0x333   :  { %4138 = vmatpush3.bf16.msra.mxu1 %v4461_v55  ;;  %4114 = vmatpush3.bf16.msra.mxu0 %v4462_v56 }
 0x334   :  { %4139 = vmatprep.subr.bf16.mxu1 %v4938_v5  ;;  %4115 = vmatprep.subr.bf16.mxu0 %v4938_v5 }
 0x337   :  { %4116 = vmatpush3.bf16.msra.mxu0 %v4464_v57 }
 0x338   :  { %4129 = vmatprep.subr.bf16.mxu0 %v4938_v5 }
 0x404   :  { %v459_v11 = vpop.f32.mrb[4].mxu0  ;;  %v718_v14 = vpop.f32.mrb[16].mxu1 }
 0x405   :  { %v460_v15 = vadd.f32 %v459_v11, %v401_v1  ;;  %v724_v17 = vadd.f32 %v718_v14, %v5169_v27  ;;  %v4103_v19 = vpop.f32.mrb[5].mxu0  ;;  %v4127_v21 = vpop.f32.mrb[17].mxu1  ;;  %v5306_v11 = vld [vmem:[#allocation10] ss:$0 sm:$0xff] }
 0x406   :  { %v462_v22 = vpop.f32.mrb[6].mxu0  ;;  %v721_v25 = vpop.f32.mrb[18].mxu1 }
 0x407   :  { %v472_v26 = vadd.f32 %v5243_v12, %v460_v15  ;;  %v3788_v28 = vmul.f32 -1.442695, %v724_v17  ;;  %v4104_v29 = vpop.f32.mrb[7].mxu0  ;;  %v4128_v30 = vpop.f32.mrb[19].mxu1 }
 0x409   :  { %v3776_v31 = vmul.f32 -1.442695, %v472_v26  ;;  %4539 = vpow2.f32 %v3788_v28 }
 0x40b   :  { %4541 = vpow2.f32 %v3776_v31 }
 0x40c   :  { %4543 = vtanh.f32 %v724_v17 }
 0x40d   :  { %4545 = vtanh.f32 %v472_v26 }
 0x413   :  { %v4540_v32 = vpop.eup %4539 }
 0x414   :  { %v729_v34 = vadd.f32 1.0, %v4540_v32 }
 0x415   :  { %v4542_v33 = vpop.eup %4541 }
 0x416   :  { %v477_v35 = vadd.f32 1.0, %v4542_v33  ;;  %4547 = vrcp.f32 %v729_v34  ;;  %v4544_v27 = vpop.eup %4543 }
 0x417   :  { %v4546_v36 = vpop.eup %4545 }
 0x418   :  { %4549 = vrcp.f32 %v477_v35 }
 0x420   :  { %v4548_v37 = vpop.eup %4547 }
 0x421   :  { %v732_v40 = vsel %vm5171_vm5, %v4544_v27, %v4548_v37 }
 0x422   :  { %v4550_v39 = vpop.eup %4549  ;;  %735 = vrot.lane.b32.xlu0 %v732_v40, %s4935_s28  ;;  %v733_v49 = vmul.f32 %v732_v40, %v5183_v48  ;;  %v4463_v48 = vld [vmem:[%s6175_s25 + $0x8] sm:$0xff]  }
 0x423   :  { %v480_v41 = vsel %vm5171_vm5, %v4546_v36, %v4550_v39  ;;  %4140 = vmatpush3.bf16.msra.mxu1 %v4463_v48 }
 0x424   :  { %487 = vrot.lane.b32.xlu1 %v480_v41, %s4935_s28  ;;  %4153 = vmatprep.subr.bf16.mxu1 %v4938_v5 }
 0x428   :  { %482 = vrot.lane.b32.xlu1 %v247_v42, %s4940_s1 }
 0x494   :  { %v736_v43 = vpop.permute.xlu0 %735 }
 0x495   :  { %v738_v44 = vmul.f32 %v736_v43, %v732_v40 }
 0x496   :  { %v488_v45 = vpop.permute.xlu1 %487 }
 0x497   :  { %v490_v46 = vmul.f32 %v488_v45, %v480_v41  ;;  %740 = vrot.lane.b32.xlu1 %v738_v44, %s4940_s1 }
 0x499   :  { %492 = vrot.lane.b32.xlu0 %v490_v46, %s4940_s1 }
 0x49a   :  { %v483_v47 = vpop.permute.xlu1 %482 }
 0x49b   :  { %v485_v50 = vmul.f32 %v483_v47, %v480_v41 }
 0x509   :  { %v741_v51 = vpop.permute.xlu1 %740 }
 0x50a   :  { %v5260_v52 = vadd.f32 %v741_v51, %v733_v49 }
 0x50b   :  { %v493_v53 = vpop.permute.xlu0 %492 }
 0x50c   :  { %v5262_v54 = vadd.f32 %v493_v53, %v485_v50  ;;  %4551 = vtanh.f32 %v5260_v52 }
 0x50e   :  { %4553 = vtanh.f32 %v5262_v54 }
 0x516   :  { %v4552_v58 = vpop.eup %4551 }
 0x517   :  { %746 = vrot.lane.b32.xlu1 %v4552_v58, %s4935_s28 }
 0x518   :  { %v4554_v59 = vpop.eup %4553 }
 0x519   :  { %498 = vrot.lane.b32.xlu0 %v4554_v59, %s4935_s28  ;;  %v4467_v59 = vld [vmem:[%s6176_s12] sm:$0xff]  }
 0x589   :  { %v747_v60 = vpop.permute.xlu1 %746 }
 0x58a   :  { %v749_v61 = vmul.f32 %v747_v60, %v732_v40  ;;  %v4468_v60 = vld [vmem:[%s6176_s12 + $0x8] sm:$0xff]  }
 0x58b   :  { %v499_v62 = vpop.permute.xlu0 %498 }
 0x58c   :  { %v501_v63 = vmul.f32 %v499_v62, %v480_v41  ;;  %v750_v0 = vpack.c.bf16 %v749_v61, %v749_v61  ;;  %v249_v41 = vld [vmem:[%s6142_s17] sm:$0xff]  ;;  %v4471_v62 = vld [vmem:[%s6178_s4 + $0x8] sm:$0xff]  }
 0x58d   :  { %v4469_v61 = vld [vmem:[%s6178_s4] sm:$0xff]  }
 0x58e   :  { %v502_v1 = vpack.c.bf16 %v501_v63, %v501_v63  ;;  %812 = vrot.lane.b32.xlu1 %v750_v0, %s4940_s1 }
 0x590   :  { %568 = vrot.lane.b32.xlu0 %v502_v1, %s4940_s1 }
 0x600   :  { %v5289_v3 = vpop.permute.xlu1 %812 }
 0x601   :  { %4142 = vmatmul.mubr.msk.bf16.vlgmr.msra.gmra.mrb[20].mxu1 %vm268_vm1, %v5289_v3 }
 0x602   :  { %v569_v4 = vpop.permute.xlu0 %568  ;;  %4157 = vmatprep.mubr.msk.bf16.mxu1 %vm4939_vm2, %v4938_v5  ;;  %4154 = vmatpush3.bf16.msra.mxu1 %v4469_v61 }
 0x603   :  { %4118 = vmatmul.mubr.msk.bf16.vlgmr.msra.gmra.mrb[8].mxu0 %vm268_vm1, %v569_v4  ;;  %4155 = vmatprep.subr.bf16.mxu1 %v4938_v5 }
 0x604   :  { %4130 = vmatpush3.bf16.msra.mxu0 %v4465_v2  ;;  %4133 = vmatprep.mubr.msk.bf16.mxu0 %vm4939_vm2, %v4938_v5 }
 0x605   :  { %4131 = vmatprep.subr.bf16.mxu0 %v4938_v5 }
 0x606   :  { %4156 = vmatpush3.bf16.msra.mxu1 %v4471_v62 }
 0x607   :  { %4169 = vmatprep.subr.bf16.mxu1 %v4938_v5 }
 0x608   :  { %4132 = vmatpush3.bf16.msra.mxu0 %v4466_v7 }
 0x609   :  { %4145 = vmatprep.subr.bf16.mxu0 %v4938_v5 }
 0x60b   :  { %4134 = vmatmul.mubr.msk.bf16.vlgmr.msra.gmra.mrb[12].mxu0 %vm268_vm1, %v569_v4 }
 0x60c   :  { %4149 = vmatprep.mubr.msk.bf16.mxu0 %vm4939_vm2, %v4938_v5  ;;  %4146 = vmatpush3.bf16.msra.mxu0 %v4467_v59 }
 0x60d   :  { %4147 = vmatprep.subr.bf16.mxu0 %v4938_v5 }
 0x610   :  { %4148 = vmatpush3.bf16.msra.mxu0 %v4468_v60 }
 0x611   :  { %4161 = vmatprep.subr.bf16.mxu0 %v4938_v5 }
 0x6d4   :  { %v863_v8 = vpop.f32.mrb[20].mxu1 }
 0x6d5   :  { %v4143_v9 = vpop.f32.mrb[21].mxu1 }
 0x6d6   :  { %v619_v10 = vpop.f32.mrb[8].mxu0  ;;  %v866_v15 = vpop.f32.mrb[22].mxu1 }
 0x6d7   :  { %v620_v14 = vadd.f32 %v619_v10, %v5232_v6  ;;  %v4119_v17 = vpop.f32.mrb[9].mxu0  ;;  %v4144_v19 = vpop.f32.mrb[23].mxu1  ;;  %v4472_v10 = vld [vmem:[%s6171_s0 + $0x8] sm:$0xff]  }
 0x6d8   :  { %v622_v21 = vpop.f32.mrb[10].mxu0  ;;  %v4474_v17 = vld [vmem:[%s6174_s6 + $0x8] sm:$0xff]  }
 0x6d9   :  { %v632_v22 = vadd.f32 %v5306_v11, %v620_v14  ;;  %v4120_v25 = vpop.f32.mrb[11].mxu0  ;;  %v4473_v14 = vld [vmem:[%s6174_s6] sm:$0xff]  }
 0x6db   :  { %v3784_v26 = vmul.f32 -1.442695, %v632_v22 }
 0x6dd   :  { %4555 = vpow2.f32 %v3784_v26 }
 0x6de   :  { %v805_v28 = vpop.f32.mrb[12].mxu0 }
 0x6df   :  { %v864_v29 = vadd.f32 %v863_v8, %v805_v28  ;;  %v4135_v30 = vpop.f32.mrb[13].mxu0  ;;  %v4470_v8 = vld [vmem:[%s6171_s0] sm:$0xff]  }
 0x6e0   :  { %v808_v31 = vpop.f32.mrb[14].mxu0 }
 0x6e1   :  { %v876_v32 = vadd.f32 %v5243_v12, %v864_v29  ;;  %v4136_v33 = vpop.f32.mrb[15].mxu0 }
 0x6e3   :  { %v3796_v34 = vmul.f32 -1.442695, %v876_v32 }
 0x6e5   :  { %4557 = vpow2.f32 %v3796_v34 }
 0x6e6   :  { %4559 = vtanh.f32 %v632_v22 }
 0x6e7   :  { %v4556_v35 = vpop.eup %4555 }
 0x6e8   :  { %v637_v6 = vadd.f32 1.0, %v4556_v35 }
 0x6ea   :  { %4561 = vrcp.f32 %v637_v6 }
 0x6eb   :  { %4563 = vtanh.f32 %v876_v32 }
 0x6ef   :  { %v4558_v27 = vpop.eup %4557 }
 0x6f0   :  { %v881_v36 = vadd.f32 1.0, %v4558_v27  ;;  %v4560_v37 = vpop.eup %4559 }
 0x6f2   :  { %4565 = vrcp.f32 %v881_v36 }
 0x6f4   :  { %v4562_v39 = vpop.eup %4561 }
 0x6f5   :  { %v640_v40 = vsel %vm5171_vm5, %v4560_v37, %v4562_v39  ;;  %v4564_v42 = vpop.eup %4563 }
 0x6f6   :  { %647 = vrot.lane.b32.xlu0 %v640_v40, %s4935_s28 }
 0x6fa   :  { %642 = vrot.lane.b32.xlu0 %v249_v41, %s4940_s1 }
 0x6fc   :  { %v4566_v43 = vpop.eup %4565 }
 0x6fd   :  { %v884_v44 = vsel %vm5171_vm5, %v4564_v42, %v4566_v43 }
 0x6fe   :  { %887 = vrot.lane.b32.xlu1 %v884_v44, %s4935_s28  ;;  %v885_v56 = vmul.f32 %v884_v44, %v5262_v54 }
 0x768   :  { %v648_v45 = vpop.permute.xlu0 %647 }
 0x769   :  { %v650_v46 = vmul.f32 %v648_v45, %v640_v40 }
 0x76b   :  { %652 = vrot.lane.b32.xlu1 %v650_v46, %s4940_s1 }
 0x76c   :  { %v643_v50 = vpop.permute.xlu0 %642 }
 0x76d   :  { %v645_v51 = vmul.f32 %v643_v50, %v640_v40 }
 0x770   :  { %v888_v47 = vpop.permute.xlu1 %887 }
 0x771   :  { %v890_v49 = vmul.f32 %v888_v47, %v884_v44 }
 0x773   :  { %892 = vrot.lane.b32.xlu0 %v890_v49, %s4940_s1 }
 0x7dd   :  { %v653_v53 = vpop.permute.xlu1 %652 }
 0x7de   :  { %v5323_v55 = vadd.f32 %v653_v53, %v645_v51 }
 0x7e0   :  { %4567 = vtanh.f32 %v5323_v55 }
 0x7e5   :  { %v893_v48 = vpop.permute.xlu0 %892 }
 0x7e6   :  { %v5327_v57 = vadd.f32 %v893_v48, %v885_v56 }
 0x7e8   :  { %4569 = vtanh.f32 %v5327_v57 }
 0x7ea   :  { %v4568_v58 = vpop.eup %4567 }
 0x7eb   :  { %658 = vrot.lane.b32.xlu1 %v4568_v58, %s4935_s28 }
 0x7f2   :  { %v4570_v54 = vpop.eup %4569 }
 0x7f3   :  { %898 = vrot.lane.b32.xlu0 %v4570_v54, %s4935_s28 }
 0x85d   :  { %v659_v63 = vpop.permute.xlu1 %658 }
 0x85e   :  { %v5348_v0 = vmul.f32 %v659_v63, %v640_v40 }
 0x860   :  { %v907_v1 = vpack.c.bf16 %v5348_v0, %v5348_v0 }
 0x862   :  { %913 = vrot.lane.b32.xlu1 %v907_v1, %s4940_s1  ;;  %v4475_v1 = vld [vmem:[%s6175_s25] sm:$0xff]  }
 0x865   :  { %v899_v2 = vpop.permute.xlu0 %898 }
 0x866   :  { %v901_v4 = vmul.f32 %v899_v2, %v884_v44  ;;  %v4478_v2 = vld [vmem:[%s6176_s12 + $0x8] sm:$0xff]  }
 0x868   :  { %v902_v7 = vpack.c.bf16 %v901_v4, %v901_v4 }
 0x86a   :  { %971 = vrot.lane.b32.xlu0 %v902_v7, %s4940_s1 }
 0x8d4   :  { %v914_v9 = vpop.permute.xlu1 %913 }
 0x8d5   :  { %4150 = vmatmul.mubr.msk.bf16.vlgmr.msra.gmra.mrb[16].mxu0 %vm268_vm1, %v914_v9 }
 0x8d6   :  { %4162 = vmatpush3.bf16.msra.mxu0 %v4470_v8  ;;  %4165 = vmatprep.mubr.msk.bf16.mxu0 %vm4939_vm2, %v4938_v5 }
 0x8d7   :  { %4163 = vmatprep.subr.bf16.mxu0 %v4938_v5 }
 0x8da   :  { %4164 = vmatpush3.bf16.msra.mxu0 %v4472_v10 }
 0x8db   :  { %4177 = vmatprep.subr.bf16.mxu0 %v4938_v5 }
 0x8dc   :  { %v972_v15 = vpop.permute.xlu0 %971 }
 0x8dd   :  { %4158 = vmatmul.mubr.msk.bf16.vlgmr.msra.gmra.mrb[24].mxu1 %vm268_vm1, %v972_v15  ;;  %4166 = vmatmul.mubr.msk.bf16.vlgmr.msra.gmra.mrb[20].mxu0 %vm268_vm1, %v5289_v3 }
 0x8de   :  { %4170 = vmatpush3.bf16.msra.mxu1 %v4473_v14  ;;  %4173 = vmatprep.mubr.msk.bf16.mxu1 %vm4939_vm2, %v4938_v5 }
 0x8df   :  { %4171 = vmatprep.subr.bf16.mxu1 %v4938_v5  ;;  %4181 = vmatprep.mubr.msk.bf16.mxu0 %vm4939_vm2, %v4938_v5 }
 0x8e0   :  { %4178 = vmatpush3.bf16.msra.mxu0 %v4475_v1 }
 0x8e1   :  { %4179 = vmatprep.subr.bf16.mxu0 %v4938_v5 }
 0x8e2   :  { %4172 = vmatpush3.bf16.msra.mxu1 %v4474_v17 }
 0x8e3   :  { %4185 = vmatprep.subr.bf16.mxu1 %v4938_v5 }
 0x8e5   :  { %4174 = vmatmul.mubr.msk.bf16.vlgmr.msra.gmra.mrb[28].mxu1 %vm268_vm1, %v972_v15 }
 0x8e6   :  { %4189 = vmatprep.mubr.msk.bf16.mxu1 %vm4939_vm2, %v4938_v5 }
 0x9a8   :  { %v964_v3 = vpop.f32.mrb[16].mxu0 }
 0x9a9   :  { %v4151_v19 = vpop.f32.mrb[17].mxu0 }
 0x9aa   :  { %v967_v21 = vpop.f32.mrb[18].mxu0 }
 0x9ab   :  { %v4152_v22 = vpop.f32.mrb[19].mxu0 }
 0x9ac   :  { %v4480_v22 = vld [vmem:[%s6171_s0 + $0x8] sm:$0xff]  }
 0x9b0   :  { %v1022_v25 = vpop.f32.mrb[24].mxu1  ;;  %v1117_v26 = vpop.f32.mrb[20].mxu0 }
 0x9b1   :  { %v1023_v28 = vadd.f32 %v1022_v25, %v964_v3  ;;  %v1123_v29 = vadd.f32 %v1117_v26, %v5161_v18  ;;  %v4159_v30 = vpop.f32.mrb[25].mxu1  ;;  %v4167_v31 = vpop.f32.mrb[21].mxu0  ;;  %v4479_v3 = vld [vmem:[%s6171_s0] sm:$0xff]  }
 0x9b2   :  { %v1025_v32 = vpop.f32.mrb[26].mxu1  ;;  %v1120_v33 = vpop.f32.mrb[22].mxu0 }
 0x9b3   :  { %v1035_v34 = vadd.f32 %v5306_v11, %v1023_v28  ;;  %v3808_v35 = vmul.f32 -1.442695, %v1123_v29  ;;  %v4160_v6 = vpop.f32.mrb[27].mxu1  ;;  %v4168_v27 = vpop.f32.mrb[23].mxu0 }
 0x9b5   :  { %v3804_v36 = vmul.f32 -1.442695, %v1035_v34  ;;  %4571 = vpow2.f32 %v3808_v35 }
 0x9b7   :  { %4573 = vpow2.f32 %v3804_v36 }
 0x9b8   :  { %v5385_v37 = vpop.f32.mrb[28].mxu1  ;;  %4575 = vtanh.f32 %v1123_v29 }
 0x9b9   :  { %v4175_v39 = vpop.f32.mrb[29].mxu1  ;;  %4577 = vtanh.f32 %v1035_v34 }
 0x9ba   :  { %v1207_v40 = vpop.f32.mrb[30].mxu1 }
 0x9bb   :  { %v4176_v41 = vpop.f32.mrb[31].mxu1 }
 0x9bf   :  { %v4572_v42 = vpop.eup %4571 }
 0x9c0   :  { %v1128_v18 = vadd.f32 1.0, %v4572_v42 }
 0x9c1   :  { %v4574_v43 = vpop.eup %4573 }
 0x9c2   :  { %v1040_v44 = vadd.f32 1.0, %v4574_v43  ;;  %4579 = vrcp.f32 %v1128_v18  ;;  %v4576_v45 = vpop.eup %4575 }
 0x9c3   :  { %v4578_v46 = vpop.eup %4577 }
 0x9c4   :  { %4581 = vrcp.f32 %v1040_v44 }
 0x9cc   :  { %v4580_v47 = vpop.eup %4579 }
 0x9cd   :  { %v1131_v50 = vsel %vm5171_vm5, %v4576_v45, %v4580_v47 }
 0x9ce   :  { %v4582_v49 = vpop.eup %4581  ;;  %1134 = vrot.lane.b32.xlu1 %v1131_v50, %s4935_s28  ;;  %v1132_v59 = vmul.f32 %v1131_v50, %v5260_v52  ;;  %v4476_v52 = vld [vmem:[%s6176_s12] sm:$0xff]  }
 0x9cf   :  { %v1043_v51 = vsel %vm5171_vm5, %v4578_v46, %v4582_v49  ;;  %4186 = vmatpush3.bf16.msra.mxu1 %v4476_v52  ;;  %v4481_v52 = vld [vmem:[%s6178_s4] sm:$0xff]  }
 0x9d0   :  { %1046 = vrot.lane.b32.xlu0 %v1043_v51, %s4935_s28  ;;  %v1044_v54 = vmul.f32 %v1043_v51, %v5323_v55  ;;  %v4477_v55 = vld [vmem:[%s6175_s25 + $0x8] sm:$0xff]   ;;  %4187 = vmatprep.subr.bf16.mxu1 %v4938_v5 }
 0x9d1   :  { %4180 = vmatpush3.bf16.msra.mxu0 %v4477_v55 }
 0x9d2   :  { %4193 = vmatprep.subr.bf16.mxu0 %v4938_v5 }
 0x9d3   :  { %4188 = vmatpush3.bf16.msra.mxu1 %v4478_v2  ;;  %v4484_v2 = vld [vmem:[%s6175_s25] sm:$0xff]  }
 0x9d4   :  { %4201 = vmatprep.subr.bf16.mxu1 %v4938_v5 }
 0xa40   :  { %v1135_v53 = vpop.permute.xlu1 %1134 }
 0xa41   :  { %v1137_v56 = vmul.f32 %v1135_v53, %v1131_v50 }
 0xa42   :  { %v1047_v48 = vpop.permute.xlu0 %1046 }
 0xa43   :  { %v1049_v58 = vmul.f32 %v1047_v48, %v1043_v51  ;;  %1139 = vrot.lane.b32.xlu1 %v1137_v56, %s4940_s1 }
 0xa45   :  { %1051 = vrot.lane.b32.xlu0 %v1049_v58, %s4940_s1 }
 0xab5   :  { %v1140_v60 = vpop.permute.xlu1 %1139 }
 0xab6   :  { %v5397_v61 = vadd.f32 %v1140_v60, %v1132_v59 }
 0xab7   :  { %v1052_v62 = vpop.permute.xlu0 %1051 }
 0xab8   :  { %v5399_v63 = vadd.f32 %v1052_v62, %v1044_v54  ;;  %4583 = vtanh.f32 %v5397_v61 }
 0xaba   :  { %4585 = vtanh.f32 %v5399_v63 }
 0xac2   :  { %v4584_v4 = vpop.eup %4583 }
 0xac3   :  { %1145 = vrot.lane.b32.xlu1 %v4584_v4, %s4935_s28  ;;  %v4486_v4 = vld [vmem:[%s6175_s25 + $0x8] sm:$0xff]  }
 0xac4   :  { %v4586_v7 = vpop.eup %4585 }
 0xac5   :  { %1057 = vrot.lane.b32.xlu0 %v4586_v7, %s4935_s28 }
 0xb35   :  { %v1146_v8 = vpop.permute.xlu1 %1145 }
 0xb36   :  { %v1148_v9 = vmul.f32 %v1146_v8, %v1131_v50 }
 0xb37   :  { %v1058_v10 = vpop.permute.xlu0 %1057 }
 0xb38   :  { %v5421_v14 = vmul.f32 %v1058_v10, %v1043_v51  ;;  %v1149_v15 = vpack.c.bf16 %v1148_v9, %v1148_v9 }
 0xb3a   :  { %v1306_v17 = vpack.c.bf16 %v5421_v14, %v5421_v14  ;;  %1211 = vrot.lane.b32.xlu1 %v1149_v15, %s4940_s1 }
 0xb3c   :  { %1312 = vrot.lane.b32.xlu0 %v1306_v17, %s4940_s1 }
 0xbac   :  { %v1212_v19 = vpop.permute.xlu1 %1211 }
 0xbad   :  { %4182 = vmatmul.mubr.msk.bf16.vlgmr.msra.gmra.mrb[24].mxu0 %vm268_vm1, %v1212_v19 }
 0xbae   :  { %v1313_v21 = vpop.permute.xlu0 %1312  ;;  %4197 = vmatprep.mubr.msk.bf16.mxu0 %vm4939_vm2, %v4938_v5  ;;  %4194 = vmatpush3.bf16.msra.mxu0 %v4481_v52 }
 0xbaf   :  { %4190 = vmatmul.mubr.msk.bf16.vlgmr.msra.gmra.mrb[32].mxu1 %vm268_vm1, %v1313_v21  ;;  %4195 = vmatprep.subr.bf16.mxu0 %v4938_v5  ;;  %v4485_v21 = vld [vmem:[%s6174_s6 + $0x8] sm:$0xff]  }
 0xbb0   :  { %4202 = vmatpush3.bf16.msra.mxu1 %v4479_v3  ;;  %4205 = vmatprep.mubr.msk.bf16.mxu1 %vm4939_vm2, %v4938_v5  ;;  %v4483_v3 = vld [vmem:[%s6174_s6] sm:$0xff]  }
 0xbb1   :  { %4203 = vmatprep.subr.bf16.mxu1 %v4938_v5 }
 0xbb4   :  { %4204 = vmatpush3.bf16.msra.mxu1 %v4480_v22 }
 0xbb5   :  { %4217 = vmatprep.subr.bf16.mxu1 %v4938_v5 }
 0xbb7   :  { %4206 = vmatmul.mubr.msk.bf16.vlgmr.msra.gmra.mrb[36].mxu1 %vm268_vm1, %v1212_v19 }
 0xbb8   :  { %4221 = vmatprep.mubr.msk.bf16.mxu1 %vm4939_vm2, %v4938_v5  ;;  %4218 = vmatpush3.bf16.msra.mxu1 %v4484_v2  ;;  %v4489_v2 = vld [vmem:[%s6178_s4] sm:$0xff]  }
 0xbb9   :  { %4219 = vmatprep.subr.bf16.mxu1 %v4938_v5 }
 0xbbc   :  { %4220 = vmatpush3.bf16.msra.mxu1 %v4486_v4  ;;  %v4491_v4 = vld [vmem:[%s6178_s4 + $0x8] sm:$0xff]  }
 0xbbd   :  { %4233 = vmatprep.subr.bf16.mxu1 %v4938_v5 }
 0xc80   :  { %v1262_v25 = vpop.f32.mrb[24].mxu0 }
 0xc81   :  { %v1263_v26 = vadd.f32 %v1262_v25, %v5385_v37  ;;  %v4183_v28 = vpop.f32.mrb[25].mxu0 }
 0xc82   :  { %v5445_v29 = vpop.f32.mrb[32].mxu1  ;;  %v1265_v30 = vpop.f32.mrb[26].mxu0 }
 0xc83   :  { %v4191_v31 = vpop.f32.mrb[33].mxu1  ;;  %v1275_v32 = vadd.f32 %v5243_v12, %v1263_v26  ;;  %v4184_v33 = vpop.f32.mrb[27].mxu0 }
 0xc84   :  { %v1366_v34 = vpop.f32.mrb[34].mxu1 }
 0xc85   :  { %v4192_v35 = vpop.f32.mrb[35].mxu1  ;;  %v3816_v6 = vmul.f32 -1.442695, %v1275_v32 }
 0xc87   :  { %4587 = vpow2.f32 %v3816_v6 }
 0xc8a   :  { %v1516_v27 = vpop.f32.mrb[36].mxu1 }
 0xc8b   :  { %v1522_v36 = vadd.f32 %v1516_v27, %v5167_v24  ;;  %v4207_v39 = vpop.f32.mrb[37].mxu1 }
 0xc8c   :  { %v1519_v40 = vpop.f32.mrb[38].mxu1 }
 0xc8d   :  { %v3828_v41 = vmul.f32 -1.442695, %v1522_v36  ;;  %v4208_v42 = vpop.f32.mrb[39].mxu1 }
 0xc8f   :  { %4589 = vpow2.f32 %v3828_v41 }
 0xc90   :  { %4591 = vtanh.f32 %v1275_v32 }
 0xc91   :  { %v4588_v37 = vpop.eup %4587 }
 0xc92   :  { %v1280_v43 = vadd.f32 1.0, %v4588_v37 }
 0xc94   :  { %4593 = vrcp.f32 %v1280_v43 }
 0xc95   :  { %4595 = vtanh.f32 %v1522_v36 }
 0xc99   :  { %v4590_v18 = vpop.eup %4589 }
 0xc9a   :  { %v1527_v44 = vadd.f32 1.0, %v4590_v18  ;;  %v4592_v45 = vpop.eup %4591 }
 0xc9c   :  { %4597 = vrcp.f32 %v1527_v44 }
 0xc9e   :  { %v4594_v46 = vpop.eup %4593 }
 0xc9f   :  { %v1283_v47 = vsel %vm5171_vm5, %v4592_v45, %v4594_v46  ;;  %v4596_v24 = vpop.eup %4595 }
 0xca0   :  { %1286 = vrot.lane.b32.xlu1 %v1283_v47, %s4935_s28  ;;  %v1284_v58 = vmul.f32 %v1283_v47, %v5327_v57  ;;  %v4482_v57 = vld [vmem:[%s6178_s4 + $0x8] sm:$0xff]  }
 0xca1   :  { %4196 = vmatpush3.bf16.msra.mxu0 %v4482_v57 }
 0xca2   :  { %4209 = vmatprep.subr.bf16.mxu0 %v4938_v5 }
 0xca6   :  { %v4598_v49 = vpop.eup %4597 }
 0xca7   :  { %v1530_v50 = vsel %vm5171_vm5, %v4596_v24, %v4598_v49 }
 0xca8   :  { %1533 = vrot.lane.b32.xlu0 %v1530_v50, %s4935_s28  ;;  %v1531_v54 = vmul.f32 %v1530_v50, %v5397_v61 }
 0xd12   :  { %v1287_v51 = vpop.permute.xlu1 %1286 }
 0xd13   :  { %v1289_v53 = vmul.f32 %v1287_v51, %v1283_v47 }
 0xd15   :  { %1291 = vrot.lane.b32.xlu1 %v1289_v53, %s4940_s1 }
 0xd1a   :  { %v1534_v56 = vpop.permute.xlu0 %1533 }
 0xd1b   :  { %v1536_v48 = vmul.f32 %v1534_v56, %v1530_v50 }
 0xd1d   :  { %1538 = vrot.lane.b32.xlu0 %v1536_v48, %s4940_s1 }
 0xd87   :  { %v1292_v59 = vpop.permute.xlu1 %1291 }
 0xd88   :  { %v5458_v60 = vadd.f32 %v1292_v59, %v1284_v58 }
 0xd8a   :  { %4599 = vtanh.f32 %v5458_v60 }
 0xd8f   :  { %v1539_v62 = vpop.permute.xlu0 %1538 }
 0xd90   :  { %v5462_v1 = vadd.f32 %v1539_v62, %v1531_v54 }
 0xd92   :  { %4601 = vtanh.f32 %v5462_v1 }
 0xd94   :  { %v4600_v55 = vpop.eup %4599 }
 0xd95   :  { %1297 = vrot.lane.b32.xlu1 %v4600_v55, %s4935_s28 }
 0xd9c   :  { %v4602_v61 = vpop.eup %4601 }
 0xd9d   :  { %1544 = vrot.lane.b32.xlu0 %v4602_v61, %s4935_s28  ;;  %v4487_v61 = vld [vmem:[%s6176_s12] sm:$0xff]  }
 0xe07   :  { %v1298_v7 = vpop.permute.xlu1 %1297 }
 0xe08   :  { %v1300_v8 = vmul.f32 %v1298_v7, %v1283_v47 }
 0xe0a   :  { %v1301_v9 = vpack.c.bf16 %v1300_v8, %v1300_v8 }
 0xe0c   :  { %1370 = vrot.lane.b32.xlu1 %v1301_v9, %s4940_s1 }
 0xe0f   :  { %v1545_v10 = vpop.permute.xlu0 %1544 }
 0xe10   :  { %v1547_v15 = vmul.f32 %v1545_v10, %v1530_v50 }
 0xe12   :  { %v1548_v17 = vpack.c.bf16 %v1547_v15, %v1547_v15 }
 0xe14   :  { %1610 = vrot.lane.b32.xlu0 %v1548_v17, %s4940_s1 }
 0xe7e   :  { %v1371_v19 = vpop.permute.xlu1 %1370 }
 0xe7f   :  { %4198 = vmatmul.mubr.msk.bf16.vlgmr.msra.gmra.mrb[28].mxu0 %vm268_vm1, %v1371_v19 }
 0xe80   :  { %4210 = vmatpush3.bf16.msra.mxu0 %v4483_v3  ;;  %4213 = vmatprep.mubr.msk.bf16.mxu0 %vm4939_vm2, %v4938_v5  ;;  %v4490_v3 = vld [vmem:[%s6171_s0] sm:$0xff]  }
 0xe81   :  { %4211 = vmatprep.subr.bf16.mxu0 %v4938_v5 }
 0xe84   :  { %4212 = vmatpush3.bf16.msra.mxu0 %v4485_v21  ;;  %v4492_v21 = vld [vmem:[%s6171_s0 + $0x8] sm:$0xff]  }
 0xe85   :  { %4225 = vmatprep.subr.bf16.mxu0 %v4938_v5 }
 0xe86   :  { %v5495_v22 = vpop.permute.xlu0 %1610 }
 0xe87   :  { %4222 = vmatmul.mubr.msk.bf16.vlgmr.msra.gmra.mrb[40].mxu1 %vm268_vm1, %v5495_v22  ;;  %4214 = vmatmul.mubr.msk.bf16.vlgmr.msra.gmra.mrb[32].mxu0 %vm268_vm1, %v1371_v19 }
 0xe88   :  { %4237 = vmatprep.mubr.msk.bf16.mxu1 %vm4939_vm2, %v4938_v5  ;;  %4229 = vmatprep.mubr.msk.bf16.mxu0 %vm4939_vm2, %v4938_v5 }
 0xe89   :  { %4226 = vmatpush3.bf16.msra.mxu0 %v4487_v61  ;;  %4234 = vmatpush3.bf16.msra.mxu1 %v4489_v2 }
 0xe8a   :  { %4227 = vmatprep.subr.bf16.mxu0 %v4938_v5  ;;  %4235 = vmatprep.subr.bf16.mxu1 %v4938_v5 }
 0xe8d   :  { %4236 = vmatpush3.bf16.msra.mxu1 %v4491_v4  ;;  %v4495_v4 = vld [vmem:[%s6175_s25] sm:$0xff]  }
 0xe8e   :  { %4249 = vmatprep.subr.bf16.mxu1 %v4938_v5 }
 0xf52   :  { %v1421_v25 = vpop.f32.mrb[28].mxu0 }
 0xf53   :  { %v1422_v26 = vadd.f32 %v1421_v25, %v5445_v29  ;;  %v4199_v28 = vpop.f32.mrb[29].mxu0  ;;  %v4493_v25 = vld [vmem:[%s6174_s6] sm:$0xff]  }
 0xf54   :  { %v1424_v30 = vpop.f32.mrb[30].mxu0  ;;  %v4494_v28 = vld [vmem:[%s6174_s6 + $0x8] sm:$0xff]  }
 0xf55   :  { %v1434_v31 = vadd.f32 %v5306_v11, %v1422_v26  ;;  %v4200_v32 = vpop.f32.mrb[31].mxu0 }
 0xf57   :  { %v3824_v33 = vmul.f32 -1.442695, %v1434_v31 }
 0xf59   :  { %4603 = vpow2.f32 %v3824_v33 }
 0xf5a   :  { %v1661_v34 = vpop.f32.mrb[40].mxu1  ;;  %v1603_v35 = vpop.f32.mrb[32].mxu0 }
 0xf5b   :  { %v4223_v6 = vpop.f32.mrb[41].mxu1  ;;  %v1662_v27 = vadd.f32 %v1661_v34, %v1603_v35  ;;  %v4215_v36 = vpop.f32.mrb[33].mxu0 }
 0xf5c   :  { %v1664_v39 = vpop.f32.mrb[42].mxu1  ;;  %v1606_v40 = vpop.f32.mrb[34].mxu0 }
 0xf5d   :  { %v4224_v41 = vpop.f32.mrb[43].mxu1  ;;  %v1674_v42 = vadd.f32 %v5243_v12, %v1662_v27  ;;  %v4216_v37 = vpop.f32.mrb[35].mxu0 }
 0xf5f   :  { %v3836_v43 = vmul.f32 -1.442695, %v1674_v42 }
 0xf61   :  { %4605 = vpow2.f32 %v3836_v43 }
 0xf62   :  { %4607 = vtanh.f32 %v1434_v31 }
 0xf63   :  { %v4604_v29 = vpop.eup %4603 }
 0xf64   :  { %v1439_v18 = vadd.f32 1.0, %v4604_v29 }
 0xf66   :  { %4609 = vrcp.f32 %v1439_v18 }
 0xf67   :  { %4611 = vtanh.f32 %v1674_v42 }
 0xf6b   :  { %v4606_v44 = vpop.eup %4605 }
 0xf6c   :  { %v1679_v45 = vadd.f32 1.0, %v4606_v44  ;;  %v4608_v46 = vpop.eup %4607 }
 0xf6e   :  { %4613 = vrcp.f32 %v1679_v45 }
 0xf70   :  { %v4610_v47 = vpop.eup %4609 }
 0xf71   :  { %v1442_v24 = vsel %vm5171_vm5, %v4608_v46, %v4610_v47  ;;  %v4612_v49 = vpop.eup %4611 }
 0xf72   :  { %1445 = vrot.lane.b32.xlu1 %v1442_v24, %s4935_s28  ;;  %v1443_v58 = vmul.f32 %v1442_v24, %v5399_v63  ;;  %v4488_v63 = vld [vmem:[%s6176_s12 + $0x8] sm:$0xff]  }
 0xf73   :  { %4228 = vmatpush3.bf16.msra.mxu0 %v4488_v63 }
 0xf74   :  { %4241 = vmatprep.subr.bf16.mxu0 %v4938_v5 }
 0xf78   :  { %v4614_v12 = vpop.eup %4613 }
 0xf79   :  { %v1682_v50 = vsel %vm5171_vm5, %v4612_v49, %v4614_v12 }
 0xf7a   :  { %1685 = vrot.lane.b32.xlu0 %v1682_v50, %s4935_s28  ;;  %v1683_v62 = vmul.f32 %v1682_v50, %v5458_v60 }
 0xfe4   :  { %v1446_v51 = vpop.permute.xlu1 %1445 }
 0xfe5   :  { %v1448_v53 = vmul.f32 %v1446_v51, %v1442_v24 }
 0xfe7   :  { %1450 = vrot.lane.b32.xlu1 %v1448_v53, %s4940_s1 }
 0xfec   :  { %v1686_v56 = vpop.permute.xlu0 %1685 }
 0xfed   :  { %v1688_v48 = vmul.f32 %v1686_v56, %v1682_v50 }
 0xfef   :  { %1690 = vrot.lane.b32.xlu0 %v1688_v48, %s4940_s1 }
0x1059   :  { %v1451_v59 = vpop.permute.xlu1 %1450 }
0x105a   :  { %v5517_v54 = vadd.f32 %v1451_v59, %v1443_v58 }
0x105c   :  { %4615 = vtanh.f32 %v5517_v54 }
0x1061   :  { %v1691_v52 = vpop.permute.xlu0 %1690 }
0x1062   :  { %v5521_v55 = vadd.f32 %v1691_v52, %v1683_v62 }
0x1064   :  { %4617 = vtanh.f32 %v5521_v55 }
0x1066   :  { %v4616_v57 = vpop.eup %4615 }
0x1067   :  { %1456 = vrot.lane.b32.xlu1 %v4616_v57, %s4935_s28 }
0x106e   :  { %v4618_v60 = vpop.eup %4617 }
0x106f   :  { %1696 = vrot.lane.b32.xlu0 %v4618_v60, %s4935_s28 }
0x10d9   :  { %v1457_v7 = vpop.permute.xlu1 %1456 }
0x10da   :  { %v5542_v8 = vmul.f32 %v1457_v7, %v1442_v24  ;;  %v4498_v7 = vld [vmem:[%s6176_s12 + $0x8] sm:$0xff]  }
0x10dc   :  { %v1705_v9 = vpack.c.bf16 %v5542_v8, %v5542_v8 }
0x10de   :  { %1711 = vrot.lane.b32.xlu1 %v1705_v9, %s4940_s1 }
0x10e1   :  { %v1697_v10 = vpop.permute.xlu0 %1696 }
0x10e2   :  { %v1699_v15 = vmul.f32 %v1697_v10, %v1682_v50 }
0x10e4   :  { %v1700_v17 = vpack.c.bf16 %v1699_v15, %v1699_v15 }
0x10e6   :  { %1769 = vrot.lane.b32.xlu0 %v1700_v17, %s4940_s1 }
0x1150   :  { %v1712_v19 = vpop.permute.xlu1 %1711 }
0x1151   :  { %4230 = vmatmul.mubr.msk.bf16.vlgmr.msra.gmra.mrb[36].mxu0 %vm268_vm1, %v1712_v19 }
0x1152   :  { %4242 = vmatpush3.bf16.msra.mxu0 %v4490_v3  ;;  %4245 = vmatprep.mubr.msk.bf16.mxu0 %vm4939_vm2, %v4938_v5 }
0x1153   :  { %4243 = vmatprep.subr.bf16.mxu0 %v4938_v5 }
0x1156   :  { %4244 = vmatpush3.bf16.msra.mxu0 %v4492_v21 }
0x1157   :  { %4257 = vmatprep.subr.bf16.mxu0 %v4938_v5 }
0x1158   :  { %v1770_v26 = vpop.permute.xlu0 %1769 }
0x1159   :  { %4238 = vmatmul.mubr.msk.bf16.vlgmr.msra.gmra.mrb[44].mxu1 %vm268_vm1, %v1770_v26  ;;  %4246 = vmatmul.mubr.msk.bf16.vlgmr.msra.gmra.mrb[40].mxu0 %vm268_vm1, %v5495_v22 }
0x115a   :  { %4250 = vmatpush3.bf16.msra.mxu1 %v4493_v25  ;;  %4253 = vmatprep.mubr.msk.bf16.mxu1 %vm4939_vm2, %v4938_v5 }
0x115b   :  { %4251 = vmatprep.subr.bf16.mxu1 %v4938_v5  ;;  %4261 = vmatprep.mubr.msk.bf16.mxu0 %vm4939_vm2, %v4938_v5 }
0x115c   :  { %4258 = vmatpush3.bf16.msra.mxu0 %v4495_v4  ;;  %v4501_v4 = vld [vmem:[%s6178_s4] sm:$0xff]  }
0x115d   :  { %4259 = vmatprep.subr.bf16.mxu0 %v4938_v5 }
0x115e   :  { %4252 = vmatpush3.bf16.msra.mxu1 %v4494_v28 }
0x115f   :  { %4265 = vmatprep.subr.bf16.mxu1 %v4938_v5 }
0x1161   :  { %4254 = vmatmul.mubr.msk.bf16.vlgmr.msra.gmra.mrb[48].mxu1 %vm268_vm1, %v1770_v26  ;;  %v4499_v26 = vld [vmem:[%s6171_s0] sm:$0xff]  }
0x1162   :  { %4269 = vmatprep.mubr.msk.bf16.mxu1 %vm4939_vm2, %v4938_v5 }
0x1224   :  { %v1762_v22 = vpop.f32.mrb[36].mxu0 }
0x1225   :  { %v4231_v30 = vpop.f32.mrb[37].mxu0 }
0x1226   :  { %v1765_v31 = vpop.f32.mrb[38].mxu0  ;;  %v4500_v30 = vld [vmem:[%s6171_s0 + $0x8] sm:$0xff]  }
0x1227   :  { %v4232_v32 = vpop.f32.mrb[39].mxu0 }
0x1228   :  { %v5641_v32 = vld [vmem:[%s6177_s11] ss:$0 sm:$0xff] }
0x122c   :  { %v1820_v33 = vpop.f32.mrb[44].mxu1  ;;  %v1915_v34 = vpop.f32.mrb[40].mxu0 }
0x122d   :  { %v1821_v35 = vadd.f32 %v1820_v33, %v1762_v22  ;;  %v1921_v6 = vadd.f32 %v1915_v34, %v5159_v16  ;;  %v4239_v27 = vpop.f32.mrb[45].mxu1  ;;  %v4247_v36 = vpop.f32.mrb[41].mxu0 }
0x122e   :  { %v1823_v39 = vpop.f32.mrb[46].mxu1  ;;  %v1918_v40 = vpop.f32.mrb[42].mxu0 }
0x122f   :  { %v1833_v41 = vadd.f32 %v5306_v11, %v1821_v35  ;;  %v3848_v42 = vmul.f32 -1.442695, %v1921_v6  ;;  %v4240_v37 = vpop.f32.mrb[47].mxu1  ;;  %v4248_v43 = vpop.f32.mrb[43].mxu0 }
0x1231   :  { %v3844_v29 = vmul.f32 -1.442695, %v1833_v41  ;;  %4619 = vpow2.f32 %v3848_v42 }
0x1233   :  { %4621 = vpow2.f32 %v3844_v29 }
0x1234   :  { %v5579_v18 = vpop.f32.mrb[48].mxu1  ;;  %4623 = vtanh.f32 %v1921_v6 }
0x1235   :  { %v4255_v44 = vpop.f32.mrb[49].mxu1  ;;  %4625 = vtanh.f32 %v1833_v41 }
0x1236   :  { %v2005_v45 = vpop.f32.mrb[50].mxu1 }
0x1237   :  { %v4256_v46 = vpop.f32.mrb[51].mxu1 }
0x123b   :  { %v4620_v47 = vpop.eup %4619 }
0x123c   :  { %v1926_v16 = vadd.f32 1.0, %v4620_v47 }
0x123d   :  { %v4622_v24 = vpop.eup %4621 }
0x123e   :  { %v1838_v49 = vadd.f32 1.0, %v4622_v24  ;;  %4627 = vrcp.f32 %v1926_v16  ;;  %v4624_v11 = vpop.eup %4623 }
0x123f   :  { %v4626_v12 = vpop.eup %4625 }
0x1240   :  { %4629 = vrcp.f32 %v1838_v49 }
0x1248   :  { %v4628_v50 = vpop.eup %4627 }
0x1249   :  { %v1929_v53 = vsel %vm5171_vm5, %v4624_v11, %v4628_v50 }
0x124a   :  { %v4630_v51 = vpop.eup %4629  ;;  %1932 = vrot.lane.b32.xlu1 %v1929_v53, %s4935_s28  ;;  %v1930_v52 = vmul.f32 %v1929_v53, %v5462_v1  ;;  %v4496_v1 = vld [vmem:[%s6176_s12] sm:$0xff]  }
0x124b   :  { %v1841_v56 = vsel %vm5171_vm5, %v4626_v12, %v4630_v51  ;;  %4266 = vmatpush3.bf16.msra.mxu1 %v4496_v1 }
0x124c   :  { %1844 = vrot.lane.b32.xlu0 %v1841_v56, %s4935_s28  ;;  %v1842_v61 = vmul.f32 %v1841_v56, %v5517_v54  ;;  %v4497_v54 = vld [vmem:[%s6175_s25 + $0x8] sm:$0xff]   ;;  %4267 = vmatprep.subr.bf16.mxu1 %v4938_v5 }
0x124d   :  { %4260 = vmatpush3.bf16.msra.mxu0 %v4497_v54  ;;  %v4504_v54 = vld [vmem:[%s6175_s25] sm:$0xff]  }
0x124e   :  { %4273 = vmatprep.subr.bf16.mxu0 %v4938_v5 }
0x124f   :  { %4268 = vmatpush3.bf16.msra.mxu1 %v4498_v7  ;;  %v4506_v7 = vld [vmem:[%s6175_s25 + $0x8] sm:$0xff]  }
0x1250   :  { %4281 = vmatprep.subr.bf16.mxu1 %v4938_v5 }
0x12bc   :  { %v1933_v48 = vpop.permute.xlu1 %1932 }
0x12bd   :  { %v1935_v58 = vmul.f32 %v1933_v48, %v1929_v53 }
0x12be   :  { %v1845_v59 = vpop.permute.xlu0 %1844 }
0x12bf   :  { %v1847_v62 = vmul.f32 %v1845_v59, %v1841_v56  ;;  %1937 = vrot.lane.b32.xlu1 %v1935_v58, %s4940_s1 }
0x12c1   :  { %1849 = vrot.lane.b32.xlu0 %v1847_v62, %s4940_s1 }
0x1331   :  { %v1938_v57 = vpop.permute.xlu1 %1937 }
0x1332   :  { %v5591_v63 = vadd.f32 %v1938_v57, %v1930_v52 }
0x1333   :  { %v1850_v60 = vpop.permute.xlu0 %1849 }
0x1334   :  { %v5593_v2 = vadd.f32 %v1850_v60, %v1842_v61  ;;  %4631 = vtanh.f32 %v5591_v63 }
0x1336   :  { %4633 = vtanh.f32 %v5593_v2 }
0x133e   :  { %v4632_v9 = vpop.eup %4631 }
0x133f   :  { %1943 = vrot.lane.b32.xlu1 %v4632_v9, %s4935_s28 }
0x1340   :  { %v4634_v10 = vpop.eup %4633 }
0x1341   :  { %1855 = vrot.lane.b32.xlu0 %v4634_v10, %s4935_s28 }
0x13b1   :  { %v1944_v15 = vpop.permute.xlu1 %1943 }
0x13b2   :  { %v1946_v17 = vmul.f32 %v1944_v15, %v1929_v53 }
0x13b3   :  { %v1856_v3 = vpop.permute.xlu0 %1855 }
0x13b4   :  { %v5615_v19 = vmul.f32 %v1856_v3, %v1841_v56  ;;  %v1947_v21 = vpack.c.bf16 %v1946_v17, %v1946_v17 }
0x13b6   :  { %v2104_v25 = vpack.c.bf16 %v5615_v19, %v5615_v19  ;;  %2009 = vrot.lane.b32.xlu1 %v1947_v21, %s4940_s1 }
0x13b8   :  { %2110 = vrot.lane.b32.xlu0 %v2104_v25, %s4940_s1  ;;  %v4503_v25 = vld [vmem:[%s6174_s6] sm:$0xff]  }
0x1428   :  { %v2010_v28 = vpop.permute.xlu1 %2009 }
0x1429   :  { %4262 = vmatmul.mubr.msk.bf16.vlgmr.msra.gmra.mrb[44].mxu0 %vm268_vm1, %v2010_v28 }
0x142a   :  { %v2111_v22 = vpop.permute.xlu0 %2110  ;;  %4277 = vmatprep.mubr.msk.bf16.mxu0 %vm4939_vm2, %v4938_v5  ;;  %4274 = vmatpush3.bf16.msra.mxu0 %v4501_v4 }
0x142b   :  { %4270 = vmatmul.mubr.msk.bf16.vlgmr.msra.gmra.mrb[52].mxu1 %vm268_vm1, %v2111_v22  ;;  %4275 = vmatprep.subr.bf16.mxu0 %v4938_v5 }
0x142c   :  { %4282 = vmatpush3.bf16.msra.mxu1 %v4499_v26  ;;  %4285 = vmatprep.mubr.msk.bf16.mxu1 %vm4939_vm2, %v4938_v5 }
0x142d   :  { %4283 = vmatprep.subr.bf16.mxu1 %v4938_v5 }
0x1430   :  { %4284 = vmatpush3.bf16.msra.mxu1 %v4500_v30 }
0x1431   :  { %4297 = vmatprep.subr.bf16.mxu1 %v4938_v5 }
0x1433   :  { %4286 = vmatmul.mubr.msk.bf16.vlgmr.msra.gmra.mrb[56].mxu1 %vm268_vm1, %v2010_v28  ;;  %v4505_v28 = vld [vmem:[%s6174_s6 + $0x8] sm:$0xff]  }
0x1434   :  { %4301 = vmatprep.mubr.msk.bf16.mxu1 %vm4939_vm2, %v4938_v5  ;;  %4298 = vmatpush3.bf16.msra.mxu1 %v4504_v54  ;;  %v4507_v54 = vld [vmem:[%s6176_s12] sm:$0xff]  }
0x1435   :  { %4299 = vmatprep.subr.bf16.mxu1 %v4938_v5 }
0x1438   :  { %4300 = vmatpush3.bf16.msra.mxu1 %v4506_v7  ;;  %v4509_v7 = vld [vmem:[%s6178_s4] sm:$0xff]  }
0x1439   :  { %4313 = vmatprep.subr.bf16.mxu1 %v4938_v5 }
0x14fc   :  { %v2060_v31 = vpop.f32.mrb[44].mxu0 }
0x14fd   :  { %v2061_v33 = vadd.f32 %v2060_v31, %v5579_v18  ;;  %v4263_v34 = vpop.f32.mrb[45].mxu0  ;;  %v5704_v31 = vld [vmem:[#allocation10] ss:$0 sm:$0xff] }
0x14fe   :  { %v5644_v35 = vpop.f32.mrb[52].mxu1  ;;  %v2063_v6 = vpop.f32.mrb[46].mxu0 }
0x14ff   :  { %v4271_v27 = vpop.f32.mrb[53].mxu1  ;;  %v2073_v36 = vadd.f32 %v5641_v32, %v2061_v33  ;;  %v4264_v39 = vpop.f32.mrb[47].mxu0 }
0x1500   :  { %v2164_v40 = vpop.f32.mrb[54].mxu1 }
0x1501   :  { %v4272_v41 = vpop.f32.mrb[55].mxu1  ;;  %v3856_v42 = vmul.f32 -1.442695, %v2073_v36 }
0x1503   :  { %4635 = vpow2.f32 %v3856_v42 }
0x1506   :  { %v2314_v37 = vpop.f32.mrb[56].mxu1 }
0x1507   :  { %v2320_v43 = vadd.f32 %v2314_v37, %v5165_v23  ;;  %v4287_v29 = vpop.f32.mrb[57].mxu1 }
0x1508   :  { %v2317_v44 = vpop.f32.mrb[58].mxu1 }
0x1509   :  { %v3868_v45 = vmul.f32 -1.442695, %v2320_v43  ;;  %v4288_v46 = vpop.f32.mrb[59].mxu1 }
0x150b   :  { %4637 = vpow2.f32 %v3868_v45 }
0x150c   :  { %4639 = vtanh.f32 %v2073_v36 }
0x150d   :  { %v4636_v18 = vpop.eup %4635 }
0x150e   :  { %v2078_v47 = vadd.f32 1.0, %v4636_v18 }
0x1510   :  { %4641 = vrcp.f32 %v2078_v47 }
0x1511   :  { %4643 = vtanh.f32 %v2320_v43 }
0x1515   :  { %v4638_v24 = vpop.eup %4637 }
0x1516   :  { %v2325_v16 = vadd.f32 1.0, %v4638_v24  ;;  %v4640_v49 = vpop.eup %4639 }
0x1518   :  { %4645 = vrcp.f32 %v2325_v16 }
0x151a   :  { %v4642_v11 = vpop.eup %4641 }
0x151b   :  { %v2081_v12 = vsel %vm5171_vm5, %v4640_v49, %v4642_v11  ;;  %v4644_v23 = vpop.eup %4643 }
0x151c   :  { %2084 = vrot.lane.b32.xlu1 %v2081_v12, %s4935_s28  ;;  %v2082_v59 = vmul.f32 %v2081_v12, %v5521_v55  ;;  %v4502_v55 = vld [vmem:[%s6178_s4 + $0x8] sm:$0xff]  }
0x151d   :  { %4276 = vmatpush3.bf16.msra.mxu0 %v4502_v55 }
0x151e   :  { %4289 = vmatprep.subr.bf16.mxu0 %v4938_v5 }
0x1522   :  { %v4646_v50 = vpop.eup %4645 }
0x1523   :  { %v2328_v51 = vsel %vm5171_vm5, %v4644_v23, %v4646_v50 }
0x1524   :  { %2331 = vrot.lane.b32.xlu0 %v2328_v51, %s4935_s28  ;;  %v2329_v57 = vmul.f32 %v2328_v51, %v5591_v63 }
0x158e   :  { %v2085_v53 = vpop.permute.xlu1 %2084 }
0x158f   :  { %v2087_v56 = vmul.f32 %v2085_v53, %v2081_v12 }
0x1591   :  { %2089 = vrot.lane.b32.xlu1 %v2087_v56, %s4940_s1 }
0x1596   :  { %v2332_v48 = vpop.permute.xlu0 %2331 }
0x1597   :  { %v2334_v58 = vmul.f32 %v2332_v48, %v2328_v51 }
0x1599   :  { %2336 = vrot.lane.b32.xlu0 %v2334_v58, %s4940_s1 }
0x1603   :  { %v2090_v62 = vpop.permute.xlu1 %2089 }
0x1604   :  { %v5657_v52 = vadd.f32 %v2090_v62, %v2082_v59 }
0x1606   :  { %4647 = vtanh.f32 %v5657_v52 }
0x160b   :  { %v2337_v61 = vpop.permute.xlu0 %2336 }
0x160c   :  { %v5661_v60 = vadd.f32 %v2337_v61, %v2329_v57 }
0x160e   :  { %4649 = vtanh.f32 %v5661_v60 }
0x1610   :  { %v4648_v1 = vpop.eup %4647 }
0x1611   :  { %2095 = vrot.lane.b32.xlu1 %v4648_v1, %s4935_s28 }
0x1618   :  { %v4650_v63 = vpop.eup %4649 }
0x1619   :  { %2342 = vrot.lane.b32.xlu0 %v4650_v63, %s4935_s28 }
0x1683   :  { %v2096_v9 = vpop.permute.xlu1 %2095 }
0x1684   :  { %v2098_v10 = vmul.f32 %v2096_v9, %v2081_v12  ;;  %v4511_v9 = vld [vmem:[%s6178_s4 + $0x8] sm:$0xff]  }
0x1686   :  { %v2099_v15 = vpack.c.bf16 %v2098_v10, %v2098_v10 }
0x1688   :  { %2168 = vrot.lane.b32.xlu1 %v2099_v15, %s4940_s1 }
0x168b   :  { %v2343_v17 = vpop.permute.xlu0 %2342 }
0x168c   :  { %v2345_v3 = vmul.f32 %v2343_v17, %v2328_v51 }
0x168e   :  { %v2346_v21 = vpack.c.bf16 %v2345_v3, %v2345_v3 }
0x1690   :  { %2408 = vrot.lane.b32.xlu0 %v2346_v21, %s4940_s1 }
0x16fa   :  { %v2169_v26 = vpop.permute.xlu1 %2168 }
0x16fb   :  { %4278 = vmatmul.mubr.msk.bf16.vlgmr.msra.gmra.mrb[48].mxu0 %vm268_vm1, %v2169_v26 }
0x16fc   :  { %4290 = vmatpush3.bf16.msra.mxu0 %v4503_v25  ;;  %4293 = vmatprep.mubr.msk.bf16.mxu0 %vm4939_vm2, %v4938_v5 }
0x16fd   :  { %4291 = vmatprep.subr.bf16.mxu0 %v4938_v5 }
0x1700   :  { %4292 = vmatpush3.bf16.msra.mxu0 %v4505_v28 }
0x1701   :  { %4305 = vmatprep.subr.bf16.mxu0 %v4938_v5 }
0x1702   :  { %v5694_v22 = vpop.permute.xlu0 %2408 }
0x1703   :  { %4302 = vmatmul.mubr.msk.bf16.vlgmr.msra.gmra.mrb[60].mxu1 %vm268_vm1, %v5694_v22  ;;  %4294 = vmatmul.mubr.msk.bf16.vlgmr.msra.gmra.mrb[52].mxu0 %vm268_vm1, %v2169_v26  ;;  %v4510_v26 = vld [vmem:[%s6171_s0] sm:$0xff]  }
0x1704   :  { %4317 = vmatprep.mubr.msk.bf16.mxu1 %vm4939_vm2, %v4938_v5  ;;  %4309 = vmatprep.mubr.msk.bf16.mxu0 %vm4939_vm2, %v4938_v5 }
0x1705   :  { %4306 = vmatpush3.bf16.msra.mxu0 %v4507_v54  ;;  %4314 = vmatpush3.bf16.msra.mxu1 %v4509_v7 }
0x1706   :  { %4307 = vmatprep.subr.bf16.mxu0 %v4938_v5  ;;  %4315 = vmatprep.subr.bf16.mxu1 %v4938_v5 }
0x1709   :  { %4316 = vmatpush3.bf16.msra.mxu1 %v4511_v9 }
0x170a   :  { %4329 = vmatprep.subr.bf16.mxu1 %v4938_v5 }
0x17ce   :  { %v2219_v30 = vpop.f32.mrb[48].mxu0 }
0x17cf   :  { %v2220_v33 = vadd.f32 %v2219_v30, %v5644_v35  ;;  %v4279_v34 = vpop.f32.mrb[49].mxu0  ;;  %v4512_v30 = vld [vmem:[%s6171_s0 + $0x8] sm:$0xff]  }
0x17d0   :  { %v2222_v6 = vpop.f32.mrb[50].mxu0 }
0x17d1   :  { %v2232_v27 = vadd.f32 %v5704_v31, %v2220_v33  ;;  %v4280_v36 = vpop.f32.mrb[51].mxu0  ;;  %v4513_v33 = vld [vmem:[%s6174_s6] sm:$0xff]   ;;  %v4514_v6 = vld [vmem:[%s6174_s6 + $0x8] sm:$0xff]  }
0x17d3   :  { %v3864_v39 = vmul.f32 -1.442695, %v2232_v27 }
0x17d5   :  { %4651 = vpow2.f32 %v3864_v39 }
0x17d6   :  { %v2459_v40 = vpop.f32.mrb[60].mxu1  ;;  %v2401_v41 = vpop.f32.mrb[52].mxu0 }
0x17d7   :  { %v4303_v42 = vpop.f32.mrb[61].mxu1  ;;  %v2460_v37 = vadd.f32 %v2459_v40, %v2401_v41  ;;  %v4295_v43 = vpop.f32.mrb[53].mxu0 }
0x17d8   :  { %v2462_v29 = vpop.f32.mrb[62].mxu1  ;;  %v2404_v44 = vpop.f32.mrb[54].mxu0 }
0x17d9   :  { %v4304_v45 = vpop.f32.mrb[63].mxu1  ;;  %v2472_v46 = vadd.f32 %v5641_v32, %v2460_v37  ;;  %v4296_v18 = vpop.f32.mrb[55].mxu0 }
0x17db   :  { %v3876_v47 = vmul.f32 -1.442695, %v2472_v46 }
0x17dd   :  { %4653 = vpow2.f32 %v3876_v47 }
0x17de   :  { %4655 = vtanh.f32 %v2232_v27 }
0x17df   :  { %v4652_v35 = vpop.eup %4651 }
0x17e0   :  { %v2237_v24 = vadd.f32 1.0, %v4652_v35 }
0x17e2   :  { %4657 = vrcp.f32 %v2237_v24 }
0x17e3   :  { %4659 = vtanh.f32 %v2472_v46 }
0x17e7   :  { %v4654_v16 = vpop.eup %4653 }
0x17e8   :  { %v2477_v49 = vadd.f32 1.0, %v4654_v16  ;;  %v4656_v11 = vpop.eup %4655 }
0x17ea   :  { %4661 = vrcp.f32 %v2477_v49 }
0x17ec   :  { %v4658_v12 = vpop.eup %4657 }
0x17ed   :  { %v2240_v23 = vsel %vm5171_vm5, %v4656_v11, %v4658_v12  ;;  %v4660_v50 = vpop.eup %4659 }
0x17ee   :  { %2243 = vrot.lane.b32.xlu1 %v2240_v23, %s4935_s28  ;;  %v2241_v62 = vmul.f32 %v2240_v23, %v5593_v2  ;;  %v4508_v2 = vld [vmem:[%s6176_s12 + $0x8] sm:$0xff]  }
0x17ef   :  { %4308 = vmatpush3.bf16.msra.mxu0 %v4508_v2 }
0x17f0   :  { %4321 = vmatprep.subr.bf16.mxu0 %v4938_v5 }
0x17f4   :  { %v4662_v51 = vpop.eup %4661 }
0x17f5   :  { %v2480_v53 = vsel %vm5171_vm5, %v4660_v50, %v4662_v51 }
0x17f6   :  { %2483 = vrot.lane.b32.xlu0 %v2480_v53, %s4935_s28  ;;  %v2481_v4 = vmul.f32 %v2480_v53, %v5657_v52 }
0x1860   :  { %v2244_v56 = vpop.permute.xlu1 %2243 }
0x1861   :  { %v2246_v48 = vmul.f32 %v2244_v56, %v2240_v23 }
0x1863   :  { %2248 = vrot.lane.b32.xlu1 %v2246_v48, %s4940_s1 }
0x1868   :  { %v2484_v58 = vpop.permute.xlu0 %2483 }
0x1869   :  { %v2486_v59 = vmul.f32 %v2484_v58, %v2480_v53 }
0x186b   :  { %2488 = vrot.lane.b32.xlu0 %v2486_v59, %s4940_s1 }
0x18d5   :  { %v2249_v57 = vpop.permute.xlu1 %2248 }
0x18d6   :  { %v5718_v61 = vadd.f32 %v2249_v57, %v2241_v62 }
0x18d8   :  { %4663 = vtanh.f32 %v5718_v61 }
0x18dd   :  { %v2489_v1 = vpop.permute.xlu0 %2488 }
0x18de   :  { %v5722_v55 = vadd.f32 %v2489_v1, %v2481_v4 }
0x18e0   :  { %4665 = vtanh.f32 %v5722_v55 }
0x18e2   :  { %v4664_v63 = vpop.eup %4663 }
0x18e3   :  { %2254 = vrot.lane.b32.xlu1 %v4664_v63, %s4935_s28 }
0x18ea   :  { %v4666_v52 = vpop.eup %4665 }
0x18eb   :  { %2494 = vrot.lane.b32.xlu0 %v4666_v52, %s4935_s28 }
0x1955   :  { %v2255_v10 = vpop.permute.xlu1 %2254 }
0x1956   :  { %v5743_v15 = vmul.f32 %v2255_v10, %v2240_v23 }
0x1958   :  { %v2503_v17 = vpack.c.bf16 %v5743_v15, %v5743_v15 }
0x195a   :  { %2509 = vrot.lane.b32.xlu1 %v2503_v17, %s4940_s1  ;;  %v4515_v17 = vld [vmem:[%s6175_s25] sm:$0xff]  }
0x195d   :  { %v2495_v3 = vpop.permute.xlu0 %2494 }
0x195e   :  { %v2497_v21 = vmul.f32 %v2495_v3, %v2480_v53  ;;  %v4518_v3 = vld [vmem:[%s6176_s12 + $0x8] sm:$0xff]  }
0x1960   :  { %v2498_v25 = vpack.c.bf16 %v2497_v21, %v2497_v21 }
0x1962   :  { %2567 = vrot.lane.b32.xlu0 %v2498_v25, %s4940_s1 }
0x19cc   :  { %v2510_v28 = vpop.permute.xlu1 %2509 }
0x19cd   :  { %4310 = vmatmul.mubr.msk.bf16.vlgmr.msra.gmra.mrb[56].mxu0 %vm268_vm1, %v2510_v28 }
0x19ce   :  { %4322 = vmatpush3.bf16.msra.mxu0 %v4510_v26  ;;  %4325 = vmatprep.mubr.msk.bf16.mxu0 %vm4939_vm2, %v4938_v5 }
0x19cf   :  { %4323 = vmatprep.subr.bf16.mxu0 %v4938_v5 }
0x19d2   :  { %4324 = vmatpush3.bf16.msra.mxu0 %v4512_v30 }
0x19d3   :  { %4337 = vmatprep.subr.bf16.mxu0 %v4938_v5 }
0x19d4   :  { %v2568_v34 = vpop.permute.xlu0 %2567 }
0x19d5   :  { %4318 = vmatmul.mubr.msk.bf16.vlgmr.msra.gmra.mrb[64].mxu1 %vm268_vm1, %v2568_v34  ;;  %4326 = vmatmul.mubr.msk.bf16.vlgmr.msra.gmra.mrb[60].mxu0 %vm268_vm1, %v5694_v22 }
0x19d6   :  { %4330 = vmatpush3.bf16.msra.mxu1 %v4513_v33  ;;  %4333 = vmatprep.mubr.msk.bf16.mxu1 %vm4939_vm2, %v4938_v5 }
0x19d7   :  { %4331 = vmatprep.subr.bf16.mxu1 %v4938_v5  ;;  %4341 = vmatprep.mubr.msk.bf16.mxu0 %vm4939_vm2, %v4938_v5 }
0x19d8   :  { %4338 = vmatpush3.bf16.msra.mxu0 %v4515_v17 }
0x19d9   :  { %4339 = vmatprep.subr.bf16.mxu0 %v4938_v5 }
0x19da   :  { %4332 = vmatpush3.bf16.msra.mxu1 %v4514_v6 }
0x19db   :  { %4345 = vmatprep.subr.bf16.mxu1 %v4938_v5 }
0x19dd   :  { %4334 = vmatmul.mubr.msk.bf16.vlgmr.msra.gmra.mrb[68].mxu1 %vm268_vm1, %v2568_v34 }
0x19de   :  { %4349 = vmatprep.mubr.msk.bf16.mxu1 %vm4939_vm2, %v4938_v5 }
0x1aa0   :  { %v2560_v22 = vpop.f32.mrb[56].mxu0 }
0x1aa1   :  { %v4311_v27 = vpop.f32.mrb[57].mxu0 }
0x1aa2   :  { %v2563_v36 = vpop.f32.mrb[58].mxu0 }
0x1aa3   :  { %v4312_v39 = vpop.f32.mrb[59].mxu0 }
0x1aa4   :  { %v4520_v39 = vld [vmem:[%s6171_s0 + $0x8] sm:$0xff]  }
0x1aa8   :  { %v2618_v40 = vpop.f32.mrb[64].mxu1  ;;  %v2713_v41 = vpop.f32.mrb[60].mxu0 }
0x1aa9   :  { %v2619_v42 = vadd.f32 %v2618_v40, %v2560_v22  ;;  %v2719_v37 = vadd.f32 %v2713_v41, %v5157_v13  ;;  %v4319_v43 = vpop.f32.mrb[65].mxu1  ;;  %v4327_v29 = vpop.f32.mrb[61].mxu0  ;;  %v4519_v22 = vld [vmem:[%s6171_s0] sm:$0xff]  }
0x1aaa   :  { %v2621_v44 = vpop.f32.mrb[66].mxu1  ;;  %v2716_v45 = vpop.f32.mrb[62].mxu0 }
0x1aab   :  { %v2631_v46 = vadd.f32 %v5704_v31, %v2619_v42  ;;  %v3888_v18 = vmul.f32 -1.442695, %v2719_v37  ;;  %v4320_v47 = vpop.f32.mrb[67].mxu1  ;;  %v4328_v35 = vpop.f32.mrb[63].mxu0 }
0x1aad   :  { %v3884_v24 = vmul.f32 -1.442695, %v2631_v46  ;;  %4667 = vpow2.f32 %v3888_v18 }
0x1aaf   :  { %4669 = vpow2.f32 %v3884_v24 }
0x1ab0   :  { %v5780_v16 = vpop.f32.mrb[68].mxu1  ;;  %4671 = vtanh.f32 %v2719_v37 }
0x1ab1   :  { %v4335_v49 = vpop.f32.mrb[69].mxu1  ;;  %4673 = vtanh.f32 %v2631_v46 }
0x1ab2   :  { %v2803_v11 = vpop.f32.mrb[70].mxu1 }
0x1ab3   :  { %v4336_v12 = vpop.f32.mrb[71].mxu1 }
0x1ab7   :  { %v4668_v23 = vpop.eup %4667 }
0x1ab8   :  { %v2724_v13 = vadd.f32 1.0, %v4668_v23 }
0x1ab9   :  { %v4670_v50 = vpop.eup %4669 }
0x1aba   :  { %v2636_v51 = vadd.f32 1.0, %v4670_v50  ;;  %4675 = vrcp.f32 %v2724_v13  ;;  %v4672_v53 = vpop.eup %4671 }
0x1abb   :  { %v4674_v56 = vpop.eup %4673 }
0x1abc   :  { %4677 = vrcp.f32 %v2636_v51 }
0x1ac4   :  { %v4676_v48 = vpop.eup %4675 }
0x1ac5   :  { %v2727_v59 = vsel %vm5171_vm5, %v4672_v53, %v4676_v48 }
0x1ac6   :  { %v4678_v58 = vpop.eup %4677  ;;  %2730 = vrot.lane.b32.xlu1 %v2727_v59, %s4935_s28  ;;  %v2728_v54 = vmul.f32 %v2727_v59, %v5661_v60  ;;  %v4516_v60 = vld [vmem:[%s6176_s12] sm:$0xff]  }
0x1ac7   :  { %v2639_v62 = vsel %vm5171_vm5, %v4674_v56, %v4678_v58  ;;  %4346 = vmatpush3.bf16.msra.mxu1 %v4516_v60  ;;  %v4521_v60 = vld [vmem:[%s6178_s4] sm:$0xff]  }
0x1ac8   :  { %2642 = vrot.lane.b32.xlu0 %v2639_v62, %s4935_s28  ;;  %v2640_v52 = vmul.f32 %v2639_v62, %v5718_v61  ;;  %v4517_v61 = vld [vmem:[%s6175_s25 + $0x8] sm:$0xff]   ;;  %4347 = vmatprep.subr.bf16.mxu1 %v4938_v5 }
0x1ac9   :  { %4340 = vmatpush3.bf16.msra.mxu0 %v4517_v61 }
0x1aca   :  { %4353 = vmatprep.subr.bf16.mxu0 %v4938_v5 }
0x1acb   :  { %4348 = vmatpush3.bf16.msra.mxu1 %v4518_v3  ;;  %v4524_v3 = vld [vmem:[%s6175_s25] sm:$0xff]  }
0x1acc   :  { %4361 = vmatprep.subr.bf16.mxu1 %v4938_v5 }
0x1b38   :  { %v2731_v57 = vpop.permute.xlu1 %2730 }
0x1b39   :  { %v2733_v4 = vmul.f32 %v2731_v57, %v2727_v59 }
0x1b3a   :  { %v2643_v1 = vpop.permute.xlu0 %2642 }
0x1b3b   :  { %v2645_v63 = vmul.f32 %v2643_v1, %v2639_v62  ;;  %2735 = vrot.lane.b32.xlu1 %v2733_v4, %s4940_s1 }
0x1b3d   :  { %2647 = vrot.lane.b32.xlu0 %v2645_v63, %s4940_s1 }
0x1bad   :  { %v2736_v2 = vpop.permute.xlu1 %2735 }
0x1bae   :  { %v5792_v7 = vadd.f32 %v2736_v2, %v2728_v54 }
0x1baf   :  { %v2648_v9 = vpop.permute.xlu0 %2647 }
0x1bb0   :  { %v5794_v10 = vadd.f32 %v2648_v9, %v2640_v52  ;;  %4679 = vtanh.f32 %v5792_v7 }
0x1bb2   :  { %4681 = vtanh.f32 %v5794_v10 }
0x1bba   :  { %v4680_v21 = vpop.eup %4679 }
0x1bbb   :  { %2741 = vrot.lane.b32.xlu1 %v4680_v21, %s4935_s28  ;;  %v4526_v21 = vld [vmem:[%s6175_s25 + $0x8] sm:$0xff]  }
0x1bbc   :  { %v4682_v25 = vpop.eup %4681 }
0x1bbd   :  { %2653 = vrot.lane.b32.xlu0 %v4682_v25, %s4935_s28 }
0x1c2d   :  { %v2742_v26 = vpop.permute.xlu1 %2741 }
0x1c2e   :  { %v2744_v28 = vmul.f32 %v2742_v26, %v2727_v59 }
0x1c2f   :  { %v2654_v30 = vpop.permute.xlu0 %2653 }
0x1c30   :  { %v5816_v33 = vmul.f32 %v2654_v30, %v2639_v62  ;;  %v2745_v34 = vpack.c.bf16 %v2744_v28, %v2744_v28 }
0x1c32   :  { %v2902_v6 = vpack.c.bf16 %v5816_v33, %v5816_v33  ;;  %2807 = vrot.lane.b32.xlu1 %v2745_v34, %s4940_s1 }
0x1c34   :  { %2908 = vrot.lane.b32.xlu0 %v2902_v6, %s4940_s1 }
0x1ca4   :  { %v2808_v27 = vpop.permute.xlu1 %2807 }
0x1ca5   :  { %4342 = vmatmul.mubr.msk.bf16.vlgmr.msra.gmra.mrb[64].mxu0 %vm268_vm1, %v2808_v27 }
0x1ca6   :  { %v2909_v36 = vpop.permute.xlu0 %2908  ;;  %4357 = vmatprep.mubr.msk.bf16.mxu0 %vm4939_vm2, %v4938_v5  ;;  %4354 = vmatpush3.bf16.msra.mxu0 %v4521_v60 }
0x1ca7   :  { %4350 = vmatmul.mubr.msk.bf16.vlgmr.msra.gmra.mrb[72].mxu1 %vm268_vm1, %v2909_v36  ;;  %4355 = vmatprep.subr.bf16.mxu0 %v4938_v5  ;;  %v4525_v36 = vld [vmem:[%s6174_s6 + $0x8] sm:$0xff]  }
0x1ca8   :  { %4362 = vmatpush3.bf16.msra.mxu1 %v4519_v22  ;;  %4365 = vmatprep.mubr.msk.bf16.mxu1 %vm4939_vm2, %v4938_v5  ;;  %v4523_v22 = vld [vmem:[%s6174_s6] sm:$0xff]  }
0x1ca9   :  { %4363 = vmatprep.subr.bf16.mxu1 %v4938_v5 }
0x1cac   :  { %4364 = vmatpush3.bf16.msra.mxu1 %v4520_v39 }
0x1cad   :  { %4377 = vmatprep.subr.bf16.mxu1 %v4938_v5 }
0x1caf   :  { %4366 = vmatmul.mubr.msk.bf16.vlgmr.msra.gmra.mrb[76].mxu1 %vm268_vm1, %v2808_v27 }
0x1cb0   :  { %4381 = vmatprep.mubr.msk.bf16.mxu1 %vm4939_vm2, %v4938_v5  ;;  %4378 = vmatpush3.bf16.msra.mxu1 %v4524_v3  ;;  %v4529_v3 = vld [vmem:[%s6178_s4] sm:$0xff]  }
0x1cb1   :  { %4379 = vmatprep.subr.bf16.mxu1 %v4938_v5 }
0x1cb4   :  { %4380 = vmatpush3.bf16.msra.mxu1 %v4526_v21  ;;  %v4530_v21 = vld [vmem:[%s6178_s4 + $0x8] sm:$0xff]  }
0x1cb5   :  { %4393 = vmatprep.subr.bf16.mxu1 %v4938_v5 }
0x1d78   :  { %v2858_v40 = vpop.f32.mrb[64].mxu0 }
0x1d79   :  { %v2859_v41 = vadd.f32 %v2858_v40, %v5780_v16  ;;  %v4343_v42 = vpop.f32.mrb[65].mxu0 }
0x1d7a   :  { %v5840_v37 = vpop.f32.mrb[72].mxu1  ;;  %v2861_v43 = vpop.f32.mrb[66].mxu0 }
0x1d7b   :  { %v4351_v29 = vpop.f32.mrb[73].mxu1  ;;  %v2871_v44 = vadd.f32 %v5641_v32, %v2859_v41  ;;  %v4344_v45 = vpop.f32.mrb[67].mxu0 }
0x1d7c   :  { %v2962_v46 = vpop.f32.mrb[74].mxu1 }
0x1d7d   :  { %v4352_v18 = vpop.f32.mrb[75].mxu1  ;;  %v3896_v47 = vmul.f32 -1.442695, %v2871_v44 }
0x1d7f   :  { %4683 = vpow2.f32 %v3896_v47 }
0x1d82   :  { %v3112_v35 = vpop.f32.mrb[76].mxu1 }
0x1d83   :  { %v3118_v24 = vadd.f32 %v3112_v35, %v5163_v20  ;;  %v4367_v49 = vpop.f32.mrb[77].mxu1 }
0x1d84   :  { %v3115_v11 = vpop.f32.mrb[78].mxu1 }
0x1d85   :  { %v3908_v12 = vmul.f32 -1.442695, %v3118_v24  ;;  %v4368_v23 = vpop.f32.mrb[79].mxu1 }
0x1d87   :  { %4685 = vpow2.f32 %v3908_v12 }
0x1d88   :  { %4687 = vtanh.f32 %v2871_v44 }
0x1d89   :  { %v4684_v16 = vpop.eup %4683 }
0x1d8a   :  { %v2876_v50 = vadd.f32 1.0, %v4684_v16 }
0x1d8c   :  { %4689 = vrcp.f32 %v2876_v50 }
0x1d8d   :  { %4691 = vtanh.f32 %v3118_v24 }
0x1d91   :  { %v4686_v13 = vpop.eup %4685 }
0x1d92   :  { %v3123_v51 = vadd.f32 1.0, %v4686_v13  ;;  %v4688_v53 = vpop.eup %4687 }
0x1d94   :  { %4693 = vrcp.f32 %v3123_v51 }
0x1d96   :  { %v4690_v56 = vpop.eup %4689 }
0x1d97   :  { %v2879_v48 = vsel %vm5171_vm5, %v4688_v53, %v4690_v56  ;;  %v4692_v20 = vpop.eup %4691 }
0x1d98   :  { %2882 = vrot.lane.b32.xlu1 %v2879_v48, %s4935_s28  ;;  %v2880_v63 = vmul.f32 %v2879_v48, %v5722_v55  ;;  %v4522_v55 = vld [vmem:[%s6178_s4 + $0x8] sm:$0xff]  }
0x1d99   :  { %4356 = vmatpush3.bf16.msra.mxu0 %v4522_v55 }
0x1d9a   :  { %4369 = vmatprep.subr.bf16.mxu0 %v4938_v5 }
0x1d9e   :  { %v4694_v58 = vpop.eup %4693 }
0x1d9f   :  { %v3126_v59 = vsel %vm5171_vm5, %v4692_v20, %v4694_v58 }
0x1da0   :  { %3129 = vrot.lane.b32.xlu0 %v3126_v59, %s4935_s28  ;;  %v3127_v52 = vmul.f32 %v3126_v59, %v5792_v7 }
0x1e0a   :  { %v2883_v62 = vpop.permute.xlu1 %2882 }
0x1e0b   :  { %v2885_v57 = vmul.f32 %v2883_v62, %v2879_v48 }
0x1e0d   :  { %2887 = vrot.lane.b32.xlu1 %v2885_v57, %s4940_s1 }
0x1e12   :  { %v3130_v4 = vpop.permute.xlu0 %3129 }
0x1e13   :  { %v3132_v1 = vmul.f32 %v3130_v4, %v3126_v59 }
0x1e15   :  { %3134 = vrot.lane.b32.xlu0 %v3132_v1, %s4940_s1 }
0x1e7f   :  { %v2888_v54 = vpop.permute.xlu1 %2887 }
0x1e80   :  { %v5853_v2 = vadd.f32 %v2888_v54, %v2880_v63 }
0x1e82   :  { %4695 = vtanh.f32 %v5853_v2 }
0x1e87   :  { %v3135_v9 = vpop.permute.xlu0 %3134 }
0x1e88   :  { %v5857_v17 = vadd.f32 %v3135_v9, %v3127_v52 }
0x1e8a   :  { %4697 = vtanh.f32 %v5857_v17 }
0x1e8c   :  { %v4696_v61 = vpop.eup %4695 }
0x1e8d   :  { %2893 = vrot.lane.b32.xlu1 %v4696_v61, %s4935_s28 }
0x1e94   :  { %v4698_v7 = vpop.eup %4697 }
0x1e95   :  { %3140 = vrot.lane.b32.xlu0 %v4698_v7, %s4935_s28  ;;  %v4527_v7 = vld [vmem:[%s6176_s12] sm:$0xff]  }
0x1eff   :  { %v2894_v25 = vpop.permute.xlu1 %2893 }
0x1f00   :  { %v2896_v26 = vmul.f32 %v2894_v25, %v2879_v48 }
0x1f02   :  { %v2897_v28 = vpack.c.bf16 %v2896_v26, %v2896_v26 }
0x1f04   :  { %2966 = vrot.lane.b32.xlu1 %v2897_v28, %s4940_s1 }
0x1f07   :  { %v3141_v30 = vpop.permute.xlu0 %3140 }
0x1f08   :  { %v5879_v34 = vmul.f32 %v3141_v30, %v3126_v59 }
0x1f0a   :  { %v3144_v6 = vpack.c.bf16 %v5879_v34, %v5879_v34 }
0x1f0c   :  { %3206 = vrot.lane.b32.xlu0 %v3144_v6, %s4940_s1 }
0x1f76   :  { %v2967_v27 = vpop.permute.xlu1 %2966 }
0x1f77   :  { %4358 = vmatmul.mubr.msk.bf16.vlgmr.msra.gmra.mrb[68].mxu0 %vm268_vm1, %v2967_v27 }
0x1f78   :  { %4370 = vmatpush3.bf16.msra.mxu0 %v4523_v22  ;;  %4373 = vmatprep.mubr.msk.bf16.mxu0 %vm4939_vm2, %v4938_v5 }
0x1f79   :  { %4371 = vmatprep.subr.bf16.mxu0 %v4938_v5 }
0x1f7c   :  { %4372 = vmatpush3.bf16.msra.mxu0 %v4525_v36 }
0x1f7d   :  { %4385 = vmatprep.subr.bf16.mxu0 %v4938_v5 }
0x1f7e   :  { %v3207_v39 = vpop.permute.xlu0 %3206 }
0x1f7f   :  { %4382 = vmatmul.mubr.msk.bf16.vlgmr.msra.gmra.mrb[80].mxu1 %vm268_vm1, %v3207_v39  ;;  %4374 = vmatmul.mubr.msk.bf16.vlgmr.msra.gmra.mrb[72].mxu0 %vm268_vm1, %v2967_v27 }
0x1f80   :  { %4397 = vmatprep.mubr.msk.bf16.mxu1 %vm4939_vm2, %v4938_v5  ;;  %4389 = vmatprep.mubr.msk.bf16.mxu0 %vm4939_vm2, %v4938_v5 }
0x1f81   :  { %4386 = vmatpush3.bf16.msra.mxu0 %v4527_v7  ;;  %4394 = vmatpush3.bf16.msra.mxu1 %v4529_v3 }
0x1f82   :  { %4387 = vmatprep.subr.bf16.mxu0 %v4938_v5  ;;  %4395 = vmatprep.subr.bf16.mxu1 %v4938_v5 }
0x1f85   :  { %4396 = vmatpush3.bf16.msra.mxu1 %v4530_v21 }
0x204a   :  { %v3017_v40 = vpop.f32.mrb[68].mxu0 }
0x204b   :  { %v3018_v41 = vadd.f32 %v3017_v40, %v5840_v37  ;;  %v4359_v42 = vpop.f32.mrb[69].mxu0 }
0x204c   :  { %v3020_v43 = vpop.f32.mrb[70].mxu0 }
0x204d   :  { %v3030_v29 = vadd.f32 %v5704_v31, %v3018_v41  ;;  %v4360_v44 = vpop.f32.mrb[71].mxu0 }
0x204f   :  { %v3904_v45 = vmul.f32 -1.442695, %v3030_v29 }
0x2051   :  { %4699 = vpow2.f32 %v3904_v45 }
0x2052   :  { %v3257_v46 = vpop.f32.mrb[80].mxu1  ;;  %v3199_v18 = vpop.f32.mrb[72].mxu0 }
0x2053   :  { %v4383_v47 = vpop.f32.mrb[81].mxu1  ;;  %v3258_v35 = vadd.f32 %v3257_v46, %v3199_v18  ;;  %v4375_v24 = vpop.f32.mrb[73].mxu0 }
0x2054   :  { %v3260_v49 = vpop.f32.mrb[82].mxu1  ;;  %v3202_v11 = vpop.f32.mrb[74].mxu0 }
0x2055   :  { %v4384_v12 = vpop.f32.mrb[83].mxu1  ;;  %v3270_v23 = vadd.f32 %v5641_v32, %v3258_v35  ;;  %v4376_v16 = vpop.f32.mrb[75].mxu0 }
0x2057   :  { %v3916_v50 = vmul.f32 -1.442695, %v3270_v23 }
0x2059   :  { %4701 = vpow2.f32 %v3916_v50 }
0x205a   :  { %4703 = vtanh.f32 %v3030_v29 }
0x205b   :  { %v4700_v37 = vpop.eup %4699 }
0x205c   :  { %v3035_v13 = vadd.f32 1.0, %v4700_v37 }
0x205e   :  { %4705 = vrcp.f32 %v3035_v13 }
0x205f   :  { %4707 = vtanh.f32 %v3270_v23 }
0x2063   :  { %v4702_v51 = vpop.eup %4701 }
0x2064   :  { %v3275_v53 = vadd.f32 1.0, %v4702_v51  ;;  %v4704_v56 = vpop.eup %4703 }
0x2066   :  { %4709 = vrcp.f32 %v3275_v53 }
0x2068   :  { %v4706_v48 = vpop.eup %4705 }
0x2069   :  { %v3038_v20 = vsel %vm5171_vm5, %v4704_v56, %v4706_v48  ;;  %v4708_v58 = vpop.eup %4707 }
0x206a   :  { %3041 = vrot.lane.b32.xlu1 %v3038_v20, %s4935_s28  ;;  %v3039_v63 = vmul.f32 %v3038_v20, %v5794_v10  ;;  %v4528_v10 = vld [vmem:[%s6176_s12 + $0x8] sm:$0xff]   ;;  %s4941_s12 = smov 96  }
0x206b   :  { %4388 = vmatpush3.bf16.msra.mxu0 %v4528_v10 }
0x2070   :  { %v4710_v32 = vpop.eup %4709 }
0x2071   :  { %v3278_v59 = vsel %vm5171_vm5, %v4708_v58, %v4710_v32 }
0x2072   :  { %3281 = vrot.lane.b32.xlu0 %v3278_v59, %s4935_s28  ;;  %v3279_v9 = vmul.f32 %v3278_v59, %v5853_v2 }
0x20dc   :  { %v3042_v62 = vpop.permute.xlu1 %3041 }
0x20dd   :  { %v3044_v57 = vmul.f32 %v3042_v62, %v3038_v20 }
0x20df   :  { %3046 = vrot.lane.b32.xlu1 %v3044_v57, %s4940_s1 }
0x20e4   :  { %v3282_v4 = vpop.permute.xlu0 %3281 }
0x20e5   :  { %v3284_v1 = vmul.f32 %v3282_v4, %v3278_v59 }
0x20e7   :  { %3286 = vrot.lane.b32.xlu0 %v3284_v1, %s4940_s1 }
0x2151   :  { %v3047_v54 = vpop.permute.xlu1 %3046 }
0x2152   :  { %v3049_v52 = vadd.f32 %v3047_v54, %v3039_v63 }
0x2154   :  { %4711 = vtanh.f32 %v3049_v52 }
0x2159   :  { %v3287_v60 = vpop.permute.xlu0 %3286 }
0x215a   :  { %v5914_v61 = vadd.f32 %v3287_v60, %v3279_v9 }
0x215c   :  { %4713 = vtanh.f32 %v5914_v61 }
0x215e   :  { %v4712_v55 = vpop.eup %4711 }
0x215f   :  { %3052 = vrot.lane.b32.xlu1 %v4712_v55, %s4935_s28 }
0x2166   :  { %v4714_v2 = vpop.eup %4713 }
0x2167   :  { %3292 = vrot.lane.b32.xlu0 %v4714_v2, %s4935_s28 }
0x21d1   :  { %v3053_v25 = vpop.permute.xlu1 %3052 }
0x21d2   :  { %v3055_v26 = vmul.f32 %v3053_v25, %v3038_v20 }
0x21d4   :  { %v3301_v28 = vpack.c.bf16 %v3055_v26, %v3055_v26 }
0x21d6   :  { %3307 = vrot.lane.b32.xlu1 %v3301_v28, %s4940_s1 }
0x21d9   :  { %v3293_v30 = vpop.permute.xlu0 %3292 }
0x21da   :  { %v5934_v6 = vmul.f32 %v3293_v30, %v3278_v59 }
0x21dc   :  { %v3296_v22 = vpack.c.bf16 %v5934_v6, %v5934_v6 }
0x21de   :  { %3365 = vrot.lane.b32.xlu0 %v3296_v22, %s4940_s1 }
0x2248   :  { %v3308_v27 = vpop.permute.xlu1 %3307 }
0x2249   :  { %4390 = vmatmul.mubr.msk.bf16.vlgmr.msra.gmra.mrb[76].mxu0 %vm268_vm1, %v3308_v27 }
0x2250   :  { %v3366_v36 = vpop.permute.xlu0 %3365 }
0x2251   :  { %4398 = vmatmul.mubr.msk.bf16.vlgmr.msra.gmra.mrb[84].mxu1 %vm268_vm1, %v3366_v36 }
0x231c   :  { %v3358_v5 = vpop.f32.mrb[76].mxu0 }
0x231d   :  { %v4391_v39 = vpop.f32.mrb[77].mxu0 }
0x231e   :  { %v3361_v40 = vpop.f32.mrb[78].mxu0 }
0x231f   :  { %v4392_v41 = vpop.f32.mrb[79].mxu0 }
0x2324   :  { %v3416_v42 = vpop.f32.mrb[84].mxu1 }
0x2325   :  { %v3417_v43 = vadd.f32 %v3416_v42, %v3358_v5  ;;  %v4399_v29 = vpop.f32.mrb[85].mxu1 }
0x2326   :  { %v3419_v44 = vpop.f32.mrb[86].mxu1 }
0x2327   :  { %v3429_v45 = vadd.f32 %v5704_v31, %v3417_v43  ;;  %v4400_v46 = vpop.f32.mrb[87].mxu1 }
0x2329   :  { %v3924_v18 = vmul.f32 -1.442695, %v3429_v45 }
0x232b   :  { %4715 = vpow2.f32 %v3924_v18 }
0x232c   :  { %4717 = vtanh.f32 %v3429_v45 }
0x2335   :  { %v4716_v47 = vpop.eup %4715 }
0x2336   :  { %v3434_v35 = vadd.f32 1.0, %v4716_v47  ;;  %v4718_v24 = vpop.eup %4717 }
0x2338   :  { %4719 = vrcp.f32 %v3434_v35 }
0x2342   :  { %v4720_v49 = vpop.eup %4719 }
0x2343   :  { %v3437_v11 = vsel %vm5171_vm5, %v4718_v24, %v4720_v49 }
0x2344   :  { %3440 = vrot.lane.b32.xlu1 %v3437_v11, %s4935_s28  ;;  %v3438_v38 = vmul.f32 %v3437_v11, %v3049_v52 }
0x23b6   :  { %v3441_v12 = vpop.permute.xlu1 %3440 }
0x23b7   :  { %v3443_v23 = vmul.f32 %v3441_v12, %v3437_v11 }
0x23b9   :  { %3445 = vrot.lane.b32.xlu0 %v3443_v23, %s4940_s1 }
0x23bd   :  { %663 = vrot.lane.b32.xlu0 %v5348_v0, %s4940_s1  ;;  %v3494_v0 = vld [vmem:[%s6135_s10] sm:$0xff] }
0x23c1   :  { %1461 = vrot.lane.b32.xlu0 %v5542_v8, %s4940_s1  ;;  %v3495_v8 = vld [vmem:[%s6135_s10 + $0x8] sm:$0xff] }
0x23c5   :  { %2259 = vrot.lane.b32.xlu0 %v5743_v15, %s4940_s1  ;;  %v4421_v15 = vpack.c.bf16 %v3495_v8, %v3494_v0 }
0x23c7   :  { %4422 = vmatprep.subr.bf16.mxu0 %v4421_v15 }
0x23c8   :  { %4424 = vmatpush3.bf16.msra.mxu0 %v4421_v15 }
0x23c9   :  { %3057 = vrot.lane.b32.xlu0 %v3055_v26, %s4940_s1 }
0x23cd   :  { %3466 = vrot.lane.b32.xlu0 %v5857_v17, %s4941_s12  ;;  %v3496_v17 = vld [vmem:[%s6135_s10 + $0x10] sm:$0xff] }
0x23d1   :  { %3461 = vrot.lane.b32.xlu0 %v5879_v34, %s4940_s1  ;;  %v3497_v34 = vld [vmem:[%s6135_s10 + $0x18] sm:$0xff]  ;;  %s4942_s10 = smov [#allocation12]  }
0x23d2   :  { %v4425_v37 = vpack.c.bf16 %v3497_v34, %v3496_v17 }
0x23d4   :  { %4426 = vmatprep.subr.bf16.mxu0 %v4425_v37 }
0x23d5   :  { %4428 = vmatpush3.bf16.msra.mxu0 %v4425_v37 }
0x242b   :  { %v3446_v31 = vpop.permute.xlu0 %3445 }
0x242c   :  { %v3448_v16 = vadd.f32 %v3446_v31, %v3438_v38 }
0x242e   :  { %4721 = vtanh.f32 %v3448_v16  ;;  %3482 = vrot.lane.b32.xlu0 %v3448_v16, %s4941_s12 }
0x242f   :  { %v664_v50 = vpop.permute.xlu0 %663 }
0x2430   :  { %666 = vst.msk [vmem:[#allocation3] sm:$0xff] %vm268_vm1, %v664_v50 }
0x2433   :  { %v1462_v13 = vpop.permute.xlu0 %1461 }
0x2434   :  { %1464 = vst.msk [vmem:[#allocation3 + $0x10] sm:$0xff] %vm268_vm1, %v1462_v13 }
0x2437   :  { %v2260_v51 = vpop.permute.xlu0 %2259  ;;  %v3486_v53 = vld [vmem:[#allocation3] sm:$0xff] }
0x2438   :  { %v4722_v56 = vpop.eup %4721  ;;  %2262 = vst.msk [vmem:[#allocation3 + $0x20] sm:$0xff] %vm268_vm1, %v2260_v51  ;;  %4409 = vmatprep.mubr.msk.f32.mxu0 %vm268_vm1, %v3486_v53 }
0x2439   :  { %3451 = vrot.lane.b32.xlu1 %v4722_v56, %s4935_s28  ;;  %s3685_s28 = sshll.u32 %s4942_s10, 4  ;;  %s3686_s28 = int_to_ptr.vmem [resolvable:$true] %s3685_s28 }
0x243a   :  { %s4789_s11 = scalar_lea.vmem %s3686_s28, 128  ;;  %p4794_p11 = scmp.lt.s32.totalorder %s3686_s28, %s3686_s28 }
0x243b   :  { %v3058_v48 = vpop.permute.xlu0 %3057  ;;  %v3488_v4 = vld [vmem:[#allocation3 + $0x10] sm:$0xff]  ;;  %p4790_p10 = scmp.ne.s32.totalorder %s3686_s28, %s4789_s11  ;;  %p4795_p12 = scmp.lt.s32.totalorder %s4789_s11, %s4789_s11 }
0x243c   :  { %3060 = vst.msk [vmem:[#allocation3 + $0x30] sm:$0xff] %vm268_vm1, %v3058_v48 }
0x243d   :  { %1062 = vrot.lane.b32.xlu1 %v5421_v14, %s4940_s1  ;;  %p4796_p13 = por %p4795_p12, %p4794_p11 }
0x243f   :  { %v3467_v20 = vpop.permute.xlu0 %3466  ;;  %v3490_v63 = vld [vmem:[#allocation3 + $0x20] sm:$0xff]  ;;  %p4797_p0 = pnand %p4796_p13, %p4790_p10 }
0x2440   :  { %3469 = vst.msk [vmem:[#allocation12] sm:$0xff] %vm268_vm1, %v3467_v20 }
0x2441   :  { %1860 = vrot.lane.b32.xlu1 %v5615_v19, %s4940_s1 }
0x2443   :  { %v3462_v58 = vpop.permute.xlu0 %3461  ;;  %v3492_v52 = vld [vmem:[#allocation3 + $0x30] sm:$0xff] }
0x2444   :  { %3464 = vst.msk [vmem:[#allocation11] sm:$0xff] %vm268_vm1, %v3462_v58 }
0x2445   :  { %2658 = vrot.lane.b32.xlu1 %v5816_v33, %s4940_s1 }
0x24a0   :  { %v3483_v32 = vpop.permute.xlu0 %3482 }
0x24a1   :  { %3485 = vst.msk [vmem:[#allocation18] sm:$0xff] %vm268_vm1, %v3483_v32 }
0x24ab   :  { %v3452_v59 = vpop.permute.xlu1 %3451 }
0x24ac   :  { %v3454_v62 = vmul.f32 %v3452_v59, %v3437_v11 }
0x24ae   :  { %3456 = vrot.lane.b32.xlu1 %v3454_v62, %s4940_s1 }
0x24af   :  { %v1063_v14 = vpop.permute.xlu1 %1062 }
0x24b0   :  { %1065 = vst.msk [vmem:[#allocation3 + $0x8] sm:$0xff] %vm268_vm1, %v1063_v14 }
0x24b2   :  { %3476 = vrot.lane.b32.xlu1 %v5914_v61, %s4941_s12 }
0x24b3   :  { %v1861_v19 = vpop.permute.xlu1 %1860 }
0x24b4   :  { %1863 = vst.msk [vmem:[#allocation3 + $0x18] sm:$0xff] %vm268_vm1, %v1861_v19 }
0x24b6   :  { %3471 = vrot.lane.b32.xlu1 %v5934_v6, %s4940_s1  ;;  %s4943_s1 = smov [#allocation15]  }
0x24b7   :  { %v2659_v33 = vpop.permute.xlu1 %2658  ;;  %v3487_v57 = vld [vmem:[#allocation3 + $0x8] sm:$0xff]  ;;  %s3705_s26 = sshll.u32 %s4943_s1, 4  ;;  %s3706_s26 = int_to_ptr.vmem [resolvable:$true] %s3705_s26 }
0x24b8   :  { %2661 = vst.msk [vmem:[#allocation3 + $0x28] sm:$0xff] %vm268_vm1, %v2659_v33  ;;  %4410 = vmatmul.mubr.msk.f32.vlgmr.msra.gmra.mrb[80].mxu0 %vm268_vm1, %v3487_v57 }
0x24b9   :  { %4412 = vmatprep.mubr.msk.f32.mxu0 %vm268_vm1, %v3488_v4 }
0x24bb   :  { %v3489_v1 = vld [vmem:[#allocation3 + $0x18] sm:$0xff] }
0x24bc   :  { %4413 = vmatmul.mubr.msk.f32.gmra.mrb[82].mxu0 %vm268_vm1, %v3489_v1 }
0x24bd   :  { %4415 = vmatprep.mubr.msk.f32.mxu0 %vm268_vm1, %v3490_v63 }
0x24bf   :  { %v3491_v54 = vld [vmem:[#allocation3 + $0x28] sm:$0xff] }
0x24c0   :  { %4416 = vmatmul.mubr.msk.f32.gmra.mrb[84].mxu0 %vm268_vm1, %v3491_v54 }
0x24c1   :  { %4418 = vmatprep.mubr.msk.f32.mxu0 %vm268_vm1, %v3492_v52 }
0x2520   :  { %v3457_v9 = vpop.permute.xlu1 %3456 }
0x2521   :  { %3459 = vst.msk [vmem:[#allocation3 + $0x38] sm:$0xff] %vm268_vm1, %v3457_v9  ;;  %3480 = vst.msk [vmem:[#allocation17] sm:$0xff] %vm268_vm1, %v3457_v9 }
0x2524   :  { %v3477_v60 = vpop.permute.xlu1 %3476 }
0x2525   :  { %3479 = vst.msk [vmem:[#allocation15] sm:$0xff] %vm268_vm1, %v3477_v60 }
0x2528   :  { %v3472_v61 = vpop.permute.xlu1 %3471  ;;  %v3493_v55 = vld [vmem:[#allocation3 + $0x38] sm:$0xff] }
0x2529   :  { %3474 = vst.msk [vmem:[#allocation14] sm:$0xff] %vm268_vm1, %v3472_v61  ;;  %4419 = vmatmul.mubr.msk.f32.gmra.mrb[86].mxu0 %vm268_vm1, %v3493_v55 }
0x252a   :  { %4800 = shalt.err (!%p4797_p0)
}
0x252b   :  { %s4801_s6 = scalar_lea.hbm %s6145_s20, 128 }
0x252c   :  { %p4802_p1 = scmp.ne.s32.totalorder %s6145_s20, %s4801_s6  ;;  %p4805_p2 = scmp.lt.u32.totalorder %s4801_s6, %s6145_s20 }
0x252e   :  { %p4807_p3 = pnand %p4805_p2, %p4802_p1 }
0x2530   :  { %4810 = shalt.err (!%p4807_p3)
}
0x2531   :  { %3688 = dma.vmem_to_hbm [thread:$0]  %s3686_s28, 128, %s6145_s20, [#allocation13]  }
0x2532   :  { %s4811_s0 = scalar_lea.vmem %s3706_s26, 128  ;;  %p4816_p5 = scmp.lt.s32.totalorder %s3706_s26, %s3706_s26 }
0x2533   :  { %p4812_p4 = scmp.ne.s32.totalorder %s3706_s26, %s4811_s0  ;;  %p4817_p6 = scmp.lt.s32.totalorder %s4811_s0, %s4811_s0 }
0x2535   :  { %p4818_p7 = por %p4817_p6, %p4816_p5 }
0x2537   :  { %p4819_p8 = pnand %p4818_p7, %p4812_p4 }
0x2539   :  { %4822 = shalt.err (!%p4819_p8)
}
0x253a   :  { %s4823_s29 = scalar_lea.hbm %s6147_s22, 128 }
0x253b   :  { %p4824_p9 = scmp.ne.s32.totalorder %s6147_s22, %s4823_s29  ;;  %p4827_p10 = scmp.lt.u32.totalorder %s4823_s29, %s6147_s22 }
0x253d   :  { %p4829_p11 = pnand %p4827_p10, %p4824_p9 }
0x253f   :  { %4832 = shalt.err (!%p4829_p11)
}
0x2540   :  { %3708 = dma.vmem_to_hbm [thread:$0]  %s3706_s26, 128, %s6147_s22, [#allocation16]  }
0x2541   :  { %s4944_s9 = smov [#allocation11]   ;;  %s4945_s28 = smov [#allocation14]  }
0x2542   :  { %s3675_s10 = sshll.u32 %s4944_s9, 4  ;;  %s3695_s1 = sshll.u32 %s4945_s28, 4  ;;  %s3676_s10 = int_to_ptr.vmem [resolvable:$true] %s3675_s10  ;;  %s3696_s1 = int_to_ptr.vmem [resolvable:$true] %s3695_s1 }
0x2543   :  { %s4833_s11 = scalar_lea.vmem %s3676_s10, 128  ;;  %p4838_p13 = scmp.lt.s32.totalorder %s3676_s10, %s3676_s10 }
0x2544   :  { %p4834_p12 = scmp.ne.s32.totalorder %s3676_s10, %s4833_s11  ;;  %p4839_p0 = scmp.lt.s32.totalorder %s4833_s11, %s4833_s11 }
0x2546   :  { %p4840_p1 = por %p4839_p0, %p4838_p13 }
0x2548   :  { %p4841_p2 = pnand %p4840_p1, %p4834_p12 }
0x254a   :  { %4844 = shalt.err (!%p4841_p2)
}
0x254b   :  { %s4845_s6 = scalar_lea.hbm %s6144_s19, 128 }
0x254c   :  { %p4846_p3 = scmp.ne.s32.totalorder %s6144_s19, %s4845_s6  ;;  %p4849_p4 = scmp.lt.u32.totalorder %s4845_s6, %s6144_s19 }
0x254e   :  { %p4851_p5 = pnand %p4849_p4, %p4846_p3 }
0x2550   :  { %4854 = shalt.err (!%p4851_p5)
}
0x2551   :  { %3678 = dma.vmem_to_hbm [thread:$0]  %s3676_s10, 128, %s6144_s19, [#allocation7]  }
0x2552   :  { %s4855_s17 = scalar_lea.vmem %s3696_s1, 128  ;;  %p4860_p7 = scmp.lt.s32.totalorder %s3696_s1, %s3696_s1 }
0x2553   :  { %p4856_p6 = scmp.ne.s32.totalorder %s3696_s1, %s4855_s17  ;;  %p4861_p8 = scmp.lt.s32.totalorder %s4855_s17, %s4855_s17 }
0x2555   :  { %p4862_p9 = por %p4861_p8, %p4860_p7 }
0x2557   :  { %p4863_p10 = pnand %p4862_p9, %p4856_p6 }
0x2559   :  { %4866 = shalt.err (!%p4863_p10)
}
0x255a   :  { %s4867_s12 = scalar_lea.hbm %s6146_s21, 128 }
0x255b   :  { %p4868_p11 = scmp.ne.s32.totalorder %s6146_s21, %s4867_s12  ;;  %p4871_p12 = scmp.lt.u32.totalorder %s4867_s12, %s6146_s21 }
0x255d   :  { %p4873_p13 = pnand %p4871_p12, %p4868_p11 }
0x255f   :  { %4876 = shalt.err (!%p4873_p13)
}
0x2560   :  { %3698 = dma.vmem_to_hbm [thread:$0]  %s3696_s1, 128, %s6146_s21, [#allocation13]   ;;  %v6052_v7 = vld [vmem:[#allocation4] ss:$0 sm:$0xff] }
0x2561   :  { %s4946_s27 = smov [#allocation17]   ;;  %s4947_s13 = smov [#allocation18]  }
0x2562   :  { %s3715_s20 = sshll.u32 %s4946_s27, 4  ;;  %s3725_s9 = sshll.u32 %s4947_s13, 4  ;;  %s3716_s20 = int_to_ptr.vmem [resolvable:$true] %s3715_s20  ;;  %s6054_s9 = int_to_ptr.vmem [resolvable:$true] %s3725_s9 }
0x2563   :  { %s4877_s10 = scalar_lea.vmem %s3716_s20, 128  ;;  %p4882_p1 = scmp.lt.s32.totalorder %s3716_s20, %s3716_s20 }
0x2564   :  { %p4878_p0 = scmp.ne.s32.totalorder %s3716_s20, %s4877_s10  ;;  %p4883_p2 = scmp.lt.s32.totalorder %s4877_s10, %s4877_s10 }
0x2566   :  { %p4884_p3 = por %p4883_p2, %p4882_p1 }
0x2568   :  { %p4885_p4 = pnand %p4884_p3, %p4878_p0 }
0x258b   :  { %v4411_v10 = vpop.f32.mrb[80].mxu0 }
0x258c   :  { %v3601_v2 = vadd.f32 %v4411_v10, %v6052_v7  ;;  %v3595_v3 = vpop.f32.mrb[81].mxu0 }
0x258d   :  { %4888 = shalt.err (!%p4885_p4)
}
0x258e   :  { %s4889_s1 = scalar_lea.hbm %s6148_s23, 128 }
0x258f   :  { %p4890_p5 = scmp.ne.s32.totalorder %s6148_s23, %s4889_s1  ;;  %p4893_p6 = scmp.lt.u32.totalorder %s4889_s1, %s6148_s23 }
0x2591   :  { %p4895_p7 = pnand %p4893_p6, %p4890_p5 }
0x2593   :  { %4898 = shalt.err (!%p4895_p7)
}
0x2594   :  { %3718 = dma.vmem_to_hbm [thread:$0]  %s3716_s20, 128, %s6148_s23, [#allocation16]   ;;  %v3596_v21 = vadd.f32 %v6052_v7, %v3595_v3 }
0x2595   :  { %s4899_s22 = scalar_lea.vmem %s6054_s9, 128  ;;  %p4904_p9 = scmp.lt.s32.totalorder %s6054_s9, %s6054_s9 }
0x2596   :  { %p4900_p8 = scmp.ne.s32.totalorder %s6054_s9, %s4899_s22  ;;  %p4905_p10 = scmp.lt.s32.totalorder %s4899_s22, %s4899_s22 }
0x2598   :  { %p4906_p11 = por %p4905_p10, %p4904_p9 }
0x259a   :  { %p4907_p12 = pnand %p4906_p11, %p4900_p8 }
0x259c   :  { %4910 = shalt.err (!%p4907_p12)
}
0x259d   :  { %s4911_s2 = scalar_lea.hbm %s6149_s24, 128 }
0x259e   :  { %p4912_p13 = scmp.ne.s32.totalorder %s6149_s24, %s4911_s2  ;;  %p4915_p0 = scmp.lt.u32.totalorder %s4911_s2, %s6149_s24 }
0x25a0   :  { %p4917_p1 = pnand %p4915_p0, %p4912_p13 }
0x25a2   :  { %4920 = shalt.err (!%p4917_p1)
}
0x25a3   :  { %3728 = dma.vmem_to_hbm [thread:$0]  %s6054_s9, 128, %s6149_s24, [#allocation19]   ;;  %vm3635_vm6 = vcmp.gt.f32.partialorder %v3601_v2, 0.0  ;;  %v3643_v25 = vmul.f32 0.01, %v3601_v2  ;;  %vm3658_vm7 = vcmask 7168  }
0x25a4   :  { %vm3634_vm8 = vcmp.gt.f32.partialorder %v3596_v21, 0.0  ;;  %v3642_v26 = vmul.f32 0.01, %v3596_v21  ;;  %v4414_v28 = vpop.f32.mrb[82].mxu0 }
0x25a5   :  { %v3651_v30 = vsel %vm3635_vm6, %v3601_v2, %v3643_v25  ;;  %v3611_v6 = vadd.f32 %v4414_v28, %v6052_v7  ;;  %v3605_v22 = vpop.f32.mrb[83].mxu0 }
0x25a6   :  { %3660 = vst.msk [vmem:[%s6143_s18 + $0x8] sm:$0xff] %vm3658_vm7, %v3651_v30  ;;  %v3650_v27 = vsel %vm3634_vm8, %v3596_v21, %v3642_v26  ;;  %v3606_v36 = vadd.f32 %v6052_v7, %v3605_v22  ;;  %v4417_v40 = vpop.f32.mrb[84].mxu0 }
0x25a7   :  { %3659 = vst.msk [vmem:[%s6143_s18] sm:$0xff] %vm3658_vm7, %v3650_v27  ;;  %vm3637_vm9 = vcmp.gt.f32.partialorder %v3611_v6, 0.0  ;;  %v3645_v5 = vmul.f32 0.01, %v3611_v6  ;;  %v3621_v42 = vadd.f32 %v4417_v40, %v6052_v7  ;;  %v3615_v43 = vpop.f32.mrb[85].mxu0 }
0x25a8   :  { %vm3636_vm10 = vcmp.gt.f32.partialorder %v3606_v36, 0.0  ;;  %v3644_v39 = vmul.f32 0.01, %v3606_v36  ;;  %v3616_v44 = vadd.f32 %v6052_v7, %v3615_v43 }
0x25a9   :  { %v3653_v41 = vsel %vm3637_vm9, %v3611_v6, %v3645_v5  ;;  %vm3639_vm11 = vcmp.gt.f32.partialorder %v3621_v42, 0.0  ;;  %v3647_v45 = vmul.f32 0.01, %v3621_v42 }
0x25aa   :  { %3662 = vst.msk [vmem:[%s6143_s18 + $0x18] sm:$0xff] %vm3658_vm7, %v3653_v41  ;;  %v3652_v29 = vsel %vm3636_vm10, %v3606_v36, %v3644_v39  ;;  %vm3638_vm12 = vcmp.gt.f32.partialorder %v3616_v44, 0.0  ;;  %v3646_v46 = vmul.f32 0.01, %v3616_v44 }
0x25ab   :  { %3661 = vst.msk [vmem:[%s6143_s18 + $0x10] sm:$0xff] %vm3658_vm7, %v3652_v29  ;;  %v3655_v18 = vsel %vm3639_vm11, %v3621_v42, %v3647_v45 }
0x25ac   :  { %3664 = vst.msk [vmem:[%s6143_s18 + $0x28] sm:$0xff] %vm3658_vm7, %v3655_v18  ;;  %v3654_v47 = vsel %vm3638_vm12, %v3616_v44, %v3646_v46 }
0x25ad   :  { %3663 = vst.msk [vmem:[%s6143_s18 + $0x20] sm:$0xff] %vm3658_vm7, %v3654_v47 }
0x25fc   :  { %v4420_v35 = vpop.f32.mrb[86].mxu0 }
0x25fd   :  { %v3631_v24 = vadd.f32 %v4420_v35, %v6052_v7  ;;  %v3625_v49 = vpop.f32.mrb[87].mxu0 }
0x25fe   :  { %v3626_v11 = vadd.f32 %v6052_v7, %v3625_v49 }
0x25ff   :  { %vm3641_vm13 = vcmp.gt.f32.partialorder %v3631_v24, 0.0  ;;  %v3649_v12 = vmul.f32 0.01, %v3631_v24 }
0x2600   :  { %vm3640_vm14 = vcmp.gt.f32.partialorder %v3626_v11, 0.0  ;;  %v3648_v23 = vmul.f32 0.01, %v3626_v11 }
0x2601   :  { %v3657_v38 = vsel %vm3641_vm13, %v3631_v24, %v3649_v12 }
0x2602   :  { %3666 = vst.msk [vmem:[%s6143_s18 + $0x38] sm:$0xff] %vm3658_vm7, %v3657_v38  ;;  %v3656_v31 = vsel %vm3640_vm14, %v3626_v11, %v3648_v23 }
0x2603   :  { %3665 = vst.msk [vmem:[%s6143_s18 + $0x30] sm:$0xff] %vm3658_vm7, %v3656_v31 }
0x2604   :  { %4925 = dma.done.wait [#allocation7], 128  }
0x2605   :  { %4926 = vsyncadd [#allocation7], 4294967168 }
0x2606   :  { %4927 = dma.done.wait [#allocation13], 256  }
0x2607   :  { %4928 = vsyncadd [#allocation13], 4294967040 }
0x2608   :  { %4929 = dma.done.wait [#allocation16], 256  }
0x2609   :  { %4930 = vsyncadd [#allocation16], 4294967040 }
0x260a   :  { %4931 = dma.done.wait [#allocation19], 128  }
0x260b   :  { %4932 = vsyncadd [#allocation19], 4294967168 }
0x260c   :  { %3749 = vsyncpa [#allocation6], 1 }
0x260d   :  { %3750 = vsyncpa [#allocation9], 1 }
0x260e   :  { %3751 = vsyncpa [#allocation7], 1 }
0x260f   :  { %3752 = vsyncpa [#allocation13], 1 }
0x2610   :  { %3753 = vsyncpa [#allocation16], 1 }
0x2611   :  { %3754 = vsyncpa [#allocation19], 1 }

</bundles_post_ra>
